<compile_context>
chip_gen: v7x
topology: tpu7x:2x2x1
jax: 0.10.0
libtpu: 0.0.40
codegen_flags: <defaults>
</compile_context>

<pallas_src>
import math

import jax
import jax.numpy as jnp
from jax import lax
from jax.experimental import pallas as pl
from jax.experimental.pallas import tpu as pltpu

# (kernel_h, kernel_w, out_channels, has_maxpool_2x2) per conv layer of CNN_Encoder
LAYER_CFGS = [
    (3, 3, 8, True),
    (3, 3, 16, True),
    (3, 3, 32, True),
    (3, 3, 64, False),
    (4, 2, 128, False),
]
LN_EPS = 1e-5
LEAKY_SLOPE = 0.01   # nn.LeakyReLU() default negative_slope


def _stage_plan(h_img, w_img, c_img):
    """Static per-stage geometry as seen by the kernel.

    Layer 1's input arrives pre-im2col'ed from the wrapper, so inside the
    kernel it is a 1x1 'conv' with Cin = kh*kw*3 = 27.
    """
    plan = []
    h, w, c = h_img, w_img, c_img
    for li, (kh, kw, cout, pool) in enumerate(LAYER_CFGS):
        ho, wo = h - kh + 1, w - kw + 1
        assert ho >= 1 and wo >= 1, "input too small for CNN_Encoder"
        hp, wp = (ho // 2, wo // 2) if pool else (ho, wo)
        if li == 0:
            cfg = dict(hin=ho, win=wo, cin=kh * kw * c, kh=1, kw=1,
                       cout=cout, ho=ho, wo=wo, hp=hp, wp=wp, pool=pool)
        else:
            cfg = dict(hin=h, win=w, cin=c, kh=kh, kw=kw,
                       cout=cout, ho=ho, wo=wo, hp=hp, wp=wp, pool=pool)
        plan.append(cfg)
        h, w, c = hp, wp, cout
    return plan, (h, w, c)


def _make_conv_row(in_ref, w_ref, b_ref, cfg):
    """Build conv_row(y) -> LeakyReLU(Conv row y + bias), shape (Wo, Cout) f32.

    Weights arrive kw-folded: w_ref[dy] is (Cin, kw*Cout) bf16. One bf16 dot
    per dy on the unshifted input row (Win, Cin), then kw shifted-slice adds
    pick out the column groups. Taps and bias broadcast are hoisted.
    """
    kh, kw, cout, wo = cfg["kh"], cfg["kw"], cfg["cout"], cfg["wo"]
    taps = [w_ref[dy] for dy in range(kh)]                       # (Cin, kw*Cout) bf16
    bias_row = jnp.zeros((wo, cout), jnp.float32) + b_ref[...]   # hoisted broadcast

    def conv_row(y):
        wide = None                                              # (Win, kw*Cout) f32
        for dy in range(kh):                                     # static, unrolled
            xrow = in_ref[y + dy].astype(jnp.bfloat16)           # cast only at the dot
            d = jnp.dot(xrow, taps[dy], preferred_element_type=jnp.float32)
            wide = d if wide is None else wide + d
        if kw == 1:
            acc = bias_row + wide
        else:
            acc = bias_row
            for dx in range(kw):                                 # shifted-slice combine
                acc = acc + wide[dx:dx + wo, dx * cout:(dx + 1) * cout]
        return jnp.maximum(acc, LEAKY_SLOPE * acc)               # LeakyReLU

    return conv_row


def _stage_pool(in_ref, w_ref, b_ref, rowbuf_ref, out_ref, cfg):
    """Conv + LeakyReLU + LayerNorm((C,Ho,Wo), no affine) + MaxPool2d(2,2)."""
    conv_row = _make_conv_row(in_ref, w_ref, b_ref, cfg)
    wo, cout, ho, hp, wp = cfg["wo"], cfg["cout"], cfg["ho"], cfg["hp"], cfg["wp"]

    zeros = jnp.zeros((wo, cout), jnp.float32)

    def body(i, carry):
        s, ss = carry
        r0 = conv_row(2 * i)
        r1 = conv_row(2 * i + 1)
        rowbuf_ref[i] = jnp.maximum(r0, r1)          # row-pair pooled, UN-normalized
        s = s + (r0 + r1)                            # deferred LN stats (VPU adds)
        ss = ss + (r0 * r0 + r1 * r1)
        return (s, ss)

    s, ss = lax.fori_loop(0, hp, body, (zeros, zeros))

    # Rows dropped by the 2x2 pool still count toward the LayerNorm statistics.
    for y in range(2 * hp, ho):                      # static; at most one row
        r = conv_row(y)
        s = s + r
        ss = ss + r * r

    cnt = float(ho * wo * cout)
    mean = jnp.sum(s) * (1.0 / cnt)
    var = jnp.sum(ss) * (1.0 / cnt) - mean * mean
    inv = lax.rsqrt(var + LN_EPS)

    # Column-pair max-pool of the UN-normalized row-pooled map, then normalize
    # only the pooled map. Valid: stats are over the pre-pool map and the LN
    # map is a monotone increasing affine (inv > 0, no learnable affine).
    p0 = rowbuf_ref[pl.ds(0, hp), pl.ds(0, wp, stride=2), :]
    p1 = rowbuf_ref[pl.ds(0, hp), pl.ds(1, wp, stride=2), :]
    out_ref[...] = (jnp.maximum(p0, p1) - mean) * inv


def _stage_nopool(in_ref, w_ref, b_ref, out_ref, cfg):
    """Conv + LeakyReLU + LayerNorm((C,Ho,Wo), no affine); tiny maps, static unroll."""
    conv_row = _make_conv_row(in_ref, w_ref, b_ref, cfg)
    wo, cout, ho = cfg["wo"], cfg["cout"], cfg["ho"]

    s = jnp.zeros((wo, cout), jnp.float32)
    ss = jnp.zeros((wo, cout), jnp.float32)
    for y in range(ho):                              # ho <= 4 here
        r = conv_row(y)
        out_ref[y] = r
        s = s + r
        ss = ss + r * r

    cnt = float(ho * wo * cout)
    mean = jnp.sum(s) * (1.0 / cnt)
    var = jnp.sum(ss) * (1.0 / cnt) - mean * mean
    inv = lax.rsqrt(var + LN_EPS)
    out_ref[...] = (out_ref[...] - mean) * inv       # normalize in place


def _make_kernel(plan):
    n_layers = len(plan)

    def kernel(*args):
        x_ref = args[0]
        wb = args[1:1 + 2 * n_layers]
        o_ref = args[1 + 2 * n_layers]
        scratch = list(args[2 + 2 * n_layers:])

        si = 0
        cur_in = x_ref
        for li, cfg in enumerate(plan):
            w_ref, b_ref = wb[2 * li], wb[2 * li + 1]
            if cfg["pool"]:
                rowbuf = scratch[si]; si += 1
                dst = scratch[si]; si += 1
                _stage_pool(cur_in, w_ref, b_ref, rowbuf, dst, cfg)
            else:
                if li == n_layers - 1:
                    dst = o_ref
                else:
                    dst = scratch[si]; si += 1
                _stage_nopool(cur_in, w_ref, b_ref, dst, cfg)
            cur_in = dst

    return kernel


def _fold_weights(params, c_in):
    """Kernel-side weight layout, bf16:
       layer 1: (1, kh*kw*Cin, Cout) single-tap (matches wrapper im2col),
       others : (kh, Cin, kw*Cout) with tap dx in lane group [dx*Cout:(dx+1)*Cout]."""
    folded = []
    cin = c_in
    for li, ((w, b), (kh, kw, cout, _)) in enumerate(zip(params, LAYER_CFGS)):
        if li == 0:
            w_f = w.reshape(1, kh * kw * cin, cout)
        else:
            w_f = (w.reshape(kh, kw, cin, cout)
                     .transpose(0, 2, 1, 3)
                     .reshape(kh, cin, kw * cout))
        folded.append((w_f.astype(jnp.bfloat16), b))
        cin = cout
    return folded


def cnn_encoder_forward(x_nchw, params):
    """Pallas CNN_Encoder forward (eval mode). x_nchw: (B, 3, H, W) f32, NCHW."""
    B, c_in, H, W = x_nchw.shape
    x = jnp.transpose(x_nchw, (0, 2, 3, 1))              # NCHW -> NHWC

    plan, (hf, wf, cf) = _stage_plan(H, W, c_in)

    # Wrapper-side im2col for layer 1 only: (B, Ho1, Wo1, kh*kw*Cin), shipped
    # as bf16 (MXU-native operand, half the HBM->VMEM bytes of the big input).
    kh0, kw0, _, _ = LAYER_CFGS[0]
    ho0, wo0 = H - kh0 + 1, W - kw0 + 1
    x_p = jnp.concatenate(
        [x[:, dy:dy + ho0, dx:dx + wo0, :]
         for dy in range(kh0) for dx in range(kw0)], axis=-1).astype(jnp.bfloat16)

    folded = _fold_weights(params, c_in)

    in_specs = [pl.BlockSpec((None, plan[0]["hin"], plan[0]["win"], plan[0]["cin"]),
                             lambda b: (b, 0, 0, 0))]
    flat_inputs = [x_p]
    for (w_f, b_f) in folded:
        in_specs.append(pl.BlockSpec(w_f.shape, lambda b: (0, 0, 0)))
        in_specs.append(pl.BlockSpec(b_f.shape, lambda b: (0, 0)))
        flat_inputs += [w_f, b_f]

    # Per-stage VMEM scratch (all f32; bf16 only at the MXU boundary):
    #   pool layers: row-pooled un-normalized map (Hp,Wo,C) + pooled output (Hp,Wp,C)
    #   non-pool non-final: activation map (Ho,Wo,C)
    scratch_shapes = []
    for cfg in plan[:-1]:
        if cfg["pool"]:
            scratch_shapes.append(
                pltpu.VMEM((cfg["hp"], cfg["wo"], cfg["cout"]), jnp.float32))
            scratch_shapes.append(
                pltpu.VMEM((cfg["hp"], cfg["wp"], cfg["cout"]), jnp.float32))
        else:
            scratch_shapes.append(
                pltpu.VMEM((cfg["ho"], cfg["wo"], cfg["cout"]), jnp.float32))

    out = pl.pallas_call(
        _make_kernel(plan),
        out_shape=jax.ShapeDtypeStruct((B, hf, wf, cf), jnp.float32),
        grid_spec=pltpu.PrefetchScalarGridSpec(
            num_scalar_prefetch=0,
            grid=(B,),   # one sample per grid step; whole net stays in VMEM (~3 MB)
            in_specs=in_specs,
            out_specs=pl.BlockSpec((None, hf, wf, cf), lambda b: (b, 0, 0, 0)),
            scratch_shapes=scratch_shapes),
        compiler_params=pltpu.CompilerParams(dimension_semantics=("parallel",)),
    )(*flat_inputs)
    # TODO(synk): Dropout(0.2) only acts in training mode; eval-mode identity here.
    return jnp.transpose(out, (0, 3, 1, 2))               # NHWC -> NCHW


def init_params(key):
    """Deterministic synthetic weights with PyTorch Conv2d-like fan-in scaling.
    w[dy*kw+dx, i, o] == torch_weight[o, i, dy, dx];  b: (1, Cout)."""
    params = []
    cin = 3
    for (kh, kw, cout, _) in LAYER_CFGS:
        key, k_w, k_b = jax.random.split(key, 3)
        bound = 1.0 / math.sqrt(cin * kh * kw)
        w = jax.random.uniform(k_w, (kh * kw, cin, cout), jnp.float32, -bound, bound)
        b = jax.random.uniform(k_b, (1, cout), jnp.float32, -bound, bound)
        params.append((w, b))
        cin = cout
    return params


def reference_forward(x_nchw, params, matmul_dtype=jnp.float32):
    """Pure-JAX (XLA) reference matching the PyTorch forward in eval mode.
    matmul_dtype=bf16 reproduces the kernel's MXU-operand rounding (f32 accum)."""
    x = jnp.transpose(x_nchw, (0, 2, 3, 1))
    prec = (lax.Precision.HIGHEST if matmul_dtype == jnp.float32
            else lax.Precision.DEFAULT)
    for (w, b), (kh, kw, cout, pool) in zip(params, LAYER_CFGS):
        cin = x.shape[-1]
        w4 = w.reshape(kh, kw, cin, cout)
        y = lax.conv_general_dilated(
            x.astype(matmul_dtype), w4.astype(matmul_dtype),
            window_strides=(1, 1), padding="VALID",
            dimension_numbers=("NHWC", "HWIO", "NHWC"),
            preferred_element_type=jnp.float32,
            precision=prec) + b.reshape(1, 1, 1, cout)
        y = jnp.where(y > 0.0, y, LEAKY_SLOPE * y)
        mean = jnp.mean(y, axis=(1, 2, 3), keepdims=True)
        var = jnp.mean(jnp.square(y - mean), axis=(1, 2, 3), keepdims=True)
        y = (y - mean) * lax.rsqrt(var + LN_EPS)
        if pool:
            y = lax.reduce_window(y, -jnp.inf, lax.max,
                                  (1, 2, 2, 1), (1, 2, 2, 1), "VALID")
        x = y
    return jnp.transpose(x, (0, 3, 1, 2))


if __name__ == "__main__":
    key = jax.random.PRNGKey(0)
    key, xkey = jax.random.split(key)
    # 5 valid convs + 3 maxpools need ~>=62x46 spatial; (64, 48) -> (128, 1, 1).
    B, H, W = 2, 64, 48
    x = jax.random.normal(xkey, (B, 3, H, W), jnp.float32)
    params = init_params(key)

    fwd = jax.jit(cnn_encoder_forward)
    out = jax.block_until_ready(fwd(x, params))

    ref_bf16 = jax.block_until_ready(reference_forward(x, params, jnp.bfloat16))
    ref_f32 = jax.block_until_ready(reference_forward(x, params, jnp.float32))

    assert out.shape == ref_f32.shape == (B, 128, 1, 1), out.shape
    assert bool(jnp.all(jnp.isfinite(out)))
    err_bf16 = float(jnp.max(jnp.abs(out - ref_bf16)))
    err_f32 = float(jnp.max(jnp.abs(out - ref_f32)))
    # Tight check vs a reference with the same bf16 MXU-operand rounding; loose
    # check vs the full-f32 PyTorch-equivalent reference.
    assert bool(jnp.allclose(out, ref_bf16, atol=2e-2, rtol=2e-2)), (err_bf16, err_f32)
    assert bool(jnp.allclose(out, ref_f32, atol=1e-1, rtol=1e-1)), (err_bf16, err_f32)
    print("KERNEL_OK")
</pallas_src>

<mosaic_0001>
module attributes {stable_mosaic.version = 11 : i64} {
  func.func @kernel(%arg0: i32, %arg1: memref<1x62x46x27xbf16, #tpu.memory_space<vmem>>, %arg2: memref<1x27x8xbf16, #tpu.memory_space<vmem>>, %arg3: memref<1x8xf32, #tpu.memory_space<vmem>>, %arg4: memref<3x8x48xbf16, #tpu.memory_space<vmem>>, %arg5: memref<1x16xf32, #tpu.memory_space<vmem>>, %arg6: memref<3x16x96xbf16, #tpu.memory_space<vmem>>, %arg7: memref<1x32xf32, #tpu.memory_space<vmem>>, %arg8: memref<3x32x192xbf16, #tpu.memory_space<vmem>>, %arg9: memref<1x64xf32, #tpu.memory_space<vmem>>, %arg10: memref<4x64x256xbf16, #tpu.memory_space<vmem>>, %arg11: memref<1x128xf32, #tpu.memory_space<vmem>>, %arg12: memref<1x1x1x128xf32, #tpu.memory_space<vmem>>, %arg13: memref<31x46x8xf32, #tpu.memory_space<vmem>>, %arg14: memref<31x23x8xf32, #tpu.memory_space<vmem>>, %arg15: memref<14x21x16xf32, #tpu.memory_space<vmem>>, %arg16: memref<14x10x16xf32, #tpu.memory_space<vmem>>, %arg17: memref<6x8x32xf32, #tpu.memory_space<vmem>>, %arg18: memref<6x4x32xf32, #tpu.memory_space<vmem>>, %arg19: memref<4x2x64xf32, #tpu.memory_space<vmem>>) attributes {dimension_semantics = [#tpu.dimension_semantics<parallel>], iteration_bounds = array<i64: 2>, scalar_prefetch = 0 : i64, scratch_operands = 7 : i64, tpu.core_type = #tpu.core_type<tc>, window_params = [{transform_indices = @transform_0, window_bounds = array<i64: 1, 62, 46, 27>}, {pipeline_mode = #tpu.pipeline_mode<synchronous>, transform_indices = @transform_1, window_bounds = array<i64: 1, 27, 8>}, {pipeline_mode = #tpu.pipeline_mode<synchronous>, transform_indices = @transform_2, window_bounds = array<i64: 1, 8>}, {pipeline_mode = #tpu.pipeline_mode<synchronous>, transform_indices = @transform_3, window_bounds = array<i64: 3, 8, 48>}, {pipeline_mode = #tpu.pipeline_mode<synchronous>, transform_indices = @transform_4, window_bounds = array<i64: 1, 16>}, {pipeline_mode = #tpu.pipeline_mode<synchronous>, transform_indices = @transform_5, window_bounds = array<i64: 3, 16, 96>}, {pipeline_mode = #tpu.pipeline_mode<synchronous>, transform_indices = @transform_6, window_bounds = array<i64: 1, 32>}, {pipeline_mode = #tpu.pipeline_mode<synchronous>, transform_indices = @transform_7, window_bounds = array<i64: 3, 32, 192>}, {pipeline_mode = #tpu.pipeline_mode<synchronous>, transform_indices = @transform_8, window_bounds = array<i64: 1, 64>}, {pipeline_mode = #tpu.pipeline_mode<synchronous>, transform_indices = @transform_9, window_bounds = array<i64: 4, 64, 256>}, {pipeline_mode = #tpu.pipeline_mode<synchronous>, transform_indices = @transform_10, window_bounds = array<i64: 1, 128>}, {transform_indices = @transform_11, window_bounds = array<i64: 1, 1, 1, 128>}]} {
    %c0 = arith.constant 0 : index
    %c0_0 = arith.constant 0 : index
    %c0_1 = arith.constant 0 : index
    %0 = vector.load %arg2[%c0, %c0_0, %c0_1] : memref<1x27x8xbf16, #tpu.memory_space<vmem>>, vector<1x27x8xbf16>
    %1 = vector.shape_cast %0 : vector<1x27x8xbf16> to vector<27x8xbf16>
    %cst = arith.constant 0.000000e+00 : f32
    %2 = vector.broadcast %cst : f32 to vector<46x8xf32>
    %c0_2 = arith.constant 0 : index
    %c0_3 = arith.constant 0 : index
    %3 = vector.load %arg3[%c0_2, %c0_3] : memref<1x8xf32, #tpu.memory_space<vmem>>, vector<1x8xf32>
    %4 = vector.broadcast %3 : vector<1x8xf32> to vector<46x8xf32>
    %5 = arith.addf %2, %4 : vector<46x8xf32>
    %cst_4 = arith.constant 0.000000e+00 : f32
    %6 = vector.broadcast %cst_4 : f32 to vector<46x8xf32>
    %c0_i32 = arith.constant 0 : i32
    %c31_i32 = arith.constant 31 : i32
    %7 = arith.addi %c0_i32, %c31_i32 : i32
    %c1_i32 = arith.constant 1 : i32
    %8:2 = scf.for %arg20 = %c0_i32 to %7 step %c1_i32 iter_args(%arg21 = %6, %arg22 = %6) -> (vector<46x8xf32>, vector<46x8xf32>)  : i32 {
      %c2_i32 = arith.constant 2 : i32
      %343 = arith.muli %c2_i32, %arg20 : i32
      %c0_i32_225 = arith.constant 0 : i32
      %344 = arith.addi %343, %c0_i32_225 : i32
      %c0_226 = arith.constant 0 : index
      %345 = arith.index_cast %344 : i32 to index
      %c0_227 = arith.constant 0 : index
      %c0_228 = arith.constant 0 : index
      %346 = vector.load %arg1[%c0_226, %345, %c0_227, %c0_228] : memref<1x62x46x27xbf16, #tpu.memory_space<vmem>>, vector<1x1x46x27xbf16>
      %347 = vector.shape_cast %346 : vector<1x1x46x27xbf16> to vector<46x27xbf16>
      %cst_229 = arith.constant dense<0.000000e+00> : vector<46x8xf32>
      %348 = tpu.matmul %347, %1, %cst_229 {dimension_numbers = #tpu.dot_dimension_numbers<[1], [0], [0], [1], [0, 0, 1, 1], [], []>} : vector<46x27xbf16>, vector<27x8xbf16>, vector<46x8xf32> -> vector<46x8xf32>
      %349 = arith.addf %5, %348 : vector<46x8xf32>
      %cst_230 = arith.constant 0.00999999977 : f32
      %350 = vector.broadcast %cst_230 : f32 to vector<46x8xf32>
      %351 = arith.mulf %350, %349 : vector<46x8xf32>
      %352 = arith.maximumf %349, %351 : vector<46x8xf32>
      %c2_i32_231 = arith.constant 2 : i32
      %353 = arith.muli %c2_i32_231, %arg20 : i32
      %c1_i32_232 = arith.constant 1 : i32
      %354 = arith.addi %353, %c1_i32_232 : i32
      %c0_i32_233 = arith.constant 0 : i32
      %355 = arith.addi %354, %c0_i32_233 : i32
      %c0_234 = arith.constant 0 : index
      %356 = arith.index_cast %355 : i32 to index
      %c0_235 = arith.constant 0 : index
      %c0_236 = arith.constant 0 : index
      %357 = vector.load %arg1[%c0_234, %356, %c0_235, %c0_236] : memref<1x62x46x27xbf16, #tpu.memory_space<vmem>>, vector<1x1x46x27xbf16>
      %358 = vector.shape_cast %357 : vector<1x1x46x27xbf16> to vector<46x27xbf16>
      %cst_237 = arith.constant dense<0.000000e+00> : vector<46x8xf32>
      %359 = tpu.matmul %358, %1, %cst_237 {dimension_numbers = #tpu.dot_dimension_numbers<[1], [0], [0], [1], [0, 0, 1, 1], [], []>} : vector<46x27xbf16>, vector<27x8xbf16>, vector<46x8xf32> -> vector<46x8xf32>
      %360 = arith.addf %5, %359 : vector<46x8xf32>
      %cst_238 = arith.constant 0.00999999977 : f32
      %361 = vector.broadcast %cst_238 : f32 to vector<46x8xf32>
      %362 = arith.mulf %361, %360 : vector<46x8xf32>
      %363 = arith.maximumf %360, %362 : vector<46x8xf32>
      %364 = arith.maximumf %352, %363 : vector<46x8xf32>
      %365 = arith.index_cast %arg20 : i32 to index
      %c0_239 = arith.constant 0 : index
      %c0_240 = arith.constant 0 : index
      %366 = vector.load %arg13[%365, %c0_239, %c0_240] : memref<31x46x8xf32, #tpu.memory_space<vmem>>, vector<1x46x8xf32>
      %367 = vector.shape_cast %366 : vector<1x46x8xf32> to vector<46x8xf32>
      %368 = vector.shape_cast %364 : vector<46x8xf32> to vector<1x46x8xf32>
      tpu.vector_store %arg13[%365, %c0_239, %c0_240], %368 {strides = array<i32>} : memref<31x46x8xf32, #tpu.memory_space<vmem>>, vector<1x46x8xf32>,
      %369 = arith.addf %352, %363 : vector<46x8xf32>
      %370 = arith.addf %arg21, %369 : vector<46x8xf32>
      %371 = arith.mulf %352, %352 : vector<46x8xf32>
      %372 = arith.mulf %363, %363 : vector<46x8xf32>
      %373 = arith.addf %371, %372 : vector<46x8xf32>
      %374 = arith.addf %arg22, %373 : vector<46x8xf32>
      scf.yield %370, %374 : vector<46x8xf32>, vector<46x8xf32>
    }
    %c31_i32_5 = arith.constant 31 : i32
    %9 = vector.shape_cast %8#0 : vector<46x8xf32> to vector<1x46x8xf32>
    %cst_6 = arith.constant dense<0.000000e+00> : vector<1xf32>
    %10 = vector.multi_reduction <add>, %9, %cst_6 [1, 2] : vector<1x46x8xf32> to vector<1xf32>
    %11 = vector.shape_cast %10 : vector<1xf32> to vector<1x1x1xf32>
    %12 = vector.extract %11[0, 0, 0] : f32 from vector<1x1x1xf32>
    %cst_7 = arith.constant 4.38288916E-5 : f32
    %13 = arith.mulf %12, %cst_7 : f32
    %14 = vector.shape_cast %8#1 : vector<46x8xf32> to vector<1x46x8xf32>
    %cst_8 = arith.constant dense<0.000000e+00> : vector<1xf32>
    %15 = vector.multi_reduction <add>, %14, %cst_8 [1, 2] : vector<1x46x8xf32> to vector<1xf32>
    %16 = vector.shape_cast %15 : vector<1xf32> to vector<1x1x1xf32>
    %17 = vector.extract %16[0, 0, 0] : f32 from vector<1x1x1xf32>
    %cst_9 = arith.constant 4.38288916E-5 : f32
    %18 = arith.mulf %17, %cst_9 : f32
    %19 = arith.mulf %13, %13 : f32
    %20 = arith.subf %18, %19 : f32
    %cst_10 = arith.constant 9.99999974E-6 : f32
    %21 = arith.addf %20, %cst_10 : f32
    %22 = math.rsqrt %21 : f32
    %c0_11 = arith.constant 0 : index
    %c0_12 = arith.constant 0 : index
    %c0_13 = arith.constant 0 : index
    %23 = tpu.strided_load %arg13[%c0_11, %c0_12, %c0_13] {strides = array<i32: 1, 2, 1>} : memref<31x46x8xf32, #tpu.memory_space<vmem>>, vector<31x23x8xf32>
    %c0_14 = arith.constant 0 : index
    %c1 = arith.constant 1 : index
    %c0_15 = arith.constant 0 : index
    %24 = tpu.strided_load %arg13[%c0_14, %c1, %c0_15] {strides = array<i32: 1, 2, 1>} : memref<31x46x8xf32, #tpu.memory_space<vmem>>, vector<31x23x8xf32>
    %25 = arith.maximumf %23, %24 : vector<31x23x8xf32>
    %26 = vector.broadcast %13 : f32 to vector<31x23x8xf32>
    %27 = arith.subf %25, %26 : vector<31x23x8xf32>
    %28 = vector.broadcast %22 : f32 to vector<31x23x8xf32>
    %29 = arith.mulf %27, %28 : vector<31x23x8xf32>
    %c0_16 = arith.constant 0 : index
    %c0_17 = arith.constant 0 : index
    %c0_18 = arith.constant 0 : index
    %30 = vector.load %arg14[%c0_16, %c0_17, %c0_18] : memref<31x23x8xf32, #tpu.memory_space<vmem>>, vector<31x23x8xf32>
    tpu.vector_store %arg14[%c0_16, %c0_17, %c0_18], %29 {strides = array<i32>} : memref<31x23x8xf32, #tpu.memory_space<vmem>>, vector<31x23x8xf32>,
    %c0_19 = arith.constant 0 : index
    %c0_20 = arith.constant 0 : index
    %c0_21 = arith.constant 0 : index
    %31 = vector.load %arg4[%c0_19, %c0_20, %c0_21] : memref<3x8x48xbf16, #tpu.memory_space<vmem>>, vector<1x8x48xbf16>
    %32 = vector.shape_cast %31 : vector<1x8x48xbf16> to vector<8x48xbf16>
    %c1_22 = arith.constant 1 : index
    %c0_23 = arith.constant 0 : index
    %c0_24 = arith.constant 0 : index
    %33 = vector.load %arg4[%c1_22, %c0_23, %c0_24] : memref<3x8x48xbf16, #tpu.memory_space<vmem>>, vector<1x8x48xbf16>
    %34 = vector.shape_cast %33 : vector<1x8x48xbf16> to vector<8x48xbf16>
    %c2 = arith.constant 2 : index
    %c0_25 = arith.constant 0 : index
    %c0_26 = arith.constant 0 : index
    %35 = vector.load %arg4[%c2, %c0_25, %c0_26] : memref<3x8x48xbf16, #tpu.memory_space<vmem>>, vector<1x8x48xbf16>
    %36 = vector.shape_cast %35 : vector<1x8x48xbf16> to vector<8x48xbf16>
    %cst_27 = arith.constant 0.000000e+00 : f32
    %37 = vector.broadcast %cst_27 : f32 to vector<21x16xf32>
    %c0_28 = arith.constant 0 : index
    %c0_29 = arith.constant 0 : index
    %38 = vector.load %arg5[%c0_28, %c0_29] : memref<1x16xf32, #tpu.memory_space<vmem>>, vector<1x16xf32>
    %39 = vector.broadcast %38 : vector<1x16xf32> to vector<21x16xf32>
    %40 = arith.addf %37, %39 : vector<21x16xf32>
    %cst_30 = arith.constant 0.000000e+00 : f32
    %41 = vector.broadcast %cst_30 : f32 to vector<21x16xf32>
    %c0_i32_31 = arith.constant 0 : i32
    %c14_i32 = arith.constant 14 : i32
    %42 = arith.addi %c0_i32_31, %c14_i32 : i32
    %c1_i32_32 = arith.constant 1 : i32
    %43:2 = scf.for %arg20 = %c0_i32_31 to %42 step %c1_i32_32 iter_args(%arg21 = %41, %arg22 = %41) -> (vector<21x16xf32>, vector<21x16xf32>)  : i32 {
      %c2_i32 = arith.constant 2 : i32
      %343 = arith.muli %c2_i32, %arg20 : i32
      %c0_i32_225 = arith.constant 0 : i32
      %344 = arith.addi %343, %c0_i32_225 : i32
      %345 = arith.index_cast %344 : i32 to index
      %c0_226 = arith.constant 0 : index
      %c0_227 = arith.constant 0 : index
      %346 = vector.load %arg14[%345, %c0_226, %c0_227] : memref<31x23x8xf32, #tpu.memory_space<vmem>>, vector<1x23x8xf32>
      %347 = vector.shape_cast %346 : vector<1x23x8xf32> to vector<23x8xf32>
      %348 = arith.truncf %347 : vector<23x8xf32> to vector<23x8xbf16>
      %cst_228 = arith.constant dense<0.000000e+00> : vector<23x48xf32>
      %349 = tpu.matmul %348, %32, %cst_228 {dimension_numbers = #tpu.dot_dimension_numbers<[1], [0], [0], [1], [0, 0, 1, 1], [], []>} : vector<23x8xbf16>, vector<8x48xbf16>, vector<23x48xf32> -> vector<23x48xf32>
      %c1_i32_229 = arith.constant 1 : i32
      %350 = arith.addi %343, %c1_i32_229 : i32
      %351 = arith.index_cast %350 : i32 to index
      %c0_230 = arith.constant 0 : index
      %c0_231 = arith.constant 0 : index
      %352 = vector.load %arg14[%351, %c0_230, %c0_231] : memref<31x23x8xf32, #tpu.memory_space<vmem>>, vector<1x23x8xf32>
      %353 = vector.shape_cast %352 : vector<1x23x8xf32> to vector<23x8xf32>
      %354 = arith.truncf %353 : vector<23x8xf32> to vector<23x8xbf16>
      %cst_232 = arith.constant dense<0.000000e+00> : vector<23x48xf32>
      %355 = tpu.matmul %354, %34, %cst_232 {dimension_numbers = #tpu.dot_dimension_numbers<[1], [0], [0], [1], [0, 0, 1, 1], [], []>} : vector<23x8xbf16>, vector<8x48xbf16>, vector<23x48xf32> -> vector<23x48xf32>
      %356 = arith.addf %349, %355 : vector<23x48xf32>
      %c2_i32_233 = arith.constant 2 : i32
      %357 = arith.addi %343, %c2_i32_233 : i32
      %358 = arith.index_cast %357 : i32 to index
      %c0_234 = arith.constant 0 : index
      %c0_235 = arith.constant 0 : index
      %359 = vector.load %arg14[%358, %c0_234, %c0_235] : memref<31x23x8xf32, #tpu.memory_space<vmem>>, vector<1x23x8xf32>
      %360 = vector.shape_cast %359 : vector<1x23x8xf32> to vector<23x8xf32>
      %361 = arith.truncf %360 : vector<23x8xf32> to vector<23x8xbf16>
      %cst_236 = arith.constant dense<0.000000e+00> : vector<23x48xf32>
      %362 = tpu.matmul %361, %36, %cst_236 {dimension_numbers = #tpu.dot_dimension_numbers<[1], [0], [0], [1], [0, 0, 1, 1], [], []>} : vector<23x8xbf16>, vector<8x48xbf16>, vector<23x48xf32> -> vector<23x48xf32>
      %363 = arith.addf %356, %362 : vector<23x48xf32>
      %364 = vector.extract_strided_slice %363 {offsets = [0, 0], sizes = [21, 16], strides = [1, 1]} : vector<23x48xf32> to vector<21x16xf32>
      %365 = arith.addf %40, %364 : vector<21x16xf32>
      %366 = vector.extract_strided_slice %363 {offsets = [1, 16], sizes = [21, 16], strides = [1, 1]} : vector<23x48xf32> to vector<21x16xf32>
      %367 = arith.addf %365, %366 : vector<21x16xf32>
      %368 = vector.extract_strided_slice %363 {offsets = [2, 32], sizes = [21, 16], strides = [1, 1]} : vector<23x48xf32> to vector<21x16xf32>
      %369 = arith.addf %367, %368 : vector<21x16xf32>
      %cst_237 = arith.constant 0.00999999977 : f32
      %370 = vector.broadcast %cst_237 : f32 to vector<21x16xf32>
      %371 = arith.mulf %370, %369 : vector<21x16xf32>
      %372 = arith.maximumf %369, %371 : vector<21x16xf32>
      %c2_i32_238 = arith.constant 2 : i32
      %373 = arith.muli %c2_i32_238, %arg20 : i32
      %c1_i32_239 = arith.constant 1 : i32
      %374 = arith.addi %373, %c1_i32_239 : i32
      %c0_i32_240 = arith.constant 0 : i32
      %375 = arith.addi %374, %c0_i32_240 : i32
      %376 = arith.index_cast %375 : i32 to index
      %c0_241 = arith.constant 0 : index
      %c0_242 = arith.constant 0 : index
      %377 = vector.load %arg14[%376, %c0_241, %c0_242] : memref<31x23x8xf32, #tpu.memory_space<vmem>>, vector<1x23x8xf32>
      %378 = vector.shape_cast %377 : vector<1x23x8xf32> to vector<23x8xf32>
      %379 = arith.truncf %378 : vector<23x8xf32> to vector<23x8xbf16>
      %cst_243 = arith.constant dense<0.000000e+00> : vector<23x48xf32>
      %380 = tpu.matmul %379, %32, %cst_243 {dimension_numbers = #tpu.dot_dimension_numbers<[1], [0], [0], [1], [0, 0, 1, 1], [], []>} : vector<23x8xbf16>, vector<8x48xbf16>, vector<23x48xf32> -> vector<23x48xf32>
      %c1_i32_244 = arith.constant 1 : i32
      %381 = arith.addi %374, %c1_i32_244 : i32
      %382 = arith.index_cast %381 : i32 to index
      %c0_245 = arith.constant 0 : index
      %c0_246 = arith.constant 0 : index
      %383 = vector.load %arg14[%382, %c0_245, %c0_246] : memref<31x23x8xf32, #tpu.memory_space<vmem>>, vector<1x23x8xf32>
      %384 = vector.shape_cast %383 : vector<1x23x8xf32> to vector<23x8xf32>
      %385 = arith.truncf %384 : vector<23x8xf32> to vector<23x8xbf16>
      %cst_247 = arith.constant dense<0.000000e+00> : vector<23x48xf32>
      %386 = tpu.matmul %385, %34, %cst_247 {dimension_numbers = #tpu.dot_dimension_numbers<[1], [0], [0], [1], [0, 0, 1, 1], [], []>} : vector<23x8xbf16>, vector<8x48xbf16>, vector<23x48xf32> -> vector<23x48xf32>
      %387 = arith.addf %380, %386 : vector<23x48xf32>
      %c2_i32_248 = arith.constant 2 : i32
      %388 = arith.addi %374, %c2_i32_248 : i32
      %389 = arith.index_cast %388 : i32 to index
      %c0_249 = arith.constant 0 : index
      %c0_250 = arith.constant 0 : index
      %390 = vector.load %arg14[%389, %c0_249, %c0_250] : memref<31x23x8xf32, #tpu.memory_space<vmem>>, vector<1x23x8xf32>
      %391 = vector.shape_cast %390 : vector<1x23x8xf32> to vector<23x8xf32>
      %392 = arith.truncf %391 : vector<23x8xf32> to vector<23x8xbf16>
      %cst_251 = arith.constant dense<0.000000e+00> : vector<23x48xf32>
      %393 = tpu.matmul %392, %36, %cst_251 {dimension_numbers = #tpu.dot_dimension_numbers<[1], [0], [0], [1], [0, 0, 1, 1], [], []>} : vector<23x8xbf16>, vector<8x48xbf16>, vector<23x48xf32> -> vector<23x48xf32>
      %394 = arith.addf %387, %393 : vector<23x48xf32>
      %395 = vector.extract_strided_slice %394 {offsets = [0, 0], sizes = [21, 16], strides = [1, 1]} : vector<23x48xf32> to vector<21x16xf32>
      %396 = arith.addf %40, %395 : vector<21x16xf32>
      %397 = vector.extract_strided_slice %394 {offsets = [1, 16], sizes = [21, 16], strides = [1, 1]} : vector<23x48xf32> to vector<21x16xf32>
      %398 = arith.addf %396, %397 : vector<21x16xf32>
      %399 = vector.extract_strided_slice %394 {offsets = [2, 32], sizes = [21, 16], strides = [1, 1]} : vector<23x48xf32> to vector<21x16xf32>
      %400 = arith.addf %398, %399 : vector<21x16xf32>
      %cst_252 = arith.constant 0.00999999977 : f32
      %401 = vector.broadcast %cst_252 : f32 to vector<21x16xf32>
      %402 = arith.mulf %401, %400 : vector<21x16xf32>
      %403 = arith.maximumf %400, %402 : vector<21x16xf32>
      %404 = arith.maximumf %372, %403 : vector<21x16xf32>
      %405 = arith.index_cast %arg20 : i32 to index
      %c0_253 = arith.constant 0 : index
      %c0_254 = arith.constant 0 : index
      %406 = vector.load %arg15[%405, %c0_253, %c0_254] : memref<14x21x16xf32, #tpu.memory_space<vmem>>, vector<1x21x16xf32>
      %407 = vector.shape_cast %406 : vector<1x21x16xf32> to vector<21x16xf32>
      %408 = vector.shape_cast %404 : vector<21x16xf32> to vector<1x21x16xf32>
      tpu.vector_store %arg15[%405, %c0_253, %c0_254], %408 {strides = array<i32>} : memref<14x21x16xf32, #tpu.memory_space<vmem>>, vector<1x21x16xf32>,
      %409 = arith.addf %372, %403 : vector<21x16xf32>
      %410 = arith.addf %arg21, %409 : vector<21x16xf32>
      %411 = arith.mulf %372, %372 : vector<21x16xf32>
      %412 = arith.mulf %403, %403 : vector<21x16xf32>
      %413 = arith.addf %411, %412 : vector<21x16xf32>
      %414 = arith.addf %arg22, %413 : vector<21x16xf32>
      scf.yield %410, %414 : vector<21x16xf32>, vector<21x16xf32>
    }
    %c14_i32_33 = arith.constant 14 : i32
    %c28 = arith.constant 28 : index
    %c0_34 = arith.constant 0 : index
    %c0_35 = arith.constant 0 : index
    %44 = vector.load %arg14[%c28, %c0_34, %c0_35] : memref<31x23x8xf32, #tpu.memory_space<vmem>>, vector<1x23x8xf32>
    %45 = vector.shape_cast %44 : vector<1x23x8xf32> to vector<23x8xf32>
    %46 = arith.truncf %45 : vector<23x8xf32> to vector<23x8xbf16>
    %cst_36 = arith.constant dense<0.000000e+00> : vector<23x48xf32>
    %47 = tpu.matmul %46, %32, %cst_36 {dimension_numbers = #tpu.dot_dimension_numbers<[1], [0], [0], [1], [0, 0, 1, 1], [], []>} : vector<23x8xbf16>, vector<8x48xbf16>, vector<23x48xf32> -> vector<23x48xf32>
    %c29 = arith.constant 29 : index
    %c0_37 = arith.constant 0 : index
    %c0_38 = arith.constant 0 : index
    %48 = vector.load %arg14[%c29, %c0_37, %c0_38] : memref<31x23x8xf32, #tpu.memory_space<vmem>>, vector<1x23x8xf32>
    %49 = vector.shape_cast %48 : vector<1x23x8xf32> to vector<23x8xf32>
    %50 = arith.truncf %49 : vector<23x8xf32> to vector<23x8xbf16>
    %cst_39 = arith.constant dense<0.000000e+00> : vector<23x48xf32>
    %51 = tpu.matmul %50, %34, %cst_39 {dimension_numbers = #tpu.dot_dimension_numbers<[1], [0], [0], [1], [0, 0, 1, 1], [], []>} : vector<23x8xbf16>, vector<8x48xbf16>, vector<23x48xf32> -> vector<23x48xf32>
    %52 = arith.addf %47, %51 : vector<23x48xf32>
    %c30 = arith.constant 30 : index
    %c0_40 = arith.constant 0 : index
    %c0_41 = arith.constant 0 : index
    %53 = vector.load %arg14[%c30, %c0_40, %c0_41] : memref<31x23x8xf32, #tpu.memory_space<vmem>>, vector<1x23x8xf32>
    %54 = vector.shape_cast %53 : vector<1x23x8xf32> to vector<23x8xf32>
    %55 = arith.truncf %54 : vector<23x8xf32> to vector<23x8xbf16>
    %cst_42 = arith.constant dense<0.000000e+00> : vector<23x48xf32>
    %56 = tpu.matmul %55, %36, %cst_42 {dimension_numbers = #tpu.dot_dimension_numbers<[1], [0], [0], [1], [0, 0, 1, 1], [], []>} : vector<23x8xbf16>, vector<8x48xbf16>, vector<23x48xf32> -> vector<23x48xf32>
    %57 = arith.addf %52, %56 : vector<23x48xf32>
    %58 = vector.extract_strided_slice %57 {offsets = [0, 0], sizes = [21, 16], strides = [1, 1]} : vector<23x48xf32> to vector<21x16xf32>
    %59 = arith.addf %40, %58 : vector<21x16xf32>
    %60 = vector.extract_strided_slice %57 {offsets = [1, 16], sizes = [21, 16], strides = [1, 1]} : vector<23x48xf32> to vector<21x16xf32>
    %61 = arith.addf %59, %60 : vector<21x16xf32>
    %62 = vector.extract_strided_slice %57 {offsets = [2, 32], sizes = [21, 16], strides = [1, 1]} : vector<23x48xf32> to vector<21x16xf32>
    %63 = arith.addf %61, %62 : vector<21x16xf32>
    %cst_43 = arith.constant 0.00999999977 : f32
    %64 = vector.broadcast %cst_43 : f32 to vector<21x16xf32>
    %65 = arith.mulf %64, %63 : vector<21x16xf32>
    %66 = arith.maximumf %63, %65 : vector<21x16xf32>
    %67 = arith.addf %43#0, %66 : vector<21x16xf32>
    %68 = arith.mulf %66, %66 : vector<21x16xf32>
    %69 = arith.addf %43#1, %68 : vector<21x16xf32>
    %70 = vector.shape_cast %67 : vector<21x16xf32> to vector<1x21x16xf32>
    %cst_44 = arith.constant dense<0.000000e+00> : vector<1xf32>
    %71 = vector.multi_reduction <add>, %70, %cst_44 [1, 2] : vector<1x21x16xf32> to vector<1xf32>
    %72 = vector.shape_cast %71 : vector<1xf32> to vector<1x1x1xf32>
    %73 = vector.extract %72[0, 0, 0] : f32 from vector<1x1x1xf32>
    %cst_45 = arith.constant 1.02627258E-4 : f32
    %74 = arith.mulf %73, %cst_45 : f32
    %75 = vector.shape_cast %69 : vector<21x16xf32> to vector<1x21x16xf32>
    %cst_46 = arith.constant dense<0.000000e+00> : vector<1xf32>
    %76 = vector.multi_reduction <add>, %75, %cst_46 [1, 2] : vector<1x21x16xf32> to vector<1xf32>
    %77 = vector.shape_cast %76 : vector<1xf32> to vector<1x1x1xf32>
    %78 = vector.extract %77[0, 0, 0] : f32 from vector<1x1x1xf32>
    %cst_47 = arith.constant 1.02627258E-4 : f32
    %79 = arith.mulf %78, %cst_47 : f32
    %80 = arith.mulf %74, %74 : f32
    %81 = arith.subf %79, %80 : f32
    %cst_48 = arith.constant 9.99999974E-6 : f32
    %82 = arith.addf %81, %cst_48 : f32
    %83 = math.rsqrt %82 : f32
    %c0_49 = arith.constant 0 : index
    %c0_50 = arith.constant 0 : index
    %c0_51 = arith.constant 0 : index
    %84 = tpu.strided_load %arg15[%c0_49, %c0_50, %c0_51] {strides = array<i32: 1, 2, 1>} : memref<14x21x16xf32, #tpu.memory_space<vmem>>, vector<14x10x16xf32>
    %c0_52 = arith.constant 0 : index
    %c1_53 = arith.constant 1 : index
    %c0_54 = arith.constant 0 : index
    %85 = tpu.strided_load %arg15[%c0_52, %c1_53, %c0_54] {strides = array<i32: 1, 2, 1>} : memref<14x21x16xf32, #tpu.memory_space<vmem>>, vector<14x10x16xf32>
    %86 = arith.maximumf %84, %85 : vector<14x10x16xf32>
    %87 = vector.broadcast %74 : f32 to vector<14x10x16xf32>
    %88 = arith.subf %86, %87 : vector<14x10x16xf32>
    %89 = vector.broadcast %83 : f32 to vector<14x10x16xf32>
    %90 = arith.mulf %88, %89 : vector<14x10x16xf32>
    %c0_55 = arith.constant 0 : index
    %c0_56 = arith.constant 0 : index
    %c0_57 = arith.constant 0 : index
    %91 = vector.load %arg16[%c0_55, %c0_56, %c0_57] : memref<14x10x16xf32, #tpu.memory_space<vmem>>, vector<14x10x16xf32>
    tpu.vector_store %arg16[%c0_55, %c0_56, %c0_57], %90 {strides = array<i32>} : memref<14x10x16xf32, #tpu.memory_space<vmem>>, vector<14x10x16xf32>,
    %c0_58 = arith.constant 0 : index
    %c0_59 = arith.constant 0 : index
    %c0_60 = arith.constant 0 : index
    %92 = vector.load %arg6[%c0_58, %c0_59, %c0_60] : memref<3x16x96xbf16, #tpu.memory_space<vmem>>, vector<1x16x96xbf16>
    %93 = vector.shape_cast %92 : vector<1x16x96xbf16> to vector<16x96xbf16>
    %c1_61 = arith.constant 1 : index
    %c0_62 = arith.constant 0 : index
    %c0_63 = arith.constant 0 : index
    %94 = vector.load %arg6[%c1_61, %c0_62, %c0_63] : memref<3x16x96xbf16, #tpu.memory_space<vmem>>, vector<1x16x96xbf16>
    %95 = vector.shape_cast %94 : vector<1x16x96xbf16> to vector<16x96xbf16>
    %c2_64 = arith.constant 2 : index
    %c0_65 = arith.constant 0 : index
    %c0_66 = arith.constant 0 : index
    %96 = vector.load %arg6[%c2_64, %c0_65, %c0_66] : memref<3x16x96xbf16, #tpu.memory_space<vmem>>, vector<1x16x96xbf16>
    %97 = vector.shape_cast %96 : vector<1x16x96xbf16> to vector<16x96xbf16>
    %cst_67 = arith.constant 0.000000e+00 : f32
    %98 = vector.broadcast %cst_67 : f32 to vector<8x32xf32>
    %c0_68 = arith.constant 0 : index
    %c0_69 = arith.constant 0 : index
    %99 = vector.load %arg7[%c0_68, %c0_69] : memref<1x32xf32, #tpu.memory_space<vmem>>, vector<1x32xf32>
    %100 = vector.broadcast %99 : vector<1x32xf32> to vector<8x32xf32>
    %101 = arith.addf %98, %100 : vector<8x32xf32>
    %cst_70 = arith.constant 0.000000e+00 : f32
    %102 = vector.broadcast %cst_70 : f32 to vector<8x32xf32>
    %c0_i32_71 = arith.constant 0 : i32
    %c6_i32 = arith.constant 6 : i32
    %103 = arith.addi %c0_i32_71, %c6_i32 : i32
    %c1_i32_72 = arith.constant 1 : i32
    %104:2 = scf.for %arg20 = %c0_i32_71 to %103 step %c1_i32_72 iter_args(%arg21 = %102, %arg22 = %102) -> (vector<8x32xf32>, vector<8x32xf32>)  : i32 {
      %c2_i32 = arith.constant 2 : i32
      %343 = arith.muli %c2_i32, %arg20 : i32
      %c0_i32_225 = arith.constant 0 : i32
      %344 = arith.addi %343, %c0_i32_225 : i32
      %345 = arith.index_cast %344 : i32 to index
      %c0_226 = arith.constant 0 : index
      %c0_227 = arith.constant 0 : index
      %346 = vector.load %arg16[%345, %c0_226, %c0_227] : memref<14x10x16xf32, #tpu.memory_space<vmem>>, vector<1x10x16xf32>
      %347 = vector.shape_cast %346 : vector<1x10x16xf32> to vector<10x16xf32>
      %348 = arith.truncf %347 : vector<10x16xf32> to vector<10x16xbf16>
      %cst_228 = arith.constant dense<0.000000e+00> : vector<10x96xf32>
      %349 = tpu.matmul %348, %93, %cst_228 {dimension_numbers = #tpu.dot_dimension_numbers<[1], [0], [0], [1], [0, 0, 1, 1], [], []>} : vector<10x16xbf16>, vector<16x96xbf16>, vector<10x96xf32> -> vector<10x96xf32>
      %c1_i32_229 = arith.constant 1 : i32
      %350 = arith.addi %343, %c1_i32_229 : i32
      %351 = arith.index_cast %350 : i32 to index
      %c0_230 = arith.constant 0 : index
      %c0_231 = arith.constant 0 : index
      %352 = vector.load %arg16[%351, %c0_230, %c0_231] : memref<14x10x16xf32, #tpu.memory_space<vmem>>, vector<1x10x16xf32>
      %353 = vector.shape_cast %352 : vector<1x10x16xf32> to vector<10x16xf32>
      %354 = arith.truncf %353 : vector<10x16xf32> to vector<10x16xbf16>
      %cst_232 = arith.constant dense<0.000000e+00> : vector<10x96xf32>
      %355 = tpu.matmul %354, %95, %cst_232 {dimension_numbers = #tpu.dot_dimension_numbers<[1], [0], [0], [1], [0, 0, 1, 1], [], []>} : vector<10x16xbf16>, vector<16x96xbf16>, vector<10x96xf32> -> vector<10x96xf32>
      %356 = arith.addf %349, %355 : vector<10x96xf32>
      %c2_i32_233 = arith.constant 2 : i32
      %357 = arith.addi %343, %c2_i32_233 : i32
      %358 = arith.index_cast %357 : i32 to index
      %c0_234 = arith.constant 0 : index
      %c0_235 = arith.constant 0 : index
      %359 = vector.load %arg16[%358, %c0_234, %c0_235] : memref<14x10x16xf32, #tpu.memory_space<vmem>>, vector<1x10x16xf32>
      %360 = vector.shape_cast %359 : vector<1x10x16xf32> to vector<10x16xf32>
      %361 = arith.truncf %360 : vector<10x16xf32> to vector<10x16xbf16>
      %cst_236 = arith.constant dense<0.000000e+00> : vector<10x96xf32>
      %362 = tpu.matmul %361, %97, %cst_236 {dimension_numbers = #tpu.dot_dimension_numbers<[1], [0], [0], [1], [0, 0, 1, 1], [], []>} : vector<10x16xbf16>, vector<16x96xbf16>, vector<10x96xf32> -> vector<10x96xf32>
      %363 = arith.addf %356, %362 : vector<10x96xf32>
      %364 = vector.extract_strided_slice %363 {offsets = [0, 0], sizes = [8, 32], strides = [1, 1]} : vector<10x96xf32> to vector<8x32xf32>
      %365 = arith.addf %101, %364 : vector<8x32xf32>
      %366 = vector.extract_strided_slice %363 {offsets = [1, 32], sizes = [8, 32], strides = [1, 1]} : vector<10x96xf32> to vector<8x32xf32>
      %367 = arith.addf %365, %366 : vector<8x32xf32>
      %368 = vector.extract_strided_slice %363 {offsets = [2, 64], sizes = [8, 32], strides = [1, 1]} : vector<10x96xf32> to vector<8x32xf32>
      %369 = arith.addf %367, %368 : vector<8x32xf32>
      %cst_237 = arith.constant 0.00999999977 : f32
      %370 = vector.broadcast %cst_237 : f32 to vector<8x32xf32>
      %371 = arith.mulf %370, %369 : vector<8x32xf32>
      %372 = arith.maximumf %369, %371 : vector<8x32xf32>
      %c2_i32_238 = arith.constant 2 : i32
      %373 = arith.muli %c2_i32_238, %arg20 : i32
      %c1_i32_239 = arith.constant 1 : i32
      %374 = arith.addi %373, %c1_i32_239 : i32
      %c0_i32_240 = arith.constant 0 : i32
      %375 = arith.addi %374, %c0_i32_240 : i32
      %376 = arith.index_cast %375 : i32 to index
      %c0_241 = arith.constant 0 : index
      %c0_242 = arith.constant 0 : index
      %377 = vector.load %arg16[%376, %c0_241, %c0_242] : memref<14x10x16xf32, #tpu.memory_space<vmem>>, vector<1x10x16xf32>
      %378 = vector.shape_cast %377 : vector<1x10x16xf32> to vector<10x16xf32>
      %379 = arith.truncf %378 : vector<10x16xf32> to vector<10x16xbf16>
      %cst_243 = arith.constant dense<0.000000e+00> : vector<10x96xf32>
      %380 = tpu.matmul %379, %93, %cst_243 {dimension_numbers = #tpu.dot_dimension_numbers<[1], [0], [0], [1], [0, 0, 1, 1], [], []>} : vector<10x16xbf16>, vector<16x96xbf16>, vector<10x96xf32> -> vector<10x96xf32>
      %c1_i32_244 = arith.constant 1 : i32
      %381 = arith.addi %374, %c1_i32_244 : i32
      %382 = arith.index_cast %381 : i32 to index
      %c0_245 = arith.constant 0 : index
      %c0_246 = arith.constant 0 : index
      %383 = vector.load %arg16[%382, %c0_245, %c0_246] : memref<14x10x16xf32, #tpu.memory_space<vmem>>, vector<1x10x16xf32>
      %384 = vector.shape_cast %383 : vector<1x10x16xf32> to vector<10x16xf32>
      %385 = arith.truncf %384 : vector<10x16xf32> to vector<10x16xbf16>
      %cst_247 = arith.constant dense<0.000000e+00> : vector<10x96xf32>
      %386 = tpu.matmul %385, %95, %cst_247 {dimension_numbers = #tpu.dot_dimension_numbers<[1], [0], [0], [1], [0, 0, 1, 1], [], []>} : vector<10x16xbf16>, vector<16x96xbf16>, vector<10x96xf32> -> vector<10x96xf32>
      %387 = arith.addf %380, %386 : vector<10x96xf32>
      %c2_i32_248 = arith.constant 2 : i32
      %388 = arith.addi %374, %c2_i32_248 : i32
      %389 = arith.index_cast %388 : i32 to index
      %c0_249 = arith.constant 0 : index
      %c0_250 = arith.constant 0 : index
      %390 = vector.load %arg16[%389, %c0_249, %c0_250] : memref<14x10x16xf32, #tpu.memory_space<vmem>>, vector<1x10x16xf32>
      %391 = vector.shape_cast %390 : vector<1x10x16xf32> to vector<10x16xf32>
      %392 = arith.truncf %391 : vector<10x16xf32> to vector<10x16xbf16>
      %cst_251 = arith.constant dense<0.000000e+00> : vector<10x96xf32>
      %393 = tpu.matmul %392, %97, %cst_251 {dimension_numbers = #tpu.dot_dimension_numbers<[1], [0], [0], [1], [0, 0, 1, 1], [], []>} : vector<10x16xbf16>, vector<16x96xbf16>, vector<10x96xf32> -> vector<10x96xf32>
      %394 = arith.addf %387, %393 : vector<10x96xf32>
      %395 = vector.extract_strided_slice %394 {offsets = [0, 0], sizes = [8, 32], strides = [1, 1]} : vector<10x96xf32> to vector<8x32xf32>
      %396 = arith.addf %101, %395 : vector<8x32xf32>
      %397 = vector.extract_strided_slice %394 {offsets = [1, 32], sizes = [8, 32], strides = [1, 1]} : vector<10x96xf32> to vector<8x32xf32>
      %398 = arith.addf %396, %397 : vector<8x32xf32>
      %399 = vector.extract_strided_slice %394 {offsets = [2, 64], sizes = [8, 32], strides = [1, 1]} : vector<10x96xf32> to vector<8x32xf32>
      %400 = arith.addf %398, %399 : vector<8x32xf32>
      %cst_252 = arith.constant 0.00999999977 : f32
      %401 = vector.broadcast %cst_252 : f32 to vector<8x32xf32>
      %402 = arith.mulf %401, %400 : vector<8x32xf32>
      %403 = arith.maximumf %400, %402 : vector<8x32xf32>
      %404 = arith.maximumf %372, %403 : vector<8x32xf32>
      %405 = arith.index_cast %arg20 : i32 to index
      %c0_253 = arith.constant 0 : index
      %c0_254 = arith.constant 0 : index
      %406 = vector.load %arg17[%405, %c0_253, %c0_254] : memref<6x8x32xf32, #tpu.memory_space<vmem>>, vector<1x8x32xf32>
      %407 = vector.shape_cast %406 : vector<1x8x32xf32> to vector<8x32xf32>
      %408 = vector.shape_cast %404 : vector<8x32xf32> to vector<1x8x32xf32>
      tpu.vector_store %arg17[%405, %c0_253, %c0_254], %408 {strides = array<i32>} : memref<6x8x32xf32, #tpu.memory_space<vmem>>, vector<1x8x32xf32>,
      %409 = arith.addf %372, %403 : vector<8x32xf32>
      %410 = arith.addf %arg21, %409 : vector<8x32xf32>
      %411 = arith.mulf %372, %372 : vector<8x32xf32>
      %412 = arith.mulf %403, %403 : vector<8x32xf32>
      %413 = arith.addf %411, %412 : vector<8x32xf32>
      %414 = arith.addf %arg22, %413 : vector<8x32xf32>
      scf.yield %410, %414 : vector<8x32xf32>, vector<8x32xf32>
    }
    %c6_i32_73 = arith.constant 6 : i32
    %105 = vector.shape_cast %104#0 : vector<8x32xf32> to vector<1x8x32xf32>
    %cst_74 = arith.constant dense<0.000000e+00> : vector<1xf32>
    %106 = vector.multi_reduction <add>, %105, %cst_74 [1, 2] : vector<1x8x32xf32> to vector<1xf32>
    %107 = vector.shape_cast %106 : vector<1xf32> to vector<1x1x1xf32>
    %108 = vector.extract %107[0, 0, 0] : f32 from vector<1x1x1xf32>
    %cst_75 = arith.constant 3.25520843E-4 : f32
    %109 = arith.mulf %108, %cst_75 : f32
    %110 = vector.shape_cast %104#1 : vector<8x32xf32> to vector<1x8x32xf32>
    %cst_76 = arith.constant dense<0.000000e+00> : vector<1xf32>
    %111 = vector.multi_reduction <add>, %110, %cst_76 [1, 2] : vector<1x8x32xf32> to vector<1xf32>
    %112 = vector.shape_cast %111 : vector<1xf32> to vector<1x1x1xf32>
    %113 = vector.extract %112[0, 0, 0] : f32 from vector<1x1x1xf32>
    %cst_77 = arith.constant 3.25520843E-4 : f32
    %114 = arith.mulf %113, %cst_77 : f32
    %115 = arith.mulf %109, %109 : f32
    %116 = arith.subf %114, %115 : f32
    %cst_78 = arith.constant 9.99999974E-6 : f32
    %117 = arith.addf %116, %cst_78 : f32
    %118 = math.rsqrt %117 : f32
    %c0_79 = arith.constant 0 : index
    %c0_80 = arith.constant 0 : index
    %c0_81 = arith.constant 0 : index
    %119 = tpu.strided_load %arg17[%c0_79, %c0_80, %c0_81] {strides = array<i32: 1, 2, 1>} : memref<6x8x32xf32, #tpu.memory_space<vmem>>, vector<6x4x32xf32>
    %c0_82 = arith.constant 0 : index
    %c1_83 = arith.constant 1 : index
    %c0_84 = arith.constant 0 : index
    %120 = tpu.strided_load %arg17[%c0_82, %c1_83, %c0_84] {strides = array<i32: 1, 2, 1>} : memref<6x8x32xf32, #tpu.memory_space<vmem>>, vector<6x4x32xf32>
    %121 = arith.maximumf %119, %120 : vector<6x4x32xf32>
    %122 = vector.broadcast %109 : f32 to vector<6x4x32xf32>
    %123 = arith.subf %121, %122 : vector<6x4x32xf32>
    %124 = vector.broadcast %118 : f32 to vector<6x4x32xf32>
    %125 = arith.mulf %123, %124 : vector<6x4x32xf32>
    %c0_85 = arith.constant 0 : index
    %c0_86 = arith.constant 0 : index
    %c0_87 = arith.constant 0 : index
    %126 = vector.load %arg18[%c0_85, %c0_86, %c0_87] : memref<6x4x32xf32, #tpu.memory_space<vmem>>, vector<6x4x32xf32>
    tpu.vector_store %arg18[%c0_85, %c0_86, %c0_87], %125 {strides = array<i32>} : memref<6x4x32xf32, #tpu.memory_space<vmem>>, vector<6x4x32xf32>,
    %c0_88 = arith.constant 0 : index
    %c0_89 = arith.constant 0 : index
    %c0_90 = arith.constant 0 : index
    %127 = vector.load %arg8[%c0_88, %c0_89, %c0_90] : memref<3x32x192xbf16, #tpu.memory_space<vmem>>, vector<1x32x192xbf16>
    %128 = vector.shape_cast %127 : vector<1x32x192xbf16> to vector<32x192xbf16>
    %c1_91 = arith.constant 1 : index
    %c0_92 = arith.constant 0 : index
    %c0_93 = arith.constant 0 : index
    %129 = vector.load %arg8[%c1_91, %c0_92, %c0_93] : memref<3x32x192xbf16, #tpu.memory_space<vmem>>, vector<1x32x192xbf16>
    %130 = vector.shape_cast %129 : vector<1x32x192xbf16> to vector<32x192xbf16>
    %c2_94 = arith.constant 2 : index
    %c0_95 = arith.constant 0 : index
    %c0_96 = arith.constant 0 : index
    %131 = vector.load %arg8[%c2_94, %c0_95, %c0_96] : memref<3x32x192xbf16, #tpu.memory_space<vmem>>, vector<1x32x192xbf16>
    %132 = vector.shape_cast %131 : vector<1x32x192xbf16> to vector<32x192xbf16>
    %cst_97 = arith.constant 0.000000e+00 : f32
    %133 = vector.broadcast %cst_97 : f32 to vector<2x64xf32>
    %c0_98 = arith.constant 0 : index
    %c0_99 = arith.constant 0 : index
    %134 = vector.load %arg9[%c0_98, %c0_99] : memref<1x64xf32, #tpu.memory_space<vmem>>, vector<1x64xf32>
    %135 = vector.broadcast %134 : vector<1x64xf32> to vector<2x64xf32>
    %136 = arith.addf %133, %135 : vector<2x64xf32>
    %cst_100 = arith.constant 0.000000e+00 : f32
    %137 = vector.broadcast %cst_100 : f32 to vector<2x64xf32>
    %cst_101 = arith.constant 0.000000e+00 : f32
    %138 = vector.broadcast %cst_101 : f32 to vector<2x64xf32>
    %c0_102 = arith.constant 0 : index
    %c0_103 = arith.constant 0 : index
    %c0_104 = arith.constant 0 : index
    %139 = vector.load %arg18[%c0_102, %c0_103, %c0_104] : memref<6x4x32xf32, #tpu.memory_space<vmem>>, vector<1x4x32xf32>
    %140 = vector.shape_cast %139 : vector<1x4x32xf32> to vector<4x32xf32>
    %141 = arith.truncf %140 : vector<4x32xf32> to vector<4x32xbf16>
    %cst_105 = arith.constant dense<0.000000e+00> : vector<4x192xf32>
    %142 = tpu.matmul %141, %128, %cst_105 {dimension_numbers = #tpu.dot_dimension_numbers<[1], [0], [0], [1], [0, 0, 1, 1], [], []>} : vector<4x32xbf16>, vector<32x192xbf16>, vector<4x192xf32> -> vector<4x192xf32>
    %c1_106 = arith.constant 1 : index
    %c0_107 = arith.constant 0 : index
    %c0_108 = arith.constant 0 : index
    %143 = vector.load %arg18[%c1_106, %c0_107, %c0_108] : memref<6x4x32xf32, #tpu.memory_space<vmem>>, vector<1x4x32xf32>
    %144 = vector.shape_cast %143 : vector<1x4x32xf32> to vector<4x32xf32>
    %145 = arith.truncf %144 : vector<4x32xf32> to vector<4x32xbf16>
    %cst_109 = arith.constant dense<0.000000e+00> : vector<4x192xf32>
    %146 = tpu.matmul %145, %130, %cst_109 {dimension_numbers = #tpu.dot_dimension_numbers<[1], [0], [0], [1], [0, 0, 1, 1], [], []>} : vector<4x32xbf16>, vector<32x192xbf16>, vector<4x192xf32> -> vector<4x192xf32>
    %147 = arith.addf %142, %146 : vector<4x192xf32>
    %c2_110 = arith.constant 2 : index
    %c0_111 = arith.constant 0 : index
    %c0_112 = arith.constant 0 : index
    %148 = vector.load %arg18[%c2_110, %c0_111, %c0_112] : memref<6x4x32xf32, #tpu.memory_space<vmem>>, vector<1x4x32xf32>
    %149 = vector.shape_cast %148 : vector<1x4x32xf32> to vector<4x32xf32>
    %150 = arith.truncf %149 : vector<4x32xf32> to vector<4x32xbf16>
    %cst_113 = arith.constant dense<0.000000e+00> : vector<4x192xf32>
    %151 = tpu.matmul %150, %132, %cst_113 {dimension_numbers = #tpu.dot_dimension_numbers<[1], [0], [0], [1], [0, 0, 1, 1], [], []>} : vector<4x32xbf16>, vector<32x192xbf16>, vector<4x192xf32> -> vector<4x192xf32>
    %152 = arith.addf %147, %151 : vector<4x192xf32>
    %153 = vector.extract_strided_slice %152 {offsets = [0, 0], sizes = [2, 64], strides = [1, 1]} : vector<4x192xf32> to vector<2x64xf32>
    %154 = arith.addf %136, %153 : vector<2x64xf32>
    %155 = vector.extract_strided_slice %152 {offsets = [1, 64], sizes = [2, 64], strides = [1, 1]} : vector<4x192xf32> to vector<2x64xf32>
    %156 = arith.addf %154, %155 : vector<2x64xf32>
    %157 = vector.extract_strided_slice %152 {offsets = [2, 128], sizes = [2, 64], strides = [1, 1]} : vector<4x192xf32> to vector<2x64xf32>
    %158 = arith.addf %156, %157 : vector<2x64xf32>
    %cst_114 = arith.constant 0.00999999977 : f32
    %159 = vector.broadcast %cst_114 : f32 to vector<2x64xf32>
    %160 = arith.mulf %159, %158 : vector<2x64xf32>
    %161 = arith.maximumf %158, %160 : vector<2x64xf32>
    %c0_115 = arith.constant 0 : index
    %c0_116 = arith.constant 0 : index
    %c0_117 = arith.constant 0 : index
    %162 = vector.load %arg19[%c0_115, %c0_116, %c0_117] : memref<4x2x64xf32, #tpu.memory_space<vmem>>, vector<1x2x64xf32>
    %163 = vector.shape_cast %162 : vector<1x2x64xf32> to vector<2x64xf32>
    %164 = vector.shape_cast %161 : vector<2x64xf32> to vector<1x2x64xf32>
    tpu.vector_store %arg19[%c0_115, %c0_116, %c0_117], %164 {strides = array<i32>} : memref<4x2x64xf32, #tpu.memory_space<vmem>>, vector<1x2x64xf32>,
    %165 = arith.addf %137, %161 : vector<2x64xf32>
    %166 = arith.mulf %161, %161 : vector<2x64xf32>
    %167 = arith.addf %138, %166 : vector<2x64xf32>
    %c1_118 = arith.constant 1 : index
    %c0_119 = arith.constant 0 : index
    %c0_120 = arith.constant 0 : index
    %168 = vector.load %arg18[%c1_118, %c0_119, %c0_120] : memref<6x4x32xf32, #tpu.memory_space<vmem>>, vector<1x4x32xf32>
    %169 = vector.shape_cast %168 : vector<1x4x32xf32> to vector<4x32xf32>
    %170 = arith.truncf %169 : vector<4x32xf32> to vector<4x32xbf16>
    %cst_121 = arith.constant dense<0.000000e+00> : vector<4x192xf32>
    %171 = tpu.matmul %170, %128, %cst_121 {dimension_numbers = #tpu.dot_dimension_numbers<[1], [0], [0], [1], [0, 0, 1, 1], [], []>} : vector<4x32xbf16>, vector<32x192xbf16>, vector<4x192xf32> -> vector<4x192xf32>
    %c2_122 = arith.constant 2 : index
    %c0_123 = arith.constant 0 : index
    %c0_124 = arith.constant 0 : index
    %172 = vector.load %arg18[%c2_122, %c0_123, %c0_124] : memref<6x4x32xf32, #tpu.memory_space<vmem>>, vector<1x4x32xf32>
    %173 = vector.shape_cast %172 : vector<1x4x32xf32> to vector<4x32xf32>
    %174 = arith.truncf %173 : vector<4x32xf32> to vector<4x32xbf16>
    %cst_125 = arith.constant dense<0.000000e+00> : vector<4x192xf32>
    %175 = tpu.matmul %174, %130, %cst_125 {dimension_numbers = #tpu.dot_dimension_numbers<[1], [0], [0], [1], [0, 0, 1, 1], [], []>} : vector<4x32xbf16>, vector<32x192xbf16>, vector<4x192xf32> -> vector<4x192xf32>
    %176 = arith.addf %171, %175 : vector<4x192xf32>
    %c3 = arith.constant 3 : index
    %c0_126 = arith.constant 0 : index
    %c0_127 = arith.constant 0 : index
    %177 = vector.load %arg18[%c3, %c0_126, %c0_127] : memref<6x4x32xf32, #tpu.memory_space<vmem>>, vector<1x4x32xf32>
    %178 = vector.shape_cast %177 : vector<1x4x32xf32> to vector<4x32xf32>
    %179 = arith.truncf %178 : vector<4x32xf32> to vector<4x32xbf16>
    %cst_128 = arith.constant dense<0.000000e+00> : vector<4x192xf32>
    %180 = tpu.matmul %179, %132, %cst_128 {dimension_numbers = #tpu.dot_dimension_numbers<[1], [0], [0], [1], [0, 0, 1, 1], [], []>} : vector<4x32xbf16>, vector<32x192xbf16>, vector<4x192xf32> -> vector<4x192xf32>
    %181 = arith.addf %176, %180 : vector<4x192xf32>
    %182 = vector.extract_strided_slice %181 {offsets = [0, 0], sizes = [2, 64], strides = [1, 1]} : vector<4x192xf32> to vector<2x64xf32>
    %183 = arith.addf %136, %182 : vector<2x64xf32>
    %184 = vector.extract_strided_slice %181 {offsets = [1, 64], sizes = [2, 64], strides = [1, 1]} : vector<4x192xf32> to vector<2x64xf32>
    %185 = arith.addf %183, %184 : vector<2x64xf32>
    %186 = vector.extract_strided_slice %181 {offsets = [2, 128], sizes = [2, 64], strides = [1, 1]} : vector<4x192xf32> to vector<2x64xf32>
    %187 = arith.addf %185, %186 : vector<2x64xf32>
    %cst_129 = arith.constant 0.00999999977 : f32
    %188 = vector.broadcast %cst_129 : f32 to vector<2x64xf32>
    %189 = arith.mulf %188, %187 : vector<2x64xf32>
    %190 = arith.maximumf %187, %189 : vector<2x64xf32>
    %c1_130 = arith.constant 1 : index
    %c0_131 = arith.constant 0 : index
    %c0_132 = arith.constant 0 : index
    %191 = vector.load %arg19[%c1_130, %c0_131, %c0_132] : memref<4x2x64xf32, #tpu.memory_space<vmem>>, vector<1x2x64xf32>
    %192 = vector.shape_cast %191 : vector<1x2x64xf32> to vector<2x64xf32>
    %193 = vector.shape_cast %190 : vector<2x64xf32> to vector<1x2x64xf32>
    tpu.vector_store %arg19[%c1_130, %c0_131, %c0_132], %193 {strides = array<i32>} : memref<4x2x64xf32, #tpu.memory_space<vmem>>, vector<1x2x64xf32>,
    %194 = arith.addf %165, %190 : vector<2x64xf32>
    %195 = arith.mulf %190, %190 : vector<2x64xf32>
    %196 = arith.addf %167, %195 : vector<2x64xf32>
    %c2_133 = arith.constant 2 : index
    %c0_134 = arith.constant 0 : index
    %c0_135 = arith.constant 0 : index
    %197 = vector.load %arg18[%c2_133, %c0_134, %c0_135] : memref<6x4x32xf32, #tpu.memory_space<vmem>>, vector<1x4x32xf32>
    %198 = vector.shape_cast %197 : vector<1x4x32xf32> to vector<4x32xf32>
    %199 = arith.truncf %198 : vector<4x32xf32> to vector<4x32xbf16>
    %cst_136 = arith.constant dense<0.000000e+00> : vector<4x192xf32>
    %200 = tpu.matmul %199, %128, %cst_136 {dimension_numbers = #tpu.dot_dimension_numbers<[1], [0], [0], [1], [0, 0, 1, 1], [], []>} : vector<4x32xbf16>, vector<32x192xbf16>, vector<4x192xf32> -> vector<4x192xf32>
    %c3_137 = arith.constant 3 : index
    %c0_138 = arith.constant 0 : index
    %c0_139 = arith.constant 0 : index
    %201 = vector.load %arg18[%c3_137, %c0_138, %c0_139] : memref<6x4x32xf32, #tpu.memory_space<vmem>>, vector<1x4x32xf32>
    %202 = vector.shape_cast %201 : vector<1x4x32xf32> to vector<4x32xf32>
    %203 = arith.truncf %202 : vector<4x32xf32> to vector<4x32xbf16>
    %cst_140 = arith.constant dense<0.000000e+00> : vector<4x192xf32>
    %204 = tpu.matmul %203, %130, %cst_140 {dimension_numbers = #tpu.dot_dimension_numbers<[1], [0], [0], [1], [0, 0, 1, 1], [], []>} : vector<4x32xbf16>, vector<32x192xbf16>, vector<4x192xf32> -> vector<4x192xf32>
    %205 = arith.addf %200, %204 : vector<4x192xf32>
    %c4 = arith.constant 4 : index
    %c0_141 = arith.constant 0 : index
    %c0_142 = arith.constant 0 : index
    %206 = vector.load %arg18[%c4, %c0_141, %c0_142] : memref<6x4x32xf32, #tpu.memory_space<vmem>>, vector<1x4x32xf32>
    %207 = vector.shape_cast %206 : vector<1x4x32xf32> to vector<4x32xf32>
    %208 = arith.truncf %207 : vector<4x32xf32> to vector<4x32xbf16>
    %cst_143 = arith.constant dense<0.000000e+00> : vector<4x192xf32>
    %209 = tpu.matmul %208, %132, %cst_143 {dimension_numbers = #tpu.dot_dimension_numbers<[1], [0], [0], [1], [0, 0, 1, 1], [], []>} : vector<4x32xbf16>, vector<32x192xbf16>, vector<4x192xf32> -> vector<4x192xf32>
    %210 = arith.addf %205, %209 : vector<4x192xf32>
    %211 = vector.extract_strided_slice %210 {offsets = [0, 0], sizes = [2, 64], strides = [1, 1]} : vector<4x192xf32> to vector<2x64xf32>
    %212 = arith.addf %136, %211 : vector<2x64xf32>
    %213 = vector.extract_strided_slice %210 {offsets = [1, 64], sizes = [2, 64], strides = [1, 1]} : vector<4x192xf32> to vector<2x64xf32>
    %214 = arith.addf %212, %213 : vector<2x64xf32>
    %215 = vector.extract_strided_slice %210 {offsets = [2, 128], sizes = [2, 64], strides = [1, 1]} : vector<4x192xf32> to vector<2x64xf32>
    %216 = arith.addf %214, %215 : vector<2x64xf32>
    %cst_144 = arith.constant 0.00999999977 : f32
    %217 = vector.broadcast %cst_144 : f32 to vector<2x64xf32>
    %218 = arith.mulf %217, %216 : vector<2x64xf32>
    %219 = arith.maximumf %216, %218 : vector<2x64xf32>
    %c2_145 = arith.constant 2 : index
    %c0_146 = arith.constant 0 : index
    %c0_147 = arith.constant 0 : index
    %220 = vector.load %arg19[%c2_145, %c0_146, %c0_147] : memref<4x2x64xf32, #tpu.memory_space<vmem>>, vector<1x2x64xf32>
    %221 = vector.shape_cast %220 : vector<1x2x64xf32> to vector<2x64xf32>
    %222 = vector.shape_cast %219 : vector<2x64xf32> to vector<1x2x64xf32>
    tpu.vector_store %arg19[%c2_145, %c0_146, %c0_147], %222 {strides = array<i32>} : memref<4x2x64xf32, #tpu.memory_space<vmem>>, vector<1x2x64xf32>,
    %223 = arith.addf %194, %219 : vector<2x64xf32>
    %224 = arith.mulf %219, %219 : vector<2x64xf32>
    %225 = arith.addf %196, %224 : vector<2x64xf32>
    %c3_148 = arith.constant 3 : index
    %c0_149 = arith.constant 0 : index
    %c0_150 = arith.constant 0 : index
    %226 = vector.load %arg18[%c3_148, %c0_149, %c0_150] : memref<6x4x32xf32, #tpu.memory_space<vmem>>, vector<1x4x32xf32>
    %227 = vector.shape_cast %226 : vector<1x4x32xf32> to vector<4x32xf32>
    %228 = arith.truncf %227 : vector<4x32xf32> to vector<4x32xbf16>
    %cst_151 = arith.constant dense<0.000000e+00> : vector<4x192xf32>
    %229 = tpu.matmul %228, %128, %cst_151 {dimension_numbers = #tpu.dot_dimension_numbers<[1], [0], [0], [1], [0, 0, 1, 1], [], []>} : vector<4x32xbf16>, vector<32x192xbf16>, vector<4x192xf32> -> vector<4x192xf32>
    %c4_152 = arith.constant 4 : index
    %c0_153 = arith.constant 0 : index
    %c0_154 = arith.constant 0 : index
    %230 = vector.load %arg18[%c4_152, %c0_153, %c0_154] : memref<6x4x32xf32, #tpu.memory_space<vmem>>, vector<1x4x32xf32>
    %231 = vector.shape_cast %230 : vector<1x4x32xf32> to vector<4x32xf32>
    %232 = arith.truncf %231 : vector<4x32xf32> to vector<4x32xbf16>
    %cst_155 = arith.constant dense<0.000000e+00> : vector<4x192xf32>
    %233 = tpu.matmul %232, %130, %cst_155 {dimension_numbers = #tpu.dot_dimension_numbers<[1], [0], [0], [1], [0, 0, 1, 1], [], []>} : vector<4x32xbf16>, vector<32x192xbf16>, vector<4x192xf32> -> vector<4x192xf32>
    %234 = arith.addf %229, %233 : vector<4x192xf32>
    %c5 = arith.constant 5 : index
    %c0_156 = arith.constant 0 : index
    %c0_157 = arith.constant 0 : index
    %235 = vector.load %arg18[%c5, %c0_156, %c0_157] : memref<6x4x32xf32, #tpu.memory_space<vmem>>, vector<1x4x32xf32>
    %236 = vector.shape_cast %235 : vector<1x4x32xf32> to vector<4x32xf32>
    %237 = arith.truncf %236 : vector<4x32xf32> to vector<4x32xbf16>
    %cst_158 = arith.constant dense<0.000000e+00> : vector<4x192xf32>
    %238 = tpu.matmul %237, %132, %cst_158 {dimension_numbers = #tpu.dot_dimension_numbers<[1], [0], [0], [1], [0, 0, 1, 1], [], []>} : vector<4x32xbf16>, vector<32x192xbf16>, vector<4x192xf32> -> vector<4x192xf32>
    %239 = arith.addf %234, %238 : vector<4x192xf32>
    %240 = vector.extract_strided_slice %239 {offsets = [0, 0], sizes = [2, 64], strides = [1, 1]} : vector<4x192xf32> to vector<2x64xf32>
    %241 = arith.addf %136, %240 : vector<2x64xf32>
    %242 = vector.extract_strided_slice %239 {offsets = [1, 64], sizes = [2, 64], strides = [1, 1]} : vector<4x192xf32> to vector<2x64xf32>
    %243 = arith.addf %241, %242 : vector<2x64xf32>
    %244 = vector.extract_strided_slice %239 {offsets = [2, 128], sizes = [2, 64], strides = [1, 1]} : vector<4x192xf32> to vector<2x64xf32>
    %245 = arith.addf %243, %244 : vector<2x64xf32>
    %cst_159 = arith.constant 0.00999999977 : f32
    %246 = vector.broadcast %cst_159 : f32 to vector<2x64xf32>
    %247 = arith.mulf %246, %245 : vector<2x64xf32>
    %248 = arith.maximumf %245, %247 : vector<2x64xf32>
    %c3_160 = arith.constant 3 : index
    %c0_161 = arith.constant 0 : index
    %c0_162 = arith.constant 0 : index
    %249 = vector.load %arg19[%c3_160, %c0_161, %c0_162] : memref<4x2x64xf32, #tpu.memory_space<vmem>>, vector<1x2x64xf32>
    %250 = vector.shape_cast %249 : vector<1x2x64xf32> to vector<2x64xf32>
    %251 = vector.shape_cast %248 : vector<2x64xf32> to vector<1x2x64xf32>
    tpu.vector_store %arg19[%c3_160, %c0_161, %c0_162], %251 {strides = array<i32>} : memref<4x2x64xf32, #tpu.memory_space<vmem>>, vector<1x2x64xf32>,
    %252 = arith.addf %223, %248 : vector<2x64xf32>
    %253 = arith.mulf %248, %248 : vector<2x64xf32>
    %254 = arith.addf %225, %253 : vector<2x64xf32>
    %255 = vector.shape_cast %252 : vector<2x64xf32> to vector<1x2x64xf32>
    %cst_163 = arith.constant dense<0.000000e+00> : vector<1xf32>
    %256 = vector.multi_reduction <add>, %255, %cst_163 [1, 2] : vector<1x2x64xf32> to vector<1xf32>
    %257 = vector.shape_cast %256 : vector<1xf32> to vector<1x1x1xf32>
    %258 = vector.extract %257[0, 0, 0] : f32 from vector<1x1x1xf32>
    %cst_164 = arith.constant 0.001953125 : f32
    %259 = arith.mulf %258, %cst_164 : f32
    %260 = vector.shape_cast %254 : vector<2x64xf32> to vector<1x2x64xf32>
    %cst_165 = arith.constant dense<0.000000e+00> : vector<1xf32>
    %261 = vector.multi_reduction <add>, %260, %cst_165 [1, 2] : vector<1x2x64xf32> to vector<1xf32>
    %262 = vector.shape_cast %261 : vector<1xf32> to vector<1x1x1xf32>
    %263 = vector.extract %262[0, 0, 0] : f32 from vector<1x1x1xf32>
    %cst_166 = arith.constant 0.001953125 : f32
    %264 = arith.mulf %263, %cst_166 : f32
    %265 = arith.mulf %259, %259 : f32
    %266 = arith.subf %264, %265 : f32
    %cst_167 = arith.constant 9.99999974E-6 : f32
    %267 = arith.addf %266, %cst_167 : f32
    %268 = math.rsqrt %267 : f32
    %c0_168 = arith.constant 0 : index
    %c0_169 = arith.constant 0 : index
    %c0_170 = arith.constant 0 : index
    %269 = vector.load %arg19[%c0_168, %c0_169, %c0_170] : memref<4x2x64xf32, #tpu.memory_space<vmem>>, vector<4x2x64xf32>
    %270 = vector.broadcast %259 : f32 to vector<4x2x64xf32>
    %271 = arith.subf %269, %270 : vector<4x2x64xf32>
    %272 = vector.broadcast %268 : f32 to vector<4x2x64xf32>
    %273 = arith.mulf %271, %272 : vector<4x2x64xf32>
    %c0_171 = arith.constant 0 : index
    %c0_172 = arith.constant 0 : index
    %c0_173 = arith.constant 0 : index
    %274 = vector.load %arg19[%c0_171, %c0_172, %c0_173] : memref<4x2x64xf32, #tpu.memory_space<vmem>>, vector<4x2x64xf32>
    tpu.vector_store %arg19[%c0_171, %c0_172, %c0_173], %273 {strides = array<i32>} : memref<4x2x64xf32, #tpu.memory_space<vmem>>, vector<4x2x64xf32>,
    %c0_174 = arith.constant 0 : index
    %c0_175 = arith.constant 0 : index
    %c0_176 = arith.constant 0 : index
    %275 = vector.load %arg10[%c0_174, %c0_175, %c0_176] : memref<4x64x256xbf16, #tpu.memory_space<vmem>>, vector<1x64x256xbf16>
    %276 = vector.shape_cast %275 : vector<1x64x256xbf16> to vector<64x256xbf16>
    %c1_177 = arith.constant 1 : index
    %c0_178 = arith.constant 0 : index
    %c0_179 = arith.constant 0 : index
    %277 = vector.load %arg10[%c1_177, %c0_178, %c0_179] : memref<4x64x256xbf16, #tpu.memory_space<vmem>>, vector<1x64x256xbf16>
    %278 = vector.shape_cast %277 : vector<1x64x256xbf16> to vector<64x256xbf16>
    %c2_180 = arith.constant 2 : index
    %c0_181 = arith.constant 0 : index
    %c0_182 = arith.constant 0 : index
    %279 = vector.load %arg10[%c2_180, %c0_181, %c0_182] : memref<4x64x256xbf16, #tpu.memory_space<vmem>>, vector<1x64x256xbf16>
    %280 = vector.shape_cast %279 : vector<1x64x256xbf16> to vector<64x256xbf16>
    %c3_183 = arith.constant 3 : index
    %c0_184 = arith.constant 0 : index
    %c0_185 = arith.constant 0 : index
    %281 = vector.load %arg10[%c3_183, %c0_184, %c0_185] : memref<4x64x256xbf16, #tpu.memory_space<vmem>>, vector<1x64x256xbf16>
    %282 = vector.shape_cast %281 : vector<1x64x256xbf16> to vector<64x256xbf16>
    %cst_186 = arith.constant 0.000000e+00 : f32
    %283 = vector.broadcast %cst_186 : f32 to vector<1x128xf32>
    %c0_187 = arith.constant 0 : index
    %c0_188 = arith.constant 0 : index
    %284 = vector.load %arg11[%c0_187, %c0_188] : memref<1x128xf32, #tpu.memory_space<vmem>>, vector<1x128xf32>
    %285 = arith.addf %283, %284 : vector<1x128xf32>
    %cst_189 = arith.constant 0.000000e+00 : f32
    %286 = vector.broadcast %cst_189 : f32 to vector<1x128xf32>
    %cst_190 = arith.constant 0.000000e+00 : f32
    %287 = vector.broadcast %cst_190 : f32 to vector<1x128xf32>
    %c0_191 = arith.constant 0 : index
    %c0_192 = arith.constant 0 : index
    %c0_193 = arith.constant 0 : index
    %288 = vector.load %arg19[%c0_191, %c0_192, %c0_193] : memref<4x2x64xf32, #tpu.memory_space<vmem>>, vector<1x2x64xf32>
    %289 = vector.shape_cast %288 : vector<1x2x64xf32> to vector<2x64xf32>
    %290 = arith.truncf %289 : vector<2x64xf32> to vector<2x64xbf16>
    %cst_194 = arith.constant dense<0.000000e+00> : vector<2x256xf32>
    %291 = tpu.matmul %290, %276, %cst_194 {dimension_numbers = #tpu.dot_dimension_numbers<[1], [0], [0], [1], [0, 0, 1, 1], [], []>} : vector<2x64xbf16>, vector<64x256xbf16>, vector<2x256xf32> -> vector<2x256xf32>
    %c1_195 = arith.constant 1 : index
    %c0_196 = arith.constant 0 : index
    %c0_197 = arith.constant 0 : index
    %292 = vector.load %arg19[%c1_195, %c0_196, %c0_197] : memref<4x2x64xf32, #tpu.memory_space<vmem>>, vector<1x2x64xf32>
    %293 = vector.shape_cast %292 : vector<1x2x64xf32> to vector<2x64xf32>
    %294 = arith.truncf %293 : vector<2x64xf32> to vector<2x64xbf16>
    %cst_198 = arith.constant dense<0.000000e+00> : vector<2x256xf32>
    %295 = tpu.matmul %294, %278, %cst_198 {dimension_numbers = #tpu.dot_dimension_numbers<[1], [0], [0], [1], [0, 0, 1, 1], [], []>} : vector<2x64xbf16>, vector<64x256xbf16>, vector<2x256xf32> -> vector<2x256xf32>
    %296 = arith.addf %291, %295 : vector<2x256xf32>
    %c2_199 = arith.constant 2 : index
    %c0_200 = arith.constant 0 : index
    %c0_201 = arith.constant 0 : index
    %297 = vector.load %arg19[%c2_199, %c0_200, %c0_201] : memref<4x2x64xf32, #tpu.memory_space<vmem>>, vector<1x2x64xf32>
    %298 = vector.shape_cast %297 : vector<1x2x64xf32> to vector<2x64xf32>
    %299 = arith.truncf %298 : vector<2x64xf32> to vector<2x64xbf16>
    %cst_202 = arith.constant dense<0.000000e+00> : vector<2x256xf32>
    %300 = tpu.matmul %299, %280, %cst_202 {dimension_numbers = #tpu.dot_dimension_numbers<[1], [0], [0], [1], [0, 0, 1, 1], [], []>} : vector<2x64xbf16>, vector<64x256xbf16>, vector<2x256xf32> -> vector<2x256xf32>
    %301 = arith.addf %296, %300 : vector<2x256xf32>
    %c3_203 = arith.constant 3 : index
    %c0_204 = arith.constant 0 : index
    %c0_205 = arith.constant 0 : index
    %302 = vector.load %arg19[%c3_203, %c0_204, %c0_205] : memref<4x2x64xf32, #tpu.memory_space<vmem>>, vector<1x2x64xf32>
    %303 = vector.shape_cast %302 : vector<1x2x64xf32> to vector<2x64xf32>
    %304 = arith.truncf %303 : vector<2x64xf32> to vector<2x64xbf16>
    %cst_206 = arith.constant dense<0.000000e+00> : vector<2x256xf32>
    %305 = tpu.matmul %304, %282, %cst_206 {dimension_numbers = #tpu.dot_dimension_numbers<[1], [0], [0], [1], [0, 0, 1, 1], [], []>} : vector<2x64xbf16>, vector<64x256xbf16>, vector<2x256xf32> -> vector<2x256xf32>
    %306 = arith.addf %301, %305 : vector<2x256xf32>
    %307 = vector.extract_strided_slice %306 {offsets = [0, 0], sizes = [1, 128], strides = [1, 1]} : vector<2x256xf32> to vector<1x128xf32>
    %308 = arith.addf %285, %307 : vector<1x128xf32>
    %309 = vector.extract_strided_slice %306 {offsets = [1, 128], sizes = [1, 128], strides = [1, 1]} : vector<2x256xf32> to vector<1x128xf32>
    %310 = arith.addf %308, %309 : vector<1x128xf32>
    %cst_207 = arith.constant 0.00999999977 : f32
    %311 = vector.broadcast %cst_207 : f32 to vector<1x128xf32>
    %312 = arith.mulf %311, %310 : vector<1x128xf32>
    %313 = arith.maximumf %310, %312 : vector<1x128xf32>
    %c0_208 = arith.constant 0 : index
    %c0_209 = arith.constant 0 : index
    %c0_210 = arith.constant 0 : index
    %c0_211 = arith.constant 0 : index
    %314 = vector.load %arg12[%c0_208, %c0_209, %c0_210, %c0_211] : memref<1x1x1x128xf32, #tpu.memory_space<vmem>>, vector<1x1x1x128xf32>
    %315 = vector.shape_cast %314 : vector<1x1x1x128xf32> to vector<1x128xf32>
    %316 = vector.shape_cast %313 : vector<1x128xf32> to vector<1x1x1x128xf32>
    tpu.vector_store %arg12[%c0_208, %c0_209, %c0_210, %c0_211], %316 {strides = array<i32>} : memref<1x1x1x128xf32, #tpu.memory_space<vmem>>, vector<1x1x1x128xf32>,
    %317 = arith.addf %286, %313 : vector<1x128xf32>
    %318 = arith.mulf %313, %313 : vector<1x128xf32>
    %319 = arith.addf %287, %318 : vector<1x128xf32>
    %320 = vector.shape_cast %317 : vector<1x128xf32> to vector<1x1x128xf32>
    %cst_212 = arith.constant dense<0.000000e+00> : vector<1xf32>
    %321 = vector.multi_reduction <add>, %320, %cst_212 [1, 2] : vector<1x1x128xf32> to vector<1xf32>
    %322 = vector.shape_cast %321 : vector<1xf32> to vector<1x1x1xf32>
    %323 = vector.extract %322[0, 0, 0] : f32 from vector<1x1x1xf32>
    %cst_213 = arith.constant 7.812500e-03 : f32
    %324 = arith.mulf %323, %cst_213 : f32
    %325 = vector.shape_cast %319 : vector<1x128xf32> to vector<1x1x128xf32>
    %cst_214 = arith.constant dense<0.000000e+00> : vector<1xf32>
    %326 = vector.multi_reduction <add>, %325, %cst_214 [1, 2] : vector<1x1x128xf32> to vector<1xf32>
    %327 = vector.shape_cast %326 : vector<1xf32> to vector<1x1x1xf32>
    %328 = vector.extract %327[0, 0, 0] : f32 from vector<1x1x1xf32>
    %cst_215 = arith.constant 7.812500e-03 : f32
    %329 = arith.mulf %328, %cst_215 : f32
    %330 = arith.mulf %324, %324 : f32
    %331 = arith.subf %329, %330 : f32
    %cst_216 = arith.constant 9.99999974E-6 : f32
    %332 = arith.addf %331, %cst_216 : f32
    %333 = math.rsqrt %332 : f32
    %c0_217 = arith.constant 0 : index
    %c0_218 = arith.constant 0 : index
    %c0_219 = arith.constant 0 : index
    %c0_220 = arith.constant 0 : index
    %334 = vector.load %arg12[%c0_217, %c0_218, %c0_219, %c0_220] : memref<1x1x1x128xf32, #tpu.memory_space<vmem>>, vector<1x1x1x128xf32>
    %335 = vector.shape_cast %334 : vector<1x1x1x128xf32> to vector<1x1x128xf32>
    %336 = vector.broadcast %324 : f32 to vector<1x1x128xf32>
    %337 = arith.subf %335, %336 : vector<1x1x128xf32>
    %338 = vector.broadcast %333 : f32 to vector<1x1x128xf32>
    %339 = arith.mulf %337, %338 : vector<1x1x128xf32>
    %c0_221 = arith.constant 0 : index
    %c0_222 = arith.constant 0 : index
    %c0_223 = arith.constant 0 : index
    %c0_224 = arith.constant 0 : index
    %340 = vector.load %arg12[%c0_221, %c0_222, %c0_223, %c0_224] : memref<1x1x1x128xf32, #tpu.memory_space<vmem>>, vector<1x1x1x128xf32>
    %341 = vector.shape_cast %340 : vector<1x1x1x128xf32> to vector<1x1x128xf32>
    %342 = vector.shape_cast %339 : vector<1x1x128xf32> to vector<1x1x1x128xf32>
    tpu.vector_store %arg12[%c0_221, %c0_222, %c0_223, %c0_224], %342 {strides = array<i32>} : memref<1x1x1x128xf32, #tpu.memory_space<vmem>>, vector<1x1x1x128xf32>,
    return
  }
  func.func @transform_0(%arg0: i32) -> (i32, i32, i32, i32) {
    %c0_i32 = arith.constant 0 : i32
    %c0_i32_0 = arith.constant 0 : i32
    %c0_i32_1 = arith.constant 0 : i32
    %c0_i32_2 = arith.constant 0 : i32
    return %arg0, %c0_i32, %c0_i32_0, %c0_i32_1 : i32, i32, i32, i32
  }
  func.func @transform_1(%arg0: i32) -> (i32, i32, i32) {
    %c0_i32 = arith.constant 0 : i32
    %c0_i32_0 = arith.constant 0 : i32
    %c0_i32_1 = arith.constant 0 : i32
    %c0_i32_2 = arith.constant 0 : i32
    return %c0_i32, %c0_i32_0, %c0_i32_1 : i32, i32, i32
  }
  func.func @transform_2(%arg0: i32) -> (i32, i32) {
    %c0_i32 = arith.constant 0 : i32
    %c0_i32_0 = arith.constant 0 : i32
    %c0_i32_1 = arith.constant 0 : i32
    return %c0_i32, %c0_i32_0 : i32, i32
  }
  func.func @transform_3(%arg0: i32) -> (i32, i32, i32) {
    %c0_i32 = arith.constant 0 : i32
    %c0_i32_0 = arith.constant 0 : i32
    %c0_i32_1 = arith.constant 0 : i32
    %c0_i32_2 = arith.constant 0 : i32
    return %c0_i32, %c0_i32_0, %c0_i32_1 : i32, i32, i32
  }
  func.func @transform_4(%arg0: i32) -> (i32, i32) {
    %c0_i32 = arith.constant 0 : i32
    %c0_i32_0 = arith.constant 0 : i32
    %c0_i32_1 = arith.constant 0 : i32
    return %c0_i32, %c0_i32_0 : i32, i32
  }
  func.func @transform_5(%arg0: i32) -> (i32, i32, i32) {
    %c0_i32 = arith.constant 0 : i32
    %c0_i32_0 = arith.constant 0 : i32
    %c0_i32_1 = arith.constant 0 : i32
    %c0_i32_2 = arith.constant 0 : i32
    return %c0_i32, %c0_i32_0, %c0_i32_1 : i32, i32, i32
  }
  func.func @transform_6(%arg0: i32) -> (i32, i32) {
    %c0_i32 = arith.constant 0 : i32
    %c0_i32_0 = arith.constant 0 : i32
    %c0_i32_1 = arith.constant 0 : i32
    return %c0_i32, %c0_i32_0 : i32, i32
  }
  func.func @transform_7(%arg0: i32) -> (i32, i32, i32) {
    %c0_i32 = arith.constant 0 : i32
    %c0_i32_0 = arith.constant 0 : i32
    %c0_i32_1 = arith.constant 0 : i32
    %c0_i32_2 = arith.constant 0 : i32
    return %c0_i32, %c0_i32_0, %c0_i32_1 : i32, i32, i32
  }
  func.func @transform_8(%arg0: i32) -> (i32, i32) {
    %c0_i32 = arith.constant 0 : i32
    %c0_i32_0 = arith.constant 0 : i32
    %c0_i32_1 = arith.constant 0 : i32
    return %c0_i32, %c0_i32_0 : i32, i32
  }
  func.func @transform_9(%arg0: i32) -> (i32, i32, i32) {
    %c0_i32 = arith.constant 0 : i32
    %c0_i32_0 = arith.constant 0 : i32
    %c0_i32_1 = arith.constant 0 : i32
    %c0_i32_2 = arith.constant 0 : i32
    return %c0_i32, %c0_i32_0, %c0_i32_1 : i32, i32, i32
  }
  func.func @transform_10(%arg0: i32) -> (i32, i32) {
    %c0_i32 = arith.constant 0 : i32
    %c0_i32_0 = arith.constant 0 : i32
    %c0_i32_1 = arith.constant 0 : i32
    return %c0_i32, %c0_i32_0 : i32, i32
  }
  func.func @transform_11(%arg0: i32) -> (i32, i32, i32, i32) {
    %c0_i32 = arith.constant 0 : i32
    %c0_i32_0 = arith.constant 0 : i32
    %c0_i32_1 = arith.constant 0 : i32
    %c0_i32_2 = arith.constant 0 : i32
    return %arg0, %c0_i32, %c0_i32_0, %c0_i32_1 : i32, i32, i32, i32
  }
}

</mosaic_0001>

<bundles_post_ra>
// kernel: cnn_encoder_forward.1
= control target key start
LH: loop header
LB: loop body
LE: loop exit
PB: predicated region body
PF: predicated region fallthrough
CT: control target
= control target key end

     0   :  { %s7903_s0 = inlined_call_operand.vmem [shape: bf16[2,62,46,27], index: 0, kind: input, shape index: {}]   ;;  %s7904_s1 = inlined_call_operand.vmem [shape: bf16[1,27,8], index: 1, kind: input, shape index: {}]   ;;  %s7905_s2 = inlined_call_operand.vmem [shape: f32[1,8], index: 2, kind: input, shape index: {}]   ;;  %s7906_s3 = inlined_call_operand.vmem [shape: bf16[3,8,48], index: 3, kind: input, shape index: {}]   ;;  %s7907_s4 = inlined_call_operand.vmem [shape: f32[1,16], index: 4, kind: input, shape index: {}]   ;;  %s7908_s5 = inlined_call_operand.vmem [shape: bf16[3,16,96], index: 5, kind: input, shape index: {}]   ;;  %s7909_s6 = inlined_call_operand.vmem [shape: f32[1,32], index: 6, kind: input, shape index: {}]   ;;  %s7910_s7 = inlined_call_operand.vmem [shape: bf16[3,32,192], index: 7, kind: input, shape index: {}]   ;;  %s7911_s8 = inlined_call_operand.vmem [shape: f32[1,64], index: 8, kind: input, shape index: {}]   ;;  %s7912_s9 = inlined_call_operand.vmem [shape: bf16[4,64,256], index: 9, kind: input, shape index: {}]   ;;  %s7913_s10 = inlined_call_operand.vmem [shape: f32[1,128], index: 10, kind: input, shape index: {}]   ;;  %s7914_s11 = inlined_call_operand.hbm [shape: f32[2,1,1,128], index: 11, kind: output, shape index: {}]  }
   0x1   :  { %8052 = sst [smem:[#allocation152_spill]] %s7903_s0 }
   0x2   :  { %16 = vsyncpa [#allocation10], 0 }
   0x3   :  { %18 = vsyncpa [#allocation10 + $0x1], 0  ;;  %s5494_s17 = smov 0   ;;  %s5496_s18 = smov 0  }
   0x4   :  { %s5498_s19 = smov 0   ;;  %s5500_s20 = smov 0  }
   0x5 LB: > { %s5515_s21 = sadd.s32 4294967295, %s5325_s20   ;;  %s4371_s22 = sadd.s32 4294967294, %s5325_s20   ;;  %s5325_s20 = sphi %s5500_s20, %s8578_s20   ;;  %s5321_s19 = sphi %s5498_s19, %s8577_s19   ;;  %s5317_s18 = sphi %s5496_s18, %s8576_s18   ;;  %s5313_s17 = sphi %s5494_s17, %s8575_s17  }
   0x6   : > { %s5519_s23 = sadd.s32 1, %s5325_s20   ;;  %s267_s24 = sadd.s32 1, %s5321_s19 }
   0x7   : > { %s264_s25 = ssub.s32 %s5325_s20, %s5519_s23  ;;  %p277_p0 = scmp.ne.s32.totalorder %s5321_s19, %s5317_s18 }
   0x8   : > { %p265_p1 = scmp.eq.s32.totalorder %s264_s25, 0  ;;  %p278_p2 = scmp.eq.s32.totalorder %s5515_s21, 1 }
   0x9   : > { %p283_p3 = scmp.ne.s32.totalorder %s5317_s18, %s5313_s17  ;;  %p284_p4 = scmp.eq.s32.totalorder %s4371_s22, 1 }
   0xa   : > { %s5530_s26 = scalar_select %p265_p1, %s5321_s19, %s267_s24  }
   0xb   : > { %p5532_p5 = por %p278_p2, %p277_p0  ;;  %p5536_p6 = por %p284_p4, %p283_p3 }
   0xc   : > { %8053 = sst [smem:[#allocation12_spill]] %s5530_s26  ;;  %p4374_p7 = scmp.ge.s32.totalorder %s5325_s20, 1 }
   0xd   : > { %p340_p8 = scmp.lt.s32.totalorder %s5325_s20, 3 }
   0xf   : > { %p341_p9 = pnand %p4374_p7, %p340_p8 }
  0x11   : > { %344 = sbr.rel (%p341_p9) target bundleno = 3562 (0xdea), region = 64 }
  0x18   : > { %p379_p10 = scmp.lt.s32.totalorder %s5515_s21, 1  ;;  %v5547_v0 = vld [vmem:[%s7904_s1] sm:$0xf]  ;;  %v5552_v1 = vld [vmem:[%s7904_s1 + $0x4] sm:$0xf]  ;;  %s8056_s0 = sld [smem:[#allocation152_spill]] }
  0x19   : > { %v5557_v2 = vld [vmem:[%s7904_s1 + $0x8] sm:$0xf]  ;;  %v5562_v3 = vld [vmem:[%s7904_s1 + $0xc] sm:$0x3]  ;;  %v5568_v4 = vld [vmem:[%s7905_s2] ss:$0 sm:$0xff] }
  0x1a   : > { %s380_s25 = scalar_select %p379_p10, %s5515_s21, 1  ;;  %v5579_v5 = vmov 0.0   ;;  %v5581_v6 = vmov 0.0   ;;  %v5583_v7 = vmov 0.0   ;;  %v5585_v8 = vmov 0.0  }
  0x1b   : > { %s8057_s15 = sand.u32 1, %s5317_s18   ;;  %v5587_v9 = vmov 0.0   ;;  %v5589_v10 = vmov 0.0   ;;  %v5591_v11 = vmov 0.0   ;;  %v5593_v12 = vmov 0.0   ;;  %s5603_s29 = smov 0  }
  0x1c   : > { %s4821_s12 = smul.u32 1488, %s380_s25  ;;  %s5577_s16 = scalar_lea.vmem [#allocation9], %s8057_s15  ;;  %v5595_v13 = vmov 0.0   ;;  %v5597_v14 = vmov 0.0   ;;  %v5599_v15 = vmov 0.0   ;;  %v5601_v16 = vmov 0.0  }
  0x1e   : > { %s5573_s26 = scalar_lea.vmem %s8056_s0, %s4821_s12 }
  0x1f LB: >> { %v4383_v17 = vcombine.low %v5547_v0, %v5552_v1  ;;  %v4384_v18 = vcombine.low %v5557_v2, %v5562_v3  ;;  %vm461_vm0 = vcmask 1044480   ;;  %v5419_v19 = vmov 0.0   ;;  %s4565_s22 = smul.u32 48, %s5377_s29  ;;  %s402_s29 = sadd.s32 1, %s5377_s29   ;;  %s5377_s29 = sphi %s5603_s29, %s402_s29   ;;  %v5373_v16 = vphi %v5601_v16, %v8075_v16   ;;  %v5369_v15 = vphi %v5599_v15, %v8074_v15   ;;  %v5365_v14 = vphi %v5597_v14, %v8073_v14   ;;  %v5361_v13 = vphi %v5595_v13, %v8072_v13   ;;  %v5357_v12 = vphi %v5593_v12, %v8071_v12   ;;  %v5353_v11 = vphi %v5591_v11, %v8070_v11   ;;  %v5349_v10 = vphi %v5589_v10, %v8069_v10   ;;  %v5345_v9 = vphi %v5587_v9, %v8068_v9   ;;  %v5341_v8 = vphi %v5585_v8, %v8067_v8   ;;  %v5337_v7 = vphi %v5583_v7, %v8066_v7   ;;  %v5333_v6 = vphi %v5581_v6, %v8065_v6   ;;  %v5329_v5 = vphi %v5579_v5, %v8064_v5  }
  0x20   : >> { %4619 = vmatprep.subr.bf16.mxu0 %v5419_v19  ;;  %4635 = vmatprep.subr.bf16.mxu1 %v5419_v19  ;;  %vm462_vm1 = vcmask 1045504   ;;  %v5420_v20 = vmov 65535   ;;  %vm5421_vm2 = vmmov 0   ;;  %vm451_vm3 = vcmask 220160   ;;  %p5710_p11 = scmp.ge.s32.totalorder %s402_s29, 31  }
  0x21   : >> { %4620 = vmatpush3.bf16.msra.mxu0 %v4383_v17  ;;  %4636 = vmatpush3.bf16.msra.mxu1 %v4383_v17  ;;  %v463_v21 = vsel %vm461_vm0, 4294967295, %v5420_v20  ;;  %s418_s24 = scalar_lea.vmem %s5573_s26, %s4565_s22  ;;  %vm660_vm4 = vcmask 64512   ;;  %s5665_s25 = scalar_lea.vmem [#allocation2], %s4565_s22  ;;  %vm666_vm5 = vcmask 62464   ;;  %vm1408_vm6 = vcmask (%p5710_p11), 63488  }
  0x22   : >> { %4621 = vmatprep.subr.bf16.mxu0 %v5419_v19  ;;  %4637 = vmatprep.subr.bf16.mxu1 %v5419_v19  ;;  %v464_v22 = vsel %vm462_vm1, %v463_v21, 0  ;;  %v5089_v24 = vld [vmem:[%s418_s24] sm:$0xff]   ;;  %v5090_v25 = vld [vmem:[%s418_s24 + $0x18] sm:$0xff]   ;;  %v5091_v26 = vld [vmem:[%s418_s24 + $0x8] sm:$0xff]   ;;  %s7200_s15 = smov (%p5710_p11), 0  }
  0x23   : >> { %v466_v23 = vand.u32 %v4384_v18, %v464_v22  ;;  %4623 = vmatprep.mubr.msk.bf16.mxu0 %vm5421_vm2, %v5419_v19  ;;  %4639 = vmatprep.mubr.msk.bf16.mxu1 %vm5421_vm2, %v5419_v19  ;;  %v5092_v27 = vld [vmem:[%s418_s24 + $0x20] sm:$0xff]   ;;  %v5093_v28 = vld [vmem:[%s418_s24 + $0x10] sm:$0x7f]   ;;  %v5094_v29 = vld [vmem:[%s418_s24 + $0x28] sm:$0x7f]  }
  0x25   : >> { %4622 = vmatpush3.bf16.msra.mxu0 %v466_v23  ;;  %4638 = vmatpush3.bf16.msra.mxu1 %v466_v23 }
  0x28   : >> { %4624 = vmatmul.mubr.msk.bf16.vlgmr.msra.gmra.mrb[0].mxu0 %vm451_vm3, %v5089_v24  ;;  %4640 = vmatmul.mubr.msk.bf16.vlgmr.msra.gmra.mrb[0].mxu1 %vm451_vm3, %v5090_v25 }
  0x29   : >> { %4627 = vmatprep.mubr.msk.bf16.mxu0 %vm5421_vm2, %v5419_v19  ;;  %4643 = vmatprep.mubr.msk.bf16.mxu1 %vm5421_vm2, %v5419_v19 }
  0x30   : >> { %4628 = vmatmul.mubr.msk.bf16.gmra.mrb[4].mxu0 %vm451_vm3, %v5091_v26  ;;  %4644 = vmatmul.mubr.msk.bf16.gmra.mrb[4].mxu1 %vm451_vm3, %v5092_v27 }
  0x31   : >> { %4631 = vmatprep.mubr.msk.bf16.mxu0 %vm5421_vm2, %v5419_v19  ;;  %4647 = vmatprep.mubr.msk.bf16.mxu1 %vm5421_vm2, %v5419_v19 }
  0x38   : >> { %4632 = vmatmul.mubr.msk.bf16.gmra.mrb[8].mxu0 %vm451_vm3, %v5093_v28  ;;  %4648 = vmatmul.mubr.msk.bf16.gmra.mrb[8].mxu1 %vm451_vm3, %v5094_v29 }
  0xfb   : >> { %v502_v30 = vpop.f32.mrb[0].mxu0  ;;  %v611_v31 = vpop.f32.mrb[0].mxu1 }
  0xfc   : >> { %v525_v32 = vadd.f32 %v5568_v4, %v502_v30  ;;  %v634_v33 = vadd.f32 %v5568_v4, %v611_v31  ;;  %v4625_v34 = vpop.f32.mrb[1].mxu0  ;;  %v4641_v35 = vpop.f32.mrb[1].mxu1 }
  0xfd   : >> { %v505_v36 = vpop.f32.mrb[2].mxu0  ;;  %v614_v37 = vpop.f32.mrb[2].mxu1 }
  0xfe   : >> { %v531_v38 = vmul.f32 0.01, %v525_v32  ;;  %v640_v39 = vmul.f32 0.01, %v634_v33  ;;  %v526_v40 = vadd.f32 %v5568_v4, %v505_v36  ;;  %v635_v41 = vadd.f32 %v5568_v4, %v614_v37  ;;  %v4626_v42 = vpop.f32.mrb[3].mxu0  ;;  %v4642_v43 = vpop.f32.mrb[3].mxu1 }
 0x100   : >> { %v537_v44 = vmax.f32 %v525_v32, %v531_v38  ;;  %v646_v45 = vmax.f32 %v634_v33, %v640_v39  ;;  %v532_v46 = vmul.f32 0.01, %v526_v40  ;;  %v641_v47 = vmul.f32 0.01, %v635_v41 }
 0x102   : >> { %v680_v48 = vmul.f32 %v537_v44, %v537_v44  ;;  %v652_v49 = vmax.f32 %v537_v44, %v646_v45  ;;  %v668_v50 = vadd.f32 %v646_v45, %v537_v44  ;;  %v686_v51 = vmul.f32 %v646_v45, %v646_v45 }
 0x103   : >> { %v538_v52 = vmax.f32 %v526_v40, %v532_v46  ;;  %v647_v53 = vmax.f32 %v635_v41, %v641_v47  ;;  %v510_v54 = vpop.f32.mrb[4].mxu0  ;;  %v619_v55 = vpop.f32.mrb[4].mxu1 }
 0x104   : >> { %661 = vst.msk [vmem:[%s5665_s25] sm:$0xff] %vm660_vm4, %v652_v49  ;;  %v5670_v16 = vadd.f32 %v5373_v16, %v668_v50   ;;  %v692_v57 = vadd.f32 %v686_v51, %v680_v48  ;;  %v527_v58 = vadd.f32 %v5568_v4, %v510_v54  ;;  %v636_v59 = vadd.f32 %v5568_v4, %v619_v55  ;;  %v4629_v60 = vpop.f32.mrb[5].mxu0  ;;  %v4645_v61 = vpop.f32.mrb[5].mxu1 }
 0x105   : >> { %v681_v62 = vmul.f32 %v538_v52, %v538_v52  ;;  %v653_v63 = vmax.f32 %v538_v52, %v647_v53  ;;  %v669_v17 = vadd.f32 %v647_v53, %v538_v52  ;;  %v687_v18 = vmul.f32 %v647_v53, %v647_v53  ;;  %v513_v19 = vpop.f32.mrb[6].mxu0  ;;  %v622_v20 = vpop.f32.mrb[6].mxu1 }
 0x106   : >> { %v8058_v56 = vmov %v5670_v16  ;;  %v5675_v10 = vadd.f32 %v5349_v10, %v692_v57   ;;  %v533_v22 = vmul.f32 0.01, %v527_v58  ;;  %v642_v23 = vmul.f32 0.01, %v636_v59  ;;  %v4630_v24 = vpop.f32.mrb[7].mxu0  ;;  %v4646_v25 = vpop.f32.mrb[7].mxu1 }
 0x107   : >> { %v528_v16 = vadd.f32 %v5568_v4, %v513_v19  ;;  %662 = vst.msk [vmem:[%s5665_s25 + $0x8] sm:$0xff] %vm660_vm4, %v653_v63  ;;  %v5681_v15 = vadd.f32 %v5369_v15, %v669_v17   ;;  %v693_v27 = vadd.f32 %v687_v18, %v681_v62  ;;  %v637_v28 = vadd.f32 %v5568_v4, %v622_v20 }
 0x108   : >> { %v8059_v21 = vmov %v5675_v10  ;;  %v539_v29 = vmax.f32 %v527_v58, %v533_v22  ;;  %v648_v30 = vmax.f32 %v636_v59, %v642_v23 }
 0x109   : >> { %v8060_v26 = vmov %v5681_v15  ;;  %v534_v31 = vmul.f32 0.01, %v528_v16  ;;  %v5685_v9 = vadd.f32 %v5345_v9, %v693_v27   ;;  %v643_v10 = vmul.f32 0.01, %v637_v28 }
 0x10a   : >> { %v682_v33 = vmul.f32 %v539_v29, %v539_v29  ;;  %v654_v34 = vmax.f32 %v539_v29, %v648_v30  ;;  %v670_v35 = vadd.f32 %v648_v30, %v539_v29  ;;  %v688_v36 = vmul.f32 %v648_v30, %v648_v30 }
 0x10b   : >> { %v8061_v32 = vmov %v5685_v9  ;;  %v540_v37 = vmax.f32 %v528_v16, %v534_v31  ;;  %v649_v38 = vmax.f32 %v637_v28, %v643_v10  ;;  %v518_v39 = vpop.f32.mrb[8].mxu0  ;;  %v627_v40 = vpop.f32.mrb[8].mxu1  ;;  %v8069_v10 = vmov %v8059_v21 }
 0x10c   : >> { %663 = vst.msk [vmem:[%s5665_s25 + $0x10] sm:$0xff] %vm660_vm4, %v654_v34  ;;  %v5690_v14 = vadd.f32 %v5365_v14, %v670_v35   ;;  %v694_v15 = vadd.f32 %v688_v36, %v682_v33  ;;  %v529_v42 = vadd.f32 %v5568_v4, %v518_v39  ;;  %v638_v9 = vadd.f32 %v5568_v4, %v627_v40  ;;  %v4633_v43 = vpop.f32.mrb[9].mxu0  ;;  %v4649_v44 = vpop.f32.mrb[9].mxu1 }
 0x10d   : >> { %v683_v45 = vmul.f32 %v540_v37, %v540_v37  ;;  %v655_v46 = vmax.f32 %v540_v37, %v649_v38  ;;  %v671_v47 = vadd.f32 %v649_v38, %v540_v37  ;;  %v689_v48 = vmul.f32 %v649_v38, %v649_v38  ;;  %v521_v49 = vpop.f32.mrb[10].mxu0  ;;  %v630_v50 = vpop.f32.mrb[10].mxu1 }
 0x10e   : >> { %v8062_v41 = vmov %v5690_v14  ;;  %v700_v51 = vadd.f32 %v5341_v8, %v694_v15   ;;  %v535_v52 = vmul.f32 0.01, %v529_v42  ;;  %v644_v53 = vmul.f32 0.01, %v638_v9  ;;  %v4634_v54 = vpop.f32.mrb[11].mxu0  ;;  %v4650_v55 = vpop.f32.mrb[11].mxu1 }
 0x10f   : >> { %v530_v14 = vadd.f32 %v5568_v4, %v521_v49  ;;  %664 = vst.msk [vmem:[%s5665_s25 + $0x18] sm:$0xff] %vm660_vm4, %v655_v46  ;;  %v677_v57 = vadd.f32 %v5361_v13, %v671_v47   ;;  %v695_v58 = vadd.f32 %v689_v48, %v683_v45  ;;  %v639_v59 = vadd.f32 %v5568_v4, %v630_v50  ;;  %v5777_v54 = vld [vmem:[%s7906_s3 + $0x8] sm:$0xf] (%p5710_p11)  ;;  %v5782_v55 = vld [vmem:[%s7907_s4] ss:$0 sm:$0xff] (%p5710_p11) }
 0x110   : >> { %v541_v60 = vmax.f32 %v529_v42, %v535_v52  ;;  %v650_v61 = vmax.f32 %v638_v9, %v644_v53  ;;  %v8068_v9 = vmov %v8061_v32  ;;  %v8074_v15 = vmov %v8060_v26  ;;  %v5767_v53 = vld [vmem:[%s7906_s3] sm:$0xf] (%p5710_p11)  ;;  %8078 = vst [vmem:[#allocation15_spill] sm:$0xff] (%p5710_p11), %v5777_v54  ;;  %8079 = vst [vmem:[#allocation16_spill] sm:$0xff] (%p5710_p11), %v5782_v55 }
 0x111   : >> { %v536_v62 = vmul.f32 0.01, %v530_v14  ;;  %v701_v63 = vadd.f32 %v5337_v7, %v695_v58   ;;  %v645_v8 = vmul.f32 0.01, %v639_v59  ;;  %v705_v33 = vsel (%p5710_p11), %vm660_vm4, %v8058_v56, 0.0  ;;  %8076 = vst [vmem:[#allocation13_spill] sm:$0xff] (%p5710_p11), %v5767_v53 }
 0x112   : >> { %v684_v17 = vmul.f32 %v541_v60, %v541_v60  ;;  %v656_v18 = vmax.f32 %v541_v60, %v650_v61  ;;  %v672_v19 = vadd.f32 %v650_v61, %v541_v60  ;;  %v690_v20 = vmul.f32 %v650_v61, %v650_v61 }
 0x113   : >> { %v542_v22 = vmax.f32 %v530_v14, %v536_v62  ;;  %v651_v23 = vmax.f32 %v639_v59, %v645_v8  ;;  %v8067_v8 = vmov %v700_v51  ;;  %v8073_v14 = vmov %v8062_v41 }
 0x114   : >> { %665 = vst.msk [vmem:[%s5665_s25 + $0x20] sm:$0xff] %vm660_vm4, %v656_v18  ;;  %v678_v24 = vadd.f32 %v5357_v12, %v672_v19   ;;  %v696_v13 = vadd.f32 %v690_v20, %v684_v17  ;;  %v706_v34 = vsel (%p5710_p11), %vm660_vm4, %v8060_v26, 0.0  ;;  %v708_v35 = vsel (%p5710_p11), %vm660_vm4, %v8062_v41, 0.0  ;;  %v5772_v14 = vld [vmem:[%s7906_s3 + $0x4] sm:$0xf] (%p5710_p11) }
 0x115   : >> { %v685_v16 = vmul.f32 %v542_v22, %v542_v22  ;;  %v657_v25 = vmax.f32 %v542_v22, %v651_v23  ;;  %v673_v27 = vadd.f32 %v651_v23, %v542_v22  ;;  %v691_v28 = vmul.f32 %v651_v23, %v651_v23  ;;  %401 = sbr.rel (!%p5710_p11) target bundleno = 31 (0x1f), region = 404  ;;  %8077 = vst [vmem:[#allocation14_spill] sm:$0xff] (%p5710_p11), %v5772_v14 }
 0x116   : >> { %v702_v29 = vadd.f32 %v5333_v6, %v696_v13   ;;  %v8071_v12 = vmov %v678_v24  ;;  %v8072_v13 = vmov %v677_v57  ;;  %v707_v36 = vadd.f32 (%p5710_p11), %v706_v34, %v705_v33 }
 0x117   : >> { %667 = vst.msk [vmem:[%s5665_s25 + $0x28] sm:$0x3f] %vm666_vm5, %v657_v25  ;;  %v679_v30 = vadd.f32 %v5353_v11, %v673_v27   ;;  %v697_v7 = vadd.f32 %v691_v28, %v685_v16  ;;  %v8075_v16 = vmov %v8058_v56  ;;  %v727_v37 = vsel (%p5710_p11), %vm660_vm4, %v8059_v21, 0.0 }
 0x118   : >> { %v8065_v6 = vmov %v702_v29  ;;  %v710_v38 = vsel (%p5710_p11), %vm660_vm4, %v677_v57, 0.0  ;;  %v728_v39 = vsel (%p5710_p11), %vm660_vm4, %v8061_v32, 0.0  ;;  %v730_v40 = vsel (%p5710_p11), %vm660_vm4, %v700_v51, 0.0 }
 0x119   : >> { %v703_v31 = vadd.f32 %v5329_v5, %v697_v7   ;;  %v8066_v7 = vmov %v701_v63  ;;  %v8070_v11 = vmov %v679_v30  ;;  %v709_v0 = vadd.f32 (%p5710_p11), %v708_v35, %v707_v36 }
 0x11a   : > { %v729_v1 = vadd.f32 (%p5710_p11), %v728_v39, %v727_v37  ;;  %v712_v2 = vsel (%p5710_p11), %vm660_vm4, %v678_v24, 0.0  ;;  %v732_v3 = vsel (%p5710_p11), %vm660_vm4, %v701_v63, 0.0  ;;  %v715_v6 = vsel (%p5710_p11), %vm666_vm5, %v679_v30, 0.0 }
 0x11b   : >> { %v8064_v5 = vmov %v703_v31  ;;  %v711_v4 = vadd.f32 (%p5710_p11), %v710_v38, %v709_v0  ;;  %v734_v11 = vsel (%p5710_p11), %vm660_vm4, %v702_v29, 0.0  ;;  %v736_v21 = vsel (%p5710_p11), %vm666_vm5, %v703_v31, 0.0 }
 0x11c   : > { %v731_v5 = vadd.f32 %v730_v40, %v729_v1 }
 0x11d   : > { %v713_v12 = vadd.f32 %v712_v2, %v711_v4 }
 0x11e   : > { %v733_v56 = vadd.f32 %v732_v3, %v731_v5  ;;  %v5788_v59 = vld [vmem:[#allocation2] ss:$2 sm:$0xff]  ;;  %v5790_v60 = vld [vmem:[#allocation2 + $0x10] ss:$2 sm:$0xff]  ;;  %v5796_v63 = vld [vmem:[#allocation2 + $0x1] ss:$2 sm:$0xff] }
 0x11f   : > { %v716_v26 = vadd.f32 %v715_v6, %v713_v12  ;;  %v5792_v61 = vld [vmem:[#allocation2 + $0x20] ss:$2 sm:$0x7f]  ;;  %v5794_v62 = vld [vmem:[#allocation2 + $0x30] ss:$2 sm:$0xff] }
 0x120   : > { %v735_v32 = vadd.f32 %v734_v11, %v733_v56  ;;  %v5798_v8 = vld [vmem:[#allocation2 + $0x11] ss:$2 sm:$0xff]  ;;  %v5800_v17 = vld [vmem:[#allocation2 + $0x21] ss:$2 sm:$0x7f] }
 0x121   : > { %717 = vadd.xlane.f32.xlu0 %v716_v26  ;;  %v5802_v18 = vld [vmem:[#allocation2 + $0x31] ss:$2 sm:$0xff]  ;;  %v5804_v19 = vld [vmem:[#allocation2 + $0x40] ss:$2 sm:$0xff]  ;;  %v5810_v23 = vld [vmem:[#allocation2 + $0x70] ss:$2 sm:$0xff] }
 0x122   : > { %v737_v10 = vadd.f32 %v736_v21, %v735_v32  ;;  %8080 = vst [vmem:[#allocation17_spill] sm:$0xff] %v5802_v18  ;;  %8081 = vst [vmem:[#allocation18_spill] sm:$0xff] %v5804_v19  ;;  %v5806_v20 = vld [vmem:[#allocation2 + $0x50] ss:$2 sm:$0x7f] }
 0x123   : > { %8082 = vst [vmem:[#allocation19_spill] sm:$0xff] %v5806_v20  ;;  %v5808_v22 = vld [vmem:[#allocation2 + $0x60] ss:$2 sm:$0xff]  ;;  %8084 = vst [vmem:[#allocation21_spill] sm:$0xff] %v5810_v23  ;;  %v5812_v24 = vld [vmem:[#allocation2 + $0x41] ss:$2 sm:$0xff] }
 0x124   : > { %8083 = vst [vmem:[#allocation20_spill] sm:$0xff] %v5808_v22  ;;  %8085 = vst [vmem:[#allocation22_spill] sm:$0xff] %v5812_v24  ;;  %v5814_v13 = vld [vmem:[#allocation2 + $0x51] ss:$2 sm:$0x7f] }
 0x125   : > { %738 = vadd.xlane.f32.xlu0 %v737_v10  ;;  %8086 = vst [vmem:[#allocation23_spill] sm:$0xff] %v5814_v13  ;;  %v5816_v16 = vld [vmem:[#allocation2 + $0x61] ss:$2 sm:$0xff]  ;;  %v5818_v25 = vld [vmem:[#allocation2 + $0x71] ss:$2 sm:$0xff] }
 0x126   : > { %8087 = vst [vmem:[#allocation24_spill] sm:$0xff] %v5816_v16  ;;  %8088 = vst [vmem:[#allocation25_spill] sm:$0xff] %v5818_v25  ;;  %v5820_v27 = vld [vmem:[#allocation2 + $0x80] ss:$2 sm:$0x7f] }
 0x127   : > { %8089 = vst [vmem:[#allocation26_spill] sm:$0xff] %v5820_v27  ;;  %v5822_v28 = vld [vmem:[#allocation2 + $0x90] ss:$2 sm:$0xff]  ;;  %v5824_v29 = vld [vmem:[#allocation2 + $0xa0] ss:$2 sm:$0xff] }
 0x128   : > { %8090 = vst [vmem:[#allocation27_spill] sm:$0xff] %v5822_v28  ;;  %8091 = vst [vmem:[#allocation28_spill] sm:$0xff] %v5824_v29  ;;  %v5826_v30 = vld [vmem:[#allocation2 + $0xb0] ss:$2 sm:$0x7f] }
 0x129   : > { %8092 = vst [vmem:[#allocation29_spill] sm:$0xff] %v5826_v30  ;;  %v5828_v7 = vld [vmem:[#allocation2 + $0x81] ss:$2 sm:$0x7f]  ;;  %v5830_v31 = vld [vmem:[#allocation2 + $0x91] ss:$2 sm:$0xff] }
 0x12a   : > { %8093 = vst [vmem:[#allocation30_spill] sm:$0xff] %v5828_v7  ;;  %8094 = vst [vmem:[#allocation31_spill] sm:$0xff] %v5830_v31  ;;  %v5832_v33 = vld [vmem:[#allocation2 + $0xa1] ss:$2 sm:$0xff]  ;;  %v5836_v35 = vld [vmem:[#allocation2 + $0xc0] ss:$2 sm:$0xff] }
 0x12b   : > { %8095 = vst [vmem:[#allocation32_spill] sm:$0xff] %v5832_v33  ;;  %v5834_v34 = vld [vmem:[#allocation2 + $0xb1] ss:$2 sm:$0x7f]  ;;  %8097 = vst [vmem:[#allocation34_spill] sm:$0xff] %v5836_v35 }
 0x12c   : > { %8096 = vst [vmem:[#allocation33_spill] sm:$0xff] %v5834_v34  ;;  %v5838_v36 = vld [vmem:[#allocation2 + $0xd0] ss:$2 sm:$0xff]  ;;  %v5840_v37 = vld [vmem:[#allocation2 + $0xe0] ss:$2 sm:$0x7f] }
 0x12d   : > { %8098 = vst [vmem:[#allocation35_spill] sm:$0xff] %v5838_v36  ;;  %8099 = vst [vmem:[#allocation36_spill] sm:$0xff] %v5840_v37  ;;  %v5842_v38 = vld [vmem:[#allocation2 + $0xf0] ss:$2 sm:$0xff]  ;;  %v5844_v39 = vld [vmem:[#allocation2 + $0xc1] ss:$2 sm:$0xff] }
 0x12e   : > { %8100 = vst [vmem:[#allocation37_spill] sm:$0xff] %v5842_v38  ;;  %8101 = vst [vmem:[#allocation38_spill] sm:$0xff] %v5844_v39  ;;  %v5846_v40 = vld [vmem:[#allocation2 + $0xd1] ss:$2 sm:$0xff]  ;;  %v5852_v2 = vld [vmem:[#allocation2 + $0x100] ss:$2 sm:$0xff] }
 0x12f   : > { %8102 = vst [vmem:[#allocation39_spill] sm:$0xff] %v5846_v40  ;;  %v5848_v0 = vld [vmem:[#allocation2 + $0xe1] ss:$2 sm:$0x7f]  ;;  %v5850_v1 = vld [vmem:[#allocation2 + $0xf1] ss:$2 sm:$0xff] }
 0x130   : > { %8103 = vst [vmem:[#allocation40_spill] sm:$0xff] %v5848_v0  ;;  %8104 = vst [vmem:[#allocation41_spill] sm:$0xff] %v5850_v1  ;;  %v5854_v3 = vld [vmem:[#allocation2 + $0x110] ss:$2 sm:$0x7f] }
 0x131   : > { %8105 = vst [vmem:[#allocation42_spill] sm:$0xff] %v5852_v2  ;;  %8106 = vst [vmem:[#allocation43_spill] sm:$0xff] %v5854_v3  ;;  %v5856_v4 = vld [vmem:[#allocation2 + $0x120] ss:$2 sm:$0xff]  ;;  %v5858_v5 = vld [vmem:[#allocation2 + $0x130] ss:$2 sm:$0xff] }
 0x132   : > { %8107 = vst [vmem:[#allocation44_spill] sm:$0xff] %v5856_v4  ;;  %8108 = vst [vmem:[#allocation45_spill] sm:$0xff] %v5858_v5  ;;  %v5860_v6 = vld [vmem:[#allocation2 + $0x101] ss:$2 sm:$0xff]  ;;  %v5866_v56 = vld [vmem:[#allocation2 + $0x131] ss:$2 sm:$0xff] }
 0x133   : > { %8109 = vst [vmem:[#allocation46_spill] sm:$0xff] %v5860_v6  ;;  %v5862_v11 = vld [vmem:[#allocation2 + $0x111] ss:$2 sm:$0x7f]  ;;  %v5864_v12 = vld [vmem:[#allocation2 + $0x121] ss:$2 sm:$0xff] }
 0x134   : > { %8110 = vst [vmem:[#allocation47_spill] sm:$0xff] %v5862_v11  ;;  %8111 = vst [vmem:[#allocation48_spill] sm:$0xff] %v5864_v12  ;;  %v5868_v21 = vld [vmem:[#allocation2 + $0x140] ss:$2 sm:$0x7f] }
 0x135   : > { %8112 = vst [vmem:[#allocation49_spill] sm:$0xff] %v5866_v56  ;;  %8113 = vst [vmem:[#allocation50_spill] sm:$0xff] %v5868_v21  ;;  %v5870_v26 = vld [vmem:[#allocation2 + $0x150] ss:$2 sm:$0xff]  ;;  %v5872_v32 = vld [vmem:[#allocation2 + $0x160] ss:$2 sm:$0xff] }
 0x136   : > { %8114 = vst [vmem:[#allocation51_spill] sm:$0xff] %v5870_v26  ;;  %8115 = vst [vmem:[#allocation52_spill] sm:$0xff] %v5872_v32  ;;  %v5874_v10 = vld [vmem:[#allocation2 + $0x170] ss:$2 sm:$0x7f] }
 0x137   : > { %8116 = vst [vmem:[#allocation53_spill] sm:$0xff] %v5874_v10  ;;  %v5916_v55 = vld [vmem:[#allocation2 + $0x1c0] ss:$2 sm:$0xff]  ;;  %v5918_v54 = vld [vmem:[#allocation2 + $0x1d0] ss:$2 sm:$0x7f] }
 0x138   : > { %8129 = vst [vmem:[#allocation66_spill] sm:$0xff] %v5916_v55  ;;  %8130 = vst [vmem:[#allocation67_spill] sm:$0xff] %v5918_v54  ;;  %v5920_v53 = vld [vmem:[#allocation2 + $0x1e0] ss:$2 sm:$0xff]  ;;  %v5922_v14 = vld [vmem:[#allocation2 + $0x1f0] ss:$2 sm:$0xff] }
 0x139   : > { %8131 = vst [vmem:[#allocation68_spill] sm:$0xff] %v5920_v53  ;;  %8132 = vst [vmem:[#allocation69_spill] sm:$0xff] %v5922_v14  ;;  %v5924_v18 = vld [vmem:[#allocation2 + $0x1c1] ss:$2 sm:$0xff]  ;;  %v5942_v22 = vld [vmem:[#allocation2 + $0x210] ss:$2 sm:$0xff] }
 0x13a   : > { %8133 = vst [vmem:[#allocation70_spill] sm:$0xff] %v5924_v18  ;;  %v5928_v24 = vld [vmem:[#allocation2 + $0x1e1] ss:$2 sm:$0xff]  ;;  %v5940_v16 = vld [vmem:[#allocation2 + $0x200] ss:$2 sm:$0x7f] }
 0x13b   : > { %8135 = vst [vmem:[#allocation72_spill] sm:$0xff] %v5928_v24  ;;  %8137 = vst [vmem:[#allocation74_spill] sm:$0xff] %v5940_v16  ;;  %v5944_v13 = vld [vmem:[#allocation2 + $0x220] ss:$2 sm:$0xff]  ;;  %v5952_v7 = vld [vmem:[#allocation2 + $0x221] ss:$2 sm:$0xff] }
 0x13c   : > { %8138 = vst [vmem:[#allocation75_spill] sm:$0xff] %v5942_v22  ;;  %8139 = vst [vmem:[#allocation76_spill] sm:$0xff] %v5944_v13  ;;  %v5946_v20 = vld [vmem:[#allocation2 + $0x240] ss:$2 sm:$0xff]  ;;  %v5966_v29 = vld [vmem:[#allocation2 + $0x250] ss:$2 sm:$0xff] }
 0x13d   : > { %8140 = vst [vmem:[#allocation77_spill] sm:$0xff] %v5946_v20  ;;  %v5948_v19 = vld [vmem:[#allocation2 + $0x201] ss:$2 sm:$0x7f]  ;;  %8143 = vst [vmem:[#allocation80_spill] sm:$0xff] %v5952_v7 }
 0x13e   : > { %8141 = vst [vmem:[#allocation78_spill] sm:$0xff] %v5948_v19  ;;  %v5964_v33 = vld [vmem:[#allocation2 + $0x230] ss:$2 sm:$0x7f]  ;;  %8146 = vst [vmem:[#allocation83_spill] sm:$0xff] %v5966_v29 }
 0x13f   : > { %8145 = vst [vmem:[#allocation82_spill] sm:$0xff] %v5964_v33  ;;  %v5968_v31 = vld [vmem:[#allocation2 + $0x260] ss:$2 sm:$0x7f]  ;;  %v5970_v28 = vld [vmem:[#allocation2 + $0x270] ss:$2 sm:$0xff] }
 0x140   : > { %8147 = vst [vmem:[#allocation84_spill] sm:$0xff] %v5968_v31  ;;  %8148 = vst [vmem:[#allocation85_spill] sm:$0xff] %v5970_v28  ;;  %v5972_v27 = vld [vmem:[#allocation2 + $0x231] ss:$2 sm:$0x7f] }
 0x141   : > { %8149 = vst [vmem:[#allocation86_spill] sm:$0xff] %v5972_v27  ;;  %v5974_v25 = vld [vmem:[#allocation2 + $0x251] ss:$2 sm:$0xff]  ;;  %v5976_v39 = vld [vmem:[#allocation2 + $0x261] ss:$2 sm:$0x7f] }
 0x142   : > { %8150 = vst [vmem:[#allocation87_spill] sm:$0xff] %v5974_v25  ;;  %8151 = vst [vmem:[#allocation88_spill] sm:$0xff] %v5976_v39  ;;  %v5978_v23 = vld [vmem:[#allocation2 + $0x271] ss:$2 sm:$0xff]  ;;  %v5988_v0 = vld [vmem:[#allocation2 + $0x280] ss:$2 sm:$0xff] }
 0x143   : > { %8152 = vst [vmem:[#allocation89_spill] sm:$0xff] %v5978_v23  ;;  %8153 = vst [vmem:[#allocation90_spill] sm:$0xff] %v5988_v0  ;;  %v5990_v37 = vld [vmem:[#allocation2 + $0x290] ss:$2 sm:$0x7f] }
 0x144   : > { %8154 = vst [vmem:[#allocation91_spill] sm:$0xff] %v5990_v37  ;;  %v5992_v40 = vld [vmem:[#allocation2 + $0x2a0] ss:$2 sm:$0xff]  ;;  %v5994_v36 = vld [vmem:[#allocation2 + $0x2b0] ss:$2 sm:$0xff] }
 0x145   : > { %8155 = vst [vmem:[#allocation92_spill] sm:$0xff] %v5992_v40  ;;  %8156 = vst [vmem:[#allocation93_spill] sm:$0xff] %v5994_v36  ;;  %v5996_v35 = vld [vmem:[#allocation2 + $0x281] ss:$2 sm:$0xff]  ;;  %v6002_v30 = vld [vmem:[#allocation2 + $0x2b1] ss:$2 sm:$0xff] }
 0x146   : > { %8157 = vst [vmem:[#allocation94_spill] sm:$0xff] %v5996_v35  ;;  %v5998_v34 = vld [vmem:[#allocation2 + $0x291] ss:$2 sm:$0x7f]  ;;  %v6000_v6 = vld [vmem:[#allocation2 + $0x2a1] ss:$2 sm:$0xff] }
 0x147   : > { %8158 = vst [vmem:[#allocation95_spill] sm:$0xff] %v5998_v34  ;;  %8159 = vst [vmem:[#allocation96_spill] sm:$0xff] %v6000_v6  ;;  %v6012_v12 = vld [vmem:[#allocation2 + $0x2c0] ss:$2 sm:$0x7f] }
 0x148   : > { %8160 = vst [vmem:[#allocation97_spill] sm:$0xff] %v6002_v30  ;;  %8161 = vst [vmem:[#allocation98_spill] sm:$0xff] %v6012_v12  ;;  %v6014_v4 = vld [vmem:[#allocation2 + $0x2d0] ss:$2 sm:$0xff]  ;;  %v6016_v11 = vld [vmem:[#allocation2 + $0x2e0] ss:$2 sm:$0xff] }
 0x149   : > { %8162 = vst [vmem:[#allocation99_spill] sm:$0xff] %v6014_v4  ;;  %8163 = vst [vmem:[#allocation100_spill] sm:$0xff] %v6016_v11  ;;  %v6018_v3 = vld [vmem:[#allocation2 + $0x2f0] ss:$2 sm:$0x7f] }
 0x14a   : > { %8164 = vst [vmem:[#allocation101_spill] sm:$0xff] %v6018_v3  ;;  %v6020_v2 = vld [vmem:[#allocation2 + $0x2c1] ss:$2 sm:$0x7f]  ;;  %v6022_v1 = vld [vmem:[#allocation2 + $0x2d1] ss:$2 sm:$0xff] }
 0x14b   : > { %8165 = vst [vmem:[#allocation102_spill] sm:$0xff] %v6020_v2  ;;  %8166 = vst [vmem:[#allocation103_spill] sm:$0xff] %v6022_v1  ;;  %v6026_v38 = vld [vmem:[#allocation2 + $0x2f1] ss:$2 sm:$0x7f] }
 0x14c   : > { %8168 = vst [vmem:[#allocation105_spill] sm:$0xff] %v6026_v38  ;;  %v6038_v32 = vld [vmem:[#allocation2 + $0x310] ss:$2 sm:$0xff]  ;;  %v6044_v21 = vld [vmem:[#allocation2 + $0x301] ss:$2 sm:$0xff] }
 0x14d   : > { %8170 = vst [vmem:[#allocation107_spill] sm:$0xff] %v6038_v32  ;;  %v6042_v26 = vld [vmem:[#allocation2 + $0x330] ss:$2 sm:$0xff]  ;;  %8173 = vst [vmem:[#allocation110_spill] sm:$0xff] %v6044_v21  ;;  %v6046_v56 = vld [vmem:[#allocation2 + $0x311] ss:$2 sm:$0xff] }
 0x14e   : > { %8172 = vst [vmem:[#allocation109_spill] sm:$0xff] %v6042_v26  ;;  %8174 = vst [vmem:[#allocation111_spill] sm:$0xff] %v6046_v56  ;;  %v6050_v5 = vld [vmem:[#allocation2 + $0x331] ss:$2 sm:$0xff]  ;;  %v6072_v18 = vld [vmem:[#allocation2 + $0x361] ss:$2 sm:$0xff] }
 0x14f   : > { %8176 = vst [vmem:[#allocation113_spill] sm:$0xff] %v6050_v5  ;;  %8183 = vst [vmem:[#allocation120_spill] sm:$0xff] %v6072_v18  ;;  %v6074_v10 = vld [vmem:[#allocation2 + $0x371] ss:$2 sm:$0xff]  ;;  %v6086_v53 = vld [vmem:[#allocation2 + $0x390] ss:$2 sm:$0xff] }
 0x150   : > { %8184 = vst [vmem:[#allocation121_spill] sm:$0xff] %v6074_v10  ;;  %v6084_v24 = vld [vmem:[#allocation2 + $0x380] ss:$2 sm:$0x7f]  ;;  %v6096_v19 = vld [vmem:[#allocation2 + $0x3a1] ss:$2 sm:$0xff] }
 0x151   : > { %v6090_v54 = vld [vmem:[#allocation2 + $0x3b0] ss:$2 sm:$0x7f]  ;;  %v6092_v55 = vld [vmem:[#allocation2 + $0x381] ss:$2 sm:$0x7f] }
 0x152   : > { %8186 = vst [vmem:[#allocation123_spill] sm:$0xff] %v6090_v54  ;;  %8188 = vst [vmem:[#allocation125_spill] sm:$0xff] %v6096_v19  ;;  %v6108_v7 = vld [vmem:[#allocation2 + $0x3c0] ss:$2 sm:$0xff]  ;;  %v6110_v13 = vld [vmem:[#allocation2 + $0x3d0] ss:$2 sm:$0xff] }
 0x153   : > { %8190 = vst [vmem:[#allocation127_spill] sm:$0xff] %v6110_v13  ;;  %v6114_v22 = vld [vmem:[#allocation2 + $0x3f0] ss:$2 sm:$0xff]  ;;  %v6116_v16 = vld [vmem:[#allocation2 + $0x3c1] ss:$2 sm:$0xff] }
 0x154   : > { %8192 = vst [vmem:[#allocation129_spill] sm:$0xff] %v6114_v22  ;;  %v6120_v27 = vld [vmem:[#allocation2 + $0x3e1] ss:$2 sm:$0x7f]  ;;  %v6122_v14 = vld [vmem:[#allocation2 + $0x3f1] ss:$2 sm:$0xff] }
 0x155   : > { %8194 = vst [vmem:[#allocation131_spill] sm:$0xff] %v6120_v27  ;;  %8195 = vst [vmem:[#allocation132_spill] sm:$0xff] %v6122_v14  ;;  %v6132_v39 = vld [vmem:[#allocation2 + $0x400] ss:$2 sm:$0xff]  ;;  %v6138_v29 = vld [vmem:[#allocation2 + $0x430] ss:$2 sm:$0xff] }
 0x156   : > { %v6134_v31 = vld [vmem:[#allocation2 + $0x410] ss:$2 sm:$0x7f]  ;;  %v6136_v25 = vld [vmem:[#allocation2 + $0x420] ss:$2 sm:$0xff]  ;;  %8198 = vst [vmem:[#allocation135_spill] sm:$0xff] %v6138_v29 }
 0x157   : > { %8196 = vst [vmem:[#allocation133_spill] sm:$0xff] %v6134_v31  ;;  %8197 = vst [vmem:[#allocation134_spill] sm:$0xff] %v6136_v25  ;;  %v6140_v33 = vld [vmem:[#allocation2 + $0x401] ss:$2 sm:$0xff]  ;;  %v6146_v20 = vld [vmem:[#allocation2 + $0x431] ss:$2 sm:$0xff] }
 0x158   : > { %v6144_v35 = vld [vmem:[#allocation2 + $0x421] ss:$2 sm:$0xff]  ;;  %8201 = vst [vmem:[#allocation138_spill] sm:$0xff] %v6146_v20  ;;  %v6156_v6 = vld [vmem:[#allocation2 + $0x440] ss:$2 sm:$0x7f] }
 0x159   : > { %8200 = vst [vmem:[#allocation137_spill] sm:$0xff] %v6144_v35  ;;  %v6158_v40 = vld [vmem:[#allocation2 + $0x450] ss:$2 sm:$0xff]  ;;  %v6160_v34 = vld [vmem:[#allocation2 + $0x460] ss:$2 sm:$0xff] }
 0x15a   : > { %8202 = vst [vmem:[#allocation139_spill] sm:$0xff] %v6160_v34  ;;  %v6162_v37 = vld [vmem:[#allocation2 + $0x470] ss:$2 sm:$0x7f]  ;;  %v6166_v23 = vld [vmem:[#allocation2 + $0x451] ss:$2 sm:$0xff] }
 0x15b   : > { %8203 = vst [vmem:[#allocation140_spill] sm:$0xff] %v6162_v37  ;;  %v6164_v0 = vld [vmem:[#allocation2 + $0x441] ss:$2 sm:$0x7f]  ;;  %v6182_v11 = vld [vmem:[#allocation2 + $0x490] ss:$2 sm:$0xff] }
 0x15c   : > { %v6168_v2 = vld [vmem:[#allocation2 + $0x461] ss:$2 sm:$0xff]  ;;  %v6170_v28 = vld [vmem:[#allocation2 + $0x471] ss:$2 sm:$0x7f] }
 0x15d   : > { %8204 = vst [vmem:[#allocation141_spill] sm:$0xff] %v6168_v2  ;;  %8205 = vst [vmem:[#allocation142_spill] sm:$0xff] %v6170_v28  ;;  %v6184_v1 = vld [vmem:[#allocation2 + $0x4a0] ss:$2 sm:$0x7f]  ;;  %v8214_v2 = vmax.f32 %v5790_v60, %v5798_v8 }
 0x15e   : > { %v6186_v4 = vld [vmem:[#allocation2 + $0x4b0] ss:$2 sm:$0xff]  ;;  %v6188_v12 = vld [vmem:[#allocation2 + $0x481] ss:$2 sm:$0xff]  ;;  %v6190_v30 = vld [vmem:[#allocation2 + $0x491] ss:$2 sm:$0xff] }
 0x15f   : > { %v6192_v21 = vld [vmem:[#allocation2 + $0x4a1] ss:$2 sm:$0x7f]  ;;  %v6194_v36 = vld [vmem:[#allocation2 + $0x4b1] ss:$2 sm:$0xff] }
 0x160   : > { %8206 = vst [vmem:[#allocation143_spill] sm:$0xff] %v6192_v21  ;;  %8207 = vst [vmem:[#allocation144_spill] sm:$0xff] %v6194_v36  ;;  %v6208_v56 = vld [vmem:[#allocation2 + $0x4e0] ss:$2 sm:$0xff]  ;;  %v6210_v32 = vld [vmem:[#allocation2 + $0x4f0] ss:$2 sm:$0xff] }
 0x161   : > { %8208 = vst [vmem:[#allocation145_spill] sm:$0xff] %v6210_v32  ;;  %v6214_v38 = vld [vmem:[#allocation2 + $0x4d1] ss:$2 sm:$0x7f]  ;;  %v6248_v54 = vld [vmem:[#allocation2 + $0x540] ss:$2 sm:$0xff]  ;;  %v8212_v32 = vmax.f32 %v5788_v59, %v5796_v63 }
 0x162   : > { %v6218_v3 = vld [vmem:[#allocation2 + $0x4f1] ss:$2 sm:$0xff]  ;;  %v6228_v18 = vld [vmem:[#allocation2 + $0x500] ss:$2 sm:$0x7f] }
 0x163   : > { %8209 = vst [vmem:[#allocation146_spill] sm:$0xff] %v6218_v3  ;;  %v6250_v19 = vld [vmem:[#allocation2 + $0x550] ss:$2 sm:$0xff]  ;;  %v6256_v5 = vld [vmem:[#allocation2 + $0x531] ss:$2 sm:$0x7f] }
 0x164   : > { %v6266_v22 = vld [vmem:[#allocation2 + $0x570] ss:$2 sm:$0xff]  ;;  %v6268_v27 = vld [vmem:[#allocation2 + $0x580] ss:$2 sm:$0xff]  ;;  %v6274_v13 = vld [vmem:[#allocation2 + $0x541] ss:$2 sm:$0xff] }
 0x165   : > { %v6276_v26 = vld [vmem:[#allocation2 + $0x561] ss:$2 sm:$0x7f]  ;;  %v6286_v29 = vld [vmem:[#allocation2 + $0x5b0] ss:$2 sm:$0xff] }
 0x166   : > { %v6288_v35 = vld [vmem:[#allocation2 + $0x5c0] ss:$2 sm:$0x7f]  ;;  %v6290_v25 = vld [vmem:[#allocation2 + $0x551] ss:$2 sm:$0xff] }
 0x167   : > { %8210 = vst [vmem:[#allocation147_spill] sm:$0xff] %v6288_v35  ;;  %v6294_v31 = vld [vmem:[#allocation2 + $0x581] ss:$2 sm:$0xff]  ;;  %v6304_v28 = vld [vmem:[#allocation2 + $0x591] ss:$2 sm:$0x7f] }
 0x168   : > { %v6306_v37 = vld [vmem:[#allocation2 + $0x5a1] ss:$2 sm:$0xff]  ;;  %v6319_v21 = vld [vmem:[#allocation2 + $0x5b1] ss:$2 sm:$0xff] }
 0x169   : > { %v6321_v10 = vld [vmem:[#allocation2 + $0x5c1] ss:$2 sm:$0x7f] }
 0x16a   : > { %8211 = vst [vmem:[#allocation148_spill] sm:$0xff] %v6321_v10  ;;  %v8218_v3 = vld [vmem:[#allocation17_spill] sm:$0xff]  ;;  %v8221_v59 = vld [vmem:[#allocation18_spill] sm:$0xff]  ;;  %v8225_v60 = vld [vmem:[#allocation19_spill] sm:$0xff] }
 0x16b   : > { %v8219_v10 = vmax.f32 %v5794_v62, %v8218_v3  ;;  %v8222_v63 = vld [vmem:[#allocation22_spill] sm:$0xff]  ;;  %v8226_v8 = vld [vmem:[#allocation23_spill] sm:$0xff]  ;;  %v8233_v62 = vld [vmem:[#allocation21_spill] sm:$0xff] }
 0x16c   : > { %v8234_v3 = vld [vmem:[#allocation25_spill] sm:$0xff] }
 0x1ae   : > { %v718_v41 = vpop.xlane.xlu0 %717 }
 0x1af   : > { %v719_v15 = vrot.slane %v718_v41, 4 }
 0x1b1   : > { %v720_v42 = vadd.f32 %v719_v15, %v718_v41  ;;  %v5876_v41 = vld [vmem:[#allocation2 + $0x141] ss:$2 sm:$0x7f]  ;;  %v5878_v15 = vld [vmem:[#allocation2 + $0x151] ss:$2 sm:$0xff] }
 0x1b2   : > { %v739_v9 = vpop.xlane.xlu0 %738  ;;  %8117 = vst [vmem:[#allocation54_spill] sm:$0xff] %v5876_v41  ;;  %8118 = vst [vmem:[#allocation55_spill] sm:$0xff] %v5878_v15  ;;  %v6024_v41 = vld [vmem:[#allocation2 + $0x2e1] ss:$2 sm:$0xff] }
 0x1b3   : > { %v721_v43 = vrot.slane %v720_v42, 2  ;;  %v740_v44 = vrot.slane %v739_v9, 4  ;;  %8167 = vst [vmem:[#allocation104_spill] sm:$0xff] %v6024_v41  ;;  %v6040_v15 = vld [vmem:[#allocation2 + $0x320] ss:$2 sm:$0x7f] }
 0x1b4   : > { %8171 = vst [vmem:[#allocation108_spill] sm:$0xff] %v6040_v15  ;;  %v6180_v41 = vld [vmem:[#allocation2 + $0x480] ss:$2 sm:$0xff]  ;;  %v6206_v15 = vld [vmem:[#allocation2 + $0x4d0] ss:$2 sm:$0x7f] }
 0x1b5   : > { %v741_v45 = vadd.f32 %v740_v44, %v739_v9  ;;  %v722_v46 = vadd.f32 %v721_v43, %v720_v42  ;;  %v5880_v42 = vld [vmem:[#allocation2 + $0x161] ss:$2 sm:$0xff]  ;;  %v5882_v9 = vld [vmem:[#allocation2 + $0x171] ss:$2 sm:$0x7f] }
 0x1b6   : > { %8119 = vst [vmem:[#allocation56_spill] sm:$0xff] %v5880_v42  ;;  %8120 = vst [vmem:[#allocation57_spill] sm:$0xff] %v5882_v9  ;;  %v5950_v44 = vld [vmem:[#allocation2 + $0x211] ss:$2 sm:$0xff]  ;;  %v5954_v43 = vld [vmem:[#allocation2 + $0x241] ss:$2 sm:$0xff] }
 0x1b7   : > { %v742_v47 = vrot.slane %v741_v45, 2  ;;  %v723_v48 = vrot.slane %v722_v46, 1  ;;  %8142 = vst [vmem:[#allocation79_spill] sm:$0xff] %v5950_v44  ;;  %8144 = vst [vmem:[#allocation81_spill] sm:$0xff] %v5954_v43  ;;  %v6036_v42 = vld [vmem:[#allocation2 + $0x300] ss:$2 sm:$0xff] }
 0x1b8   : > { %8169 = vst [vmem:[#allocation106_spill] sm:$0xff] %v6036_v42  ;;  %v6070_v9 = vld [vmem:[#allocation2 + $0x351] ss:$2 sm:$0x7f]  ;;  %v6212_v42 = vld [vmem:[#allocation2 + $0x4c1] ss:$2 sm:$0xff] }
 0x1b9   : > { %v743_v49 = vadd.f32 %v742_v47, %v741_v45  ;;  %v724_v50 = vadd.f32 %v723_v48, %v722_v46  ;;  %v5892_v47 = vld [vmem:[#allocation2 + $0x180] ss:$2 sm:$0xff]  ;;  %v5894_v48 = vld [vmem:[#allocation2 + $0x190] ss:$2 sm:$0xff]  ;;  %v5930_v46 = vld [vmem:[#allocation2 + $0x1f1] ss:$2 sm:$0xff] }
 0x1ba   : > { %8121 = vst [vmem:[#allocation58_spill] sm:$0xff] %v5892_v47  ;;  %8122 = vst [vmem:[#allocation59_spill] sm:$0xff] %v5894_v48  ;;  %v5926_v45 = vld [vmem:[#allocation2 + $0x1d1] ss:$2 sm:$0x7f] }
 0x1bb   : > { %4822 = vpush %v724_v50  ;;  %v744_v51 = vrot.slane %v743_v49, 1  ;;  %v5898_v50 = vld [vmem:[#allocation2 + $0x1b0] ss:$2 sm:$0xff]  ;;  %8134 = vst [vmem:[#allocation71_spill] sm:$0xff] %v5926_v45  ;;  %v6068_v47 = vld [vmem:[#allocation2 + $0x341] ss:$2 sm:$0xff] }
 0x1bc   : > { %8124 = vst [vmem:[#allocation61_spill] sm:$0xff] %v5898_v50  ;;  %8136 = vst [vmem:[#allocation73_spill] sm:$0xff] %v5930_v46  ;;  %v6066_v48 = vld [vmem:[#allocation2 + $0x370] ss:$2 sm:$0xff]  ;;  %v6088_v45 = vld [vmem:[#allocation2 + $0x3a0] ss:$2 sm:$0xff] }
 0x1bd   : > { %v745_v52 = vadd.f32 %v744_v51, %v743_v49  ;;  %v5896_v49 = vld [vmem:[#allocation2 + $0x1a0] ss:$2 sm:$0x7f]  ;;  %v5900_v51 = vld [vmem:[#allocation2 + $0x181] ss:$2 sm:$0xff]  ;;  %8180 = vst [vmem:[#allocation117_spill] sm:$0xff] %v6066_v48  ;;  %v8216_v48 = vmax.f32 %v5792_v61, %v5800_v17 }
 0x1be   : > { %8123 = vst [vmem:[#allocation60_spill] sm:$0xff] %v5896_v49  ;;  %8125 = vst [vmem:[#allocation62_spill] sm:$0xff] %v5900_v51  ;;  %v6048_v51 = vld [vmem:[#allocation2 + $0x321] ss:$2 sm:$0x7f]  ;;  %v8229_v61 = vld [vmem:[#allocation20_spill] sm:$0xff] }
 0x1bf   : > { %4824 = vpush %v745_v52  ;;  %v5902_v52 = vld [vmem:[#allocation2 + $0x191] ss:$2 sm:$0xff]  ;;  %8175 = vst [vmem:[#allocation112_spill] sm:$0xff] %v6048_v51  ;;  %v6062_v49 = vld [vmem:[#allocation2 + $0x350] ss:$2 sm:$0x7f] }
 0x1c0   : > { %8126 = vst [vmem:[#allocation63_spill] sm:$0xff] %v5902_v52  ;;  %8178 = vst [vmem:[#allocation115_spill] sm:$0xff] %v6062_v49  ;;  %v6064_v52 = vld [vmem:[#allocation2 + $0x360] ss:$2 sm:$0xff]  ;;  %v6118_v46 = vld [vmem:[#allocation2 + $0x3d1] ss:$2 sm:$0xff] }
 0x1c1   : > { %8179 = vst [vmem:[#allocation116_spill] sm:$0xff] %v6064_v52  ;;  %8181 = vst [vmem:[#allocation118_spill] sm:$0xff] %v6068_v47  ;;  %v6098_v50 = vld [vmem:[#allocation2 + $0x3b1] ss:$2 sm:$0x7f] }
 0x1c2   : > { %8182 = vst [vmem:[#allocation119_spill] sm:$0xff] %v6070_v9  ;;  %8185 = vst [vmem:[#allocation122_spill] sm:$0xff] %v6088_v45  ;;  %v6112_v44 = vld [vmem:[#allocation2 + $0x3e0] ss:$2 sm:$0x7f]  ;;  %v8230_v17 = vld [vmem:[#allocation24_spill] sm:$0xff] }
 0x1c3   : > { %8189 = vst [vmem:[#allocation126_spill] sm:$0xff] %v6098_v50  ;;  %8191 = vst [vmem:[#allocation128_spill] sm:$0xff] %v6112_v44  ;;  %v6142_v43 = vld [vmem:[#allocation2 + $0x411] ss:$2 sm:$0x7f] }
 0x1c4   : > { %8193 = vst [vmem:[#allocation130_spill] sm:$0xff] %v6118_v46  ;;  %8199 = vst [vmem:[#allocation136_spill] sm:$0xff] %v6142_v43  ;;  %v6204_v51 = vld [vmem:[#allocation2 + $0x4c0] ss:$2 sm:$0xff]  ;;  %v6216_v47 = vld [vmem:[#allocation2 + $0x4e1] ss:$2 sm:$0xff] }
 0x1c5   : > { %v6230_v52 = vld [vmem:[#allocation2 + $0x510] ss:$2 sm:$0xff]  ;;  %v6232_v9 = vld [vmem:[#allocation2 + $0x520] ss:$2 sm:$0xff]  ;;  %v6292_v43 = vld [vmem:[#allocation2 + $0x571] ss:$2 sm:$0xff] }
 0x1c6   : > { %v6234_v49 = vld [vmem:[#allocation2 + $0x501] ss:$2 sm:$0x7f]  ;;  %v6246_v50 = vld [vmem:[#allocation2 + $0x530] ss:$2 sm:$0x7f] }
 0x1c7   : > { %v6252_v45 = vld [vmem:[#allocation2 + $0x560] ss:$2 sm:$0x7f]  ;;  %v6270_v44 = vld [vmem:[#allocation2 + $0x590] ss:$2 sm:$0x7f] }
 0x1c8   : > { %v6272_v46 = vld [vmem:[#allocation2 + $0x5a0] ss:$2 sm:$0xff] }
 0x1ec   : > { %s4823_s25 = spop %4822 }
 0x1ed   : > { %s5784_s30 = smul.f32 4.382889e-05, %s4823_s25 }
 0x1ef   : > { %s748_s26 = smul.f32 %s5784_s30, %s5784_s30  ;;  %v6317_v20 = vstv %s5784_s30 }
 0x1f0   : > { %s4825_s12 = spop %4824  ;;  %v6353_v36 = vsub.f32 %v8212_v32, %v6317_v20  ;;  %v6359_v34 = vsub.f32 %v8214_v2, %v6317_v20  ;;  %v6365_v14 = vsub.f32 %v8216_v48, %v6317_v20  ;;  %v6371_v35 = vsub.f32 %v8219_v10, %v6317_v20 }
 0x1f1   : > { %s747_s13 = smul.f32 4.382889e-05, %s4825_s12  ;;  %v8223_v32 = vmax.f32 %v8221_v59, %v8222_v63  ;;  %v8227_v2 = vmax.f32 %v8225_v60, %v8226_v8  ;;  %v8231_v48 = vmax.f32 %v8229_v61, %v8230_v17  ;;  %v8235_v10 = vmax.f32 %v8233_v62, %v8234_v3  ;;  %v8237_v59 = vld [vmem:[#allocation26_spill] sm:$0xff]  ;;  %v8241_v60 = vld [vmem:[#allocation27_spill] sm:$0xff]  ;;  %v8245_v61 = vld [vmem:[#allocation28_spill] sm:$0xff] }
 0x1f2   : > { %8213 = vst [vmem:[#allocation149_spill] sm:$0xff] %v6353_v36  ;;  %8215 = vst [vmem:[#allocation150_spill] sm:$0xff] %v6359_v34  ;;  %v8238_v63 = vld [vmem:[#allocation30_spill] sm:$0xff]  ;;  %v8242_v8 = vld [vmem:[#allocation31_spill] sm:$0xff] }
 0x1f3   : > { %s749_s14 = ssub.f32 %s747_s13, %s748_s26  ;;  %8217 = vst [vmem:[#allocation151_spill] sm:$0xff] %v6365_v14  ;;  %8220 = vst [vmem:[#allocation17_spill] sm:$0xff] %v6371_v35  ;;  %v6377_v36 = vsub.f32 %v8223_v32, %v6317_v20  ;;  %v6383_v34 = vsub.f32 %v8227_v2, %v6317_v20  ;;  %v6389_v14 = vsub.f32 %v8231_v48, %v6317_v20  ;;  %v8246_v17 = vld [vmem:[#allocation32_spill] sm:$0xff]  ;;  %v8249_v62 = vld [vmem:[#allocation29_spill] sm:$0xff] }
 0x1f4   : > { %v6395_v35 = vsub.f32 %v8235_v10, %v6317_v20  ;;  %v8239_v32 = vmax.f32 %v8237_v59, %v8238_v63  ;;  %v8243_v2 = vmax.f32 %v8241_v60, %v8242_v8  ;;  %v8247_v48 = vmax.f32 %v8245_v61, %v8246_v17  ;;  %v8250_v3 = vld [vmem:[#allocation33_spill] sm:$0xff]  ;;  %v8253_v59 = vld [vmem:[#allocation34_spill] sm:$0xff]  ;;  %v8257_v60 = vld [vmem:[#allocation35_spill] sm:$0xff] }
 0x1f5   : > { %s750_s0 = sadd.f32 1e-05, %s749_s14  ;;  %8224 = vst [vmem:[#allocation18_spill] sm:$0xff] %v6377_v36  ;;  %8228 = vst [vmem:[#allocation22_spill] sm:$0xff] %v6383_v34  ;;  %v8251_v10 = vmax.f32 %v8249_v62, %v8250_v3  ;;  %v8254_v63 = vld [vmem:[#allocation38_spill] sm:$0xff]  ;;  %v8258_v8 = vld [vmem:[#allocation39_spill] sm:$0xff] }
 0x1f6   : > { %8232 = vst [vmem:[#allocation19_spill] sm:$0xff] %v6389_v14  ;;  %8236 = vst [vmem:[#allocation23_spill] sm:$0xff] %v6395_v35  ;;  %v6401_v36 = vsub.f32 %v8239_v32, %v6317_v20  ;;  %v6407_v34 = vsub.f32 %v8243_v2, %v6317_v20  ;;  %v6413_v14 = vsub.f32 %v8247_v48, %v6317_v20  ;;  %v8261_v61 = vld [vmem:[#allocation36_spill] sm:$0xff]  ;;  %v8265_v62 = vld [vmem:[#allocation37_spill] sm:$0xff] }
 0x1f7   : > { %v751_v57 = vstv %s750_s0  ;;  %v6419_v35 = vsub.f32 %v8251_v10, %v6317_v20  ;;  %v8255_v32 = vmax.f32 %v8253_v59, %v8254_v63  ;;  %v8259_v2 = vmax.f32 %v8257_v60, %v8258_v8  ;;  %v8262_v17 = vld [vmem:[#allocation40_spill] sm:$0xff]  ;;  %v8266_v3 = vld [vmem:[#allocation41_spill] sm:$0xff]  ;;  %v8269_v59 = vld [vmem:[#allocation42_spill] sm:$0xff] }
 0x1f8   : > { %5095 = vrsqrt.f32 %v751_v57  ;;  %v5904_v57 = vld [vmem:[#allocation2 + $0x1a1] ss:$2 sm:$0x7f]  ;;  %8240 = vst [vmem:[#allocation20_spill] sm:$0xff] %v6401_v36  ;;  %8244 = vst [vmem:[#allocation24_spill] sm:$0xff] %v6407_v34  ;;  %v8263_v48 = vmax.f32 %v8261_v61, %v8262_v17  ;;  %v8267_v10 = vmax.f32 %v8265_v62, %v8266_v3  ;;  %v8277_v61 = vld [vmem:[#allocation44_spill] sm:$0xff] }
 0x1f9   : > { %8127 = vst [vmem:[#allocation64_spill] sm:$0xff] %v5904_v57  ;;  %v6060_v57 = vld [vmem:[#allocation2 + $0x340] ss:$2 sm:$0xff]  ;;  %8248 = vst [vmem:[#allocation21_spill] sm:$0xff] %v6413_v14  ;;  %v6425_v36 = vsub.f32 %v8255_v32, %v6317_v20  ;;  %v6431_v34 = vsub.f32 %v8259_v2, %v6317_v20  ;;  %v8278_v17 = vld [vmem:[#allocation48_spill] sm:$0xff] }
 0x1fa   : > { %8177 = vst [vmem:[#allocation114_spill] sm:$0xff] %v6060_v57  ;;  %v6236_v57 = vld [vmem:[#allocation2 + $0x511] ss:$2 sm:$0xff]  ;;  %8252 = vst [vmem:[#allocation25_spill] sm:$0xff] %v6419_v35  ;;  %v6437_v14 = vsub.f32 %v8263_v48, %v6317_v20  ;;  %v6443_v35 = vsub.f32 %v8267_v10, %v6317_v20  ;;  %v8270_v63 = vld [vmem:[#allocation46_spill] sm:$0xff]  ;;  %v8279_v48 = vmax.f32 %v8277_v61, %v8278_v17 }
 0x1fb   : > { %8256 = vst [vmem:[#allocation26_spill] sm:$0xff] %v6425_v36  ;;  %8260 = vst [vmem:[#allocation30_spill] sm:$0xff] %v6431_v34  ;;  %v8271_v32 = vmax.f32 %v8269_v59, %v8270_v63  ;;  %v8273_v60 = vld [vmem:[#allocation43_spill] sm:$0xff]  ;;  %v8281_v62 = vld [vmem:[#allocation45_spill] sm:$0xff] }
 0x1fc   : > { %8264 = vst [vmem:[#allocation27_spill] sm:$0xff] %v6437_v14  ;;  %8268 = vst [vmem:[#allocation31_spill] sm:$0xff] %v6443_v35  ;;  %v8274_v8 = vld [vmem:[#allocation47_spill] sm:$0xff]  ;;  %v6461_v14 = vsub.f32 %v8279_v48, %v6317_v20  ;;  %v8282_v3 = vld [vmem:[#allocation49_spill] sm:$0xff] }
 0x1fd   : > { %v6449_v36 = vsub.f32 %v8271_v32, %v6317_v20  ;;  %v8275_v2 = vmax.f32 %v8273_v60, %v8274_v8  ;;  %v8283_v10 = vmax.f32 %v8281_v62, %v8282_v3  ;;  %v8285_v59 = vld [vmem:[#allocation50_spill] sm:$0xff]  ;;  %v8289_v60 = vld [vmem:[#allocation51_spill] sm:$0xff]  ;;  %v8293_v61 = vld [vmem:[#allocation52_spill] sm:$0xff] }
 0x1fe   : > { %8280 = vst [vmem:[#allocation29_spill] sm:$0xff] %v6461_v14  ;;  %v8286_v63 = vld [vmem:[#allocation54_spill] sm:$0xff]  ;;  %v8290_v8 = vld [vmem:[#allocation55_spill] sm:$0xff]  ;;  %v8294_v17 = vld [vmem:[#allocation56_spill] sm:$0xff] }
 0x1ff   : > { %8272 = vst [vmem:[#allocation28_spill] sm:$0xff] %v6449_v36  ;;  %v6455_v34 = vsub.f32 %v8275_v2, %v6317_v20  ;;  %v6467_v35 = vsub.f32 %v8283_v10, %v6317_v20  ;;  %v8287_v32 = vmax.f32 %v8285_v59, %v8286_v63  ;;  %v8291_v2 = vmax.f32 %v8289_v60, %v8290_v8  ;;  %v8297_v62 = vld [vmem:[#allocation53_spill] sm:$0xff]  ;;  %v8301_v59 = vld [vmem:[#allocation58_spill] sm:$0xff]  ;;  %v8305_v60 = vld [vmem:[#allocation59_spill] sm:$0xff] }
 0x200   : > { %v8295_v48 = vmax.f32 %v8293_v61, %v8294_v17  ;;  %v8298_v3 = vld [vmem:[#allocation57_spill] sm:$0xff]  ;;  %v8302_v63 = vld [vmem:[#allocation62_spill] sm:$0xff]  ;;  %v8306_v8 = vld [vmem:[#allocation63_spill] sm:$0xff] }
 0x201   : > { %8276 = vst [vmem:[#allocation32_spill] sm:$0xff] %v6455_v34  ;;  %8284 = vst [vmem:[#allocation33_spill] sm:$0xff] %v6467_v35  ;;  %v6473_v36 = vsub.f32 %v8287_v32, %v6317_v20  ;;  %v6479_v34 = vsub.f32 %v8291_v2, %v6317_v20  ;;  %v8299_v10 = vmax.f32 %v8297_v62, %v8298_v3  ;;  %v8309_v61 = vld [vmem:[#allocation60_spill] sm:$0xff]  ;;  %v8313_v62 = vld [vmem:[#allocation61_spill] sm:$0xff] }
 0x202   : > { %v5096_v58 = vpop.eup %5095  ;;  %v6485_v14 = vsub.f32 %v8295_v48, %v6317_v20  ;;  %v8303_v32 = vmax.f32 %v8301_v59, %v8302_v63  ;;  %v8307_v2 = vmax.f32 %v8305_v60, %v8306_v8  ;;  %v8310_v17 = vld [vmem:[#allocation64_spill] sm:$0xff]  ;;  %v8317_v59 = vld [vmem:[#allocation66_spill] sm:$0xff]  ;;  %v8321_v60 = vld [vmem:[#allocation67_spill] sm:$0xff] }
 0x203   : > { %4826 = vpush %v5096_v58  ;;  %v5906_v58 = vld [vmem:[#allocation2 + $0x1b1] ss:$2 sm:$0xff]  ;;  %8288 = vst [vmem:[#allocation34_spill] sm:$0xff] %v6473_v36  ;;  %v6491_v35 = vsub.f32 %v8299_v10, %v6317_v20  ;;  %v8311_v48 = vmax.f32 %v8309_v61, %v8310_v17  ;;  %v8318_v63 = vld [vmem:[#allocation70_spill] sm:$0xff] }
 0x204   : > { %8128 = vst [vmem:[#allocation65_spill] sm:$0xff] %v5906_v58  ;;  %v6094_v58 = vld [vmem:[#allocation2 + $0x391] ss:$2 sm:$0xff]  ;;  %8292 = vst [vmem:[#allocation38_spill] sm:$0xff] %v6479_v34  ;;  %v6497_v36 = vsub.f32 %v8303_v32, %v6317_v20  ;;  %v6503_v34 = vsub.f32 %v8307_v2, %v6317_v20  ;;  %v8319_v32 = vmax.f32 %v8317_v59, %v8318_v63  ;;  %v8333_v59 = vld [vmem:[#allocation74_spill] sm:$0xff] }
 0x205   : > { %8187 = vst [vmem:[#allocation124_spill] sm:$0xff] %v6094_v58  ;;  %v6254_v58 = vld [vmem:[#allocation2 + $0x521] ss:$2 sm:$0xff]  ;;  %8296 = vst [vmem:[#allocation35_spill] sm:$0xff] %v6485_v14  ;;  %v6509_v14 = vsub.f32 %v8311_v48, %v6317_v20  ;;  %v8325_v61 = vld [vmem:[#allocation68_spill] sm:$0xff] }
 0x206   : > { %8300 = vst [vmem:[#allocation39_spill] sm:$0xff] %v6491_v35  ;;  %8304 = vst [vmem:[#allocation36_spill] sm:$0xff] %v6497_v36  ;;  %v6521_v36 = vsub.f32 %v8319_v32, %v6317_v20  ;;  %v8322_v8 = vld [vmem:[#allocation71_spill] sm:$0xff]  ;;  %v8326_v17 = vld [vmem:[#allocation72_spill] sm:$0xff] }
 0x207   : > { %8308 = vst [vmem:[#allocation40_spill] sm:$0xff] %v6503_v34  ;;  %8312 = vst [vmem:[#allocation37_spill] sm:$0xff] %v6509_v14  ;;  %v8323_v2 = vmax.f32 %v8321_v60, %v8322_v8  ;;  %v8327_v48 = vmax.f32 %v8325_v61, %v8326_v17  ;;  %v8334_v63 = vld [vmem:[#allocation78_spill] sm:$0xff]  ;;  %v8337_v60 = vld [vmem:[#allocation75_spill] sm:$0xff] }
 0x208   : > { %8320 = vst [vmem:[#allocation42_spill] sm:$0xff] %v6521_v36  ;;  %v8335_v32 = vmax.f32 %v8333_v59, %v8334_v63  ;;  %v8338_v8 = vld [vmem:[#allocation79_spill] sm:$0xff]  ;;  %v8341_v61 = vld [vmem:[#allocation76_spill] sm:$0xff]  ;;  %v8349_v59 = vld [vmem:[#allocation77_spill] sm:$0xff] }
 0x209   : > { %v6527_v34 = vsub.f32 %v8323_v2, %v6317_v20  ;;  %v6533_v14 = vsub.f32 %v8327_v48, %v6317_v20  ;;  %v8339_v2 = vmax.f32 %v8337_v60, %v8338_v8  ;;  %v8342_v17 = vld [vmem:[#allocation80_spill] sm:$0xff]  ;;  %v8350_v63 = vld [vmem:[#allocation81_spill] sm:$0xff]  ;;  %v8353_v60 = vld [vmem:[#allocation83_spill] sm:$0xff] }
 0x20a   : > { %v6545_v36 = vsub.f32 %v8335_v32, %v6317_v20  ;;  %v8343_v48 = vmax.f32 %v8341_v61, %v8342_v17  ;;  %v8351_v32 = vmax.f32 %v8349_v59, %v8350_v63  ;;  %v8354_v8 = vld [vmem:[#allocation87_spill] sm:$0xff]  ;;  %v8357_v61 = vld [vmem:[#allocation84_spill] sm:$0xff]  ;;  %v8365_v59 = vld [vmem:[#allocation90_spill] sm:$0xff] }
 0x20b   : > { %v8314_v3 = vld [vmem:[#allocation65_spill] sm:$0xff]  ;;  %8324 = vst [vmem:[#allocation46_spill] sm:$0xff] %v6527_v34  ;;  %8328 = vst [vmem:[#allocation43_spill] sm:$0xff] %v6533_v14  ;;  %v6551_v34 = vsub.f32 %v8339_v2, %v6317_v20  ;;  %v8355_v2 = vmax.f32 %v8353_v60, %v8354_v8  ;;  %v8358_v17 = vld [vmem:[#allocation88_spill] sm:$0xff] }
 0x20c   : > { %v8315_v10 = vmax.f32 %v8313_v62, %v8314_v3  ;;  %v8329_v62 = vld [vmem:[#allocation69_spill] sm:$0xff]  ;;  %8336 = vst [vmem:[#allocation44_spill] sm:$0xff] %v6545_v36  ;;  %v6557_v14 = vsub.f32 %v8343_v48, %v6317_v20  ;;  %v6569_v36 = vsub.f32 %v8351_v32, %v6317_v20  ;;  %v8359_v48 = vmax.f32 %v8357_v61, %v8358_v17  ;;  %v8366_v63 = vld [vmem:[#allocation94_spill] sm:$0xff]  ;;  %v8369_v60 = vld [vmem:[#allocation91_spill] sm:$0xff] }
 0x20d   : > { %v8330_v3 = vld [vmem:[#allocation73_spill] sm:$0xff]  ;;  %8340 = vst [vmem:[#allocation48_spill] sm:$0xff] %v6551_v34  ;;  %v6575_v34 = vsub.f32 %v8355_v2, %v6317_v20  ;;  %v8367_v32 = vmax.f32 %v8365_v59, %v8366_v63  ;;  %v8370_v8 = vld [vmem:[#allocation95_spill] sm:$0xff]  ;;  %v8373_v61 = vld [vmem:[#allocation92_spill] sm:$0xff] }
 0x20e   : > { %v6515_v35 = vsub.f32 %v8315_v10, %v6317_v20  ;;  %v8331_v10 = vmax.f32 %v8329_v62, %v8330_v3  ;;  %8344 = vst [vmem:[#allocation45_spill] sm:$0xff] %v6557_v14  ;;  %v8345_v62 = vld [vmem:[#allocation82_spill] sm:$0xff]  ;;  %8352 = vst [vmem:[#allocation50_spill] sm:$0xff] %v6569_v36  ;;  %v6581_v14 = vsub.f32 %v8359_v48, %v6317_v20  ;;  %v8374_v17 = vld [vmem:[#allocation96_spill] sm:$0xff] }
 0x20f   : > { %v8346_v3 = vld [vmem:[#allocation86_spill] sm:$0xff]  ;;  %8356 = vst [vmem:[#allocation54_spill] sm:$0xff] %v6575_v34  ;;  %v6593_v36 = vsub.f32 %v8367_v32, %v6317_v20  ;;  %v8371_v2 = vmax.f32 %v8369_v60, %v8370_v8  ;;  %v8375_v48 = vmax.f32 %v8373_v61, %v8374_v17  ;;  %v8385_v60 = vld [vmem:[#allocation99_spill] sm:$0xff]  ;;  %v8389_v61 = vld [vmem:[#allocation100_spill] sm:$0xff] }
 0x210   : > { %8316 = vst [vmem:[#allocation41_spill] sm:$0xff] %v6515_v35  ;;  %v6539_v35 = vsub.f32 %v8331_v10, %v6317_v20  ;;  %v8347_v10 = vmax.f32 %v8345_v62, %v8346_v3  ;;  %8360 = vst [vmem:[#allocation51_spill] sm:$0xff] %v6581_v14  ;;  %v8361_v62 = vld [vmem:[#allocation85_spill] sm:$0xff]  ;;  %v8381_v59 = vld [vmem:[#allocation98_spill] sm:$0xff] }
 0x211   : > { %v8362_v3 = vld [vmem:[#allocation89_spill] sm:$0xff]  ;;  %8368 = vst [vmem:[#allocation52_spill] sm:$0xff] %v6593_v36  ;;  %v6599_v34 = vsub.f32 %v8371_v2, %v6317_v20  ;;  %v6605_v14 = vsub.f32 %v8375_v48, %v6317_v20  ;;  %v8382_v63 = vld [vmem:[#allocation102_spill] sm:$0xff]  ;;  %v8386_v8 = vld [vmem:[#allocation103_spill] sm:$0xff] }
 0x212   : > { %8332 = vst [vmem:[#allocation47_spill] sm:$0xff] %v6539_v35  ;;  %v6563_v35 = vsub.f32 %v8347_v10, %v6317_v20  ;;  %v8363_v10 = vmax.f32 %v8361_v62, %v8362_v3  ;;  %v8377_v62 = vld [vmem:[#allocation93_spill] sm:$0xff]  ;;  %v8383_v32 = vmax.f32 %v8381_v59, %v8382_v63  ;;  %v8387_v2 = vmax.f32 %v8385_v60, %v8386_v8  ;;  %v8390_v17 = vld [vmem:[#allocation104_spill] sm:$0xff]  ;;  %v8397_v59 = vld [vmem:[#allocation106_spill] sm:$0xff] }
 0x213   : > { %8372 = vst [vmem:[#allocation56_spill] sm:$0xff] %v6599_v34  ;;  %8376 = vst [vmem:[#allocation53_spill] sm:$0xff] %v6605_v14  ;;  %v8378_v3 = vld [vmem:[#allocation97_spill] sm:$0xff]  ;;  %v8391_v48 = vmax.f32 %v8389_v61, %v8390_v17  ;;  %v8398_v63 = vld [vmem:[#allocation110_spill] sm:$0xff] }
 0x214   : > { %8348 = vst [vmem:[#allocation49_spill] sm:$0xff] %v6563_v35  ;;  %v6587_v35 = vsub.f32 %v8363_v10, %v6317_v20  ;;  %v8379_v10 = vmax.f32 %v8377_v62, %v8378_v3  ;;  %v6617_v36 = vsub.f32 %v8383_v32, %v6317_v20  ;;  %v6623_v34 = vsub.f32 %v8387_v2, %v6317_v20  ;;  %v8393_v62 = vld [vmem:[#allocation101_spill] sm:$0xff]  ;;  %v8401_v60 = vld [vmem:[#allocation107_spill] sm:$0xff]  ;;  %v8405_v61 = vld [vmem:[#allocation108_spill] sm:$0xff] }
 0x215   : > { %v6629_v14 = vsub.f32 %v8391_v48, %v6317_v20  ;;  %v8394_v3 = vld [vmem:[#allocation105_spill] sm:$0xff]  ;;  %v8399_v32 = vmax.f32 %v8397_v59, %v8398_v63  ;;  %v8402_v8 = vld [vmem:[#allocation111_spill] sm:$0xff]  ;;  %v8406_v17 = vld [vmem:[#allocation112_spill] sm:$0xff] }
 0x216   : > { %8364 = vst [vmem:[#allocation55_spill] sm:$0xff] %v6587_v35  ;;  %v6611_v35 = vsub.f32 %v8379_v10, %v6317_v20  ;;  %8384 = vst [vmem:[#allocation58_spill] sm:$0xff] %v6617_v36  ;;  %v8395_v10 = vmax.f32 %v8393_v62, %v8394_v3  ;;  %v8403_v2 = vmax.f32 %v8401_v60, %v8402_v8  ;;  %v8409_v62 = vld [vmem:[#allocation109_spill] sm:$0xff]  ;;  %v8413_v59 = vld [vmem:[#allocation114_spill] sm:$0xff] }
 0x217   : > { %8388 = vst [vmem:[#allocation62_spill] sm:$0xff] %v6623_v34  ;;  %8392 = vst [vmem:[#allocation59_spill] sm:$0xff] %v6629_v14  ;;  %v6641_v36 = vsub.f32 %v8399_v32, %v6317_v20  ;;  %v8407_v48 = vmax.f32 %v8405_v61, %v8406_v17  ;;  %v8410_v3 = vld [vmem:[#allocation113_spill] sm:$0xff]  ;;  %v8414_v63 = vld [vmem:[#allocation118_spill] sm:$0xff] }
 0x218   : > { %8380 = vst [vmem:[#allocation57_spill] sm:$0xff] %v6611_v35  ;;  %v6635_v35 = vsub.f32 %v8395_v10, %v6317_v20  ;;  %v6647_v34 = vsub.f32 %v8403_v2, %v6317_v20  ;;  %v8411_v10 = vmax.f32 %v8409_v62, %v8410_v3  ;;  %v8415_v32 = vmax.f32 %v8413_v59, %v8414_v63  ;;  %v8416_v60 = vld [vmem:[#allocation115_spill] sm:$0xff]  ;;  %v8419_v61 = vld [vmem:[#allocation116_spill] sm:$0xff]  ;;  %v8422_v62 = vld [vmem:[#allocation117_spill] sm:$0xff] }
 0x219   : > { %8400 = vst [vmem:[#allocation60_spill] sm:$0xff] %v6641_v36  ;;  %v6653_v14 = vsub.f32 %v8407_v48, %v6317_v20  ;;  %v8417_v8 = vld [vmem:[#allocation119_spill] sm:$0xff]  ;;  %v8420_v17 = vld [vmem:[#allocation120_spill] sm:$0xff]  ;;  %v8423_v3 = vld [vmem:[#allocation121_spill] sm:$0xff]  ;;  %v8426_v59 = vmax.f32 %v6084_v24, %v6092_v55  ;;  %v8436_v55 = vmax.f32 %v6108_v7, %v6116_v16  ;;  %v8449_v7 = vmax.f32 %v6132_v39, %v6140_v33 }
 0x21a   : > { %8396 = vst [vmem:[#allocation63_spill] sm:$0xff] %v6635_v35  ;;  %8404 = vst [vmem:[#allocation64_spill] sm:$0xff] %v6647_v34  ;;  %v6659_v35 = vsub.f32 %v8411_v10, %v6317_v20  ;;  %v6665_v36 = vsub.f32 %v8415_v32, %v6317_v20  ;;  %v8418_v2 = vmax.f32 %v8416_v60, %v8417_v8  ;;  %v8427_v32 = vld [vmem:[#allocation124_spill] sm:$0xff] }
 0x21b   : > { %8408 = vst [vmem:[#allocation61_spill] sm:$0xff] %v6653_v14  ;;  %v8421_v48 = vmax.f32 %v8419_v61, %v8420_v17  ;;  %v8424_v10 = vmax.f32 %v8422_v62, %v8423_v3  ;;  %v6689_v63 = vsub.f32 %v8426_v59, %v6317_v20  ;;  %v8428_v60 = vmax.f32 %v6086_v53, %v8427_v32  ;;  %v8430_v61 = vld [vmem:[#allocation125_spill] sm:$0xff]  ;;  %v8432_v62 = vld [vmem:[#allocation123_spill] sm:$0xff]  ;;  %v8433_v3 = vld [vmem:[#allocation126_spill] sm:$0xff] }
 0x21c   : > { %8412 = vst [vmem:[#allocation65_spill] sm:$0xff] %v6659_v35  ;;  %v6671_v34 = vsub.f32 %v8418_v2, %v6317_v20  ;;  %v8429_v2 = vld [vmem:[#allocation122_spill] sm:$0xff]  ;;  %v6713_v24 = vsub.f32 %v8436_v55, %v6317_v20  ;;  %v8437_v53 = vld [vmem:[#allocation127_spill] sm:$0xff]  ;;  %v6737_v55 = vsub.f32 %v8449_v7, %v6317_v20  ;;  %v8459_v33 = vmax.f32 %v6156_v6, %v6164_v0 }
 0x21d   : > { %v6677_v14 = vsub.f32 %v8421_v48, %v6317_v20  ;;  %v6683_v35 = vsub.f32 %v8424_v10, %v6317_v20  ;;  %v6695_v8 = vsub.f32 %v8428_v60, %v6317_v20  ;;  %v8431_v17 = vmax.f32 %v8429_v2, %v8430_v61  ;;  %v8438_v59 = vld [vmem:[#allocation130_spill] sm:$0xff]  ;;  %v8441_v2 = vld [vmem:[#allocation128_spill] sm:$0xff]  ;;  %v8442_v61 = vld [vmem:[#allocation131_spill] sm:$0xff] }
 0x21e   : > { %v8434_v10 = vmax.f32 %v8432_v62, %v8433_v3  ;;  %v8439_v32 = vmax.f32 %v8437_v53, %v8438_v59  ;;  %v8445_v3 = vld [vmem:[#allocation129_spill] sm:$0xff]  ;;  %v8451_v59 = vld [vmem:[#allocation136_spill] sm:$0xff]  ;;  %v6761_v39 = vsub.f32 %v8459_v33, %v6317_v20  ;;  %v8460_v7 = vmax.f32 %v6158_v40, %v6166_v23  ;;  %v8469_v33 = vld [vmem:[#allocation143_spill] sm:$0xff] }
 0x21f   : > { %8425 = vst [vmem:[#allocation66_spill] sm:$0xff] %v6683_v35  ;;  %v6701_v48 = vsub.f32 %v8431_v17, %v6317_v20  ;;  %v8443_v17 = vmax.f32 %v8441_v2, %v8442_v61  ;;  %v8450_v53 = vld [vmem:[#allocation133_spill] sm:$0xff]  ;;  %v8453_v2 = vld [vmem:[#allocation134_spill] sm:$0xff]  ;;  %v8467_v0 = vmax.f32 %v6180_v41, %v6188_v12  ;;  %v8468_v23 = vmax.f32 %v6182_v11, %v6190_v30 }
 0x220   : > { %v6707_v35 = vsub.f32 %v8434_v10, %v6317_v20  ;;  %v6719_v60 = vsub.f32 %v8439_v32, %v6317_v20  ;;  %v8446_v10 = vld [vmem:[#allocation132_spill] sm:$0xff]  ;;  %v8452_v32 = vmax.f32 %v8450_v53, %v8451_v59  ;;  %v8454_v61 = vld [vmem:[#allocation137_spill] sm:$0xff]  ;;  %v6767_v53 = vsub.f32 %v8460_v7, %v6317_v20  ;;  %v8461_v59 = vld [vmem:[#allocation139_spill] sm:$0xff] }
 0x221   : > { %v6725_v62 = vsub.f32 %v8443_v17, %v6317_v20  ;;  %v8455_v17 = vmax.f32 %v8453_v2, %v8454_v61  ;;  %v6785_v6 = vsub.f32 %v8467_v0, %v6317_v20  ;;  %v6791_v40 = vsub.f32 %v8468_v23, %v6317_v20 }
 0x222   : > { %8435 = vst [vmem:[#allocation70_spill] sm:$0xff] %v6707_v35  ;;  %8440 = vst [vmem:[#allocation67_spill] sm:$0xff] %v6719_v60  ;;  %v8447_v35 = vmax.f32 %v8445_v3, %v8446_v10  ;;  %v6743_v60 = vsub.f32 %v8452_v32, %v6317_v20  ;;  %v8457_v3 = vld [vmem:[#allocation138_spill] sm:$0xff]  ;;  %v8462_v32 = vld [vmem:[#allocation141_spill] sm:$0xff]  ;;  %v8470_v7 = vmax.f32 %v6184_v1, %v8469_v33 }
 0x223   : > { %8444 = vst [vmem:[#allocation71_spill] sm:$0xff] %v6725_v62  ;;  %v6749_v62 = vsub.f32 %v8455_v17, %v6317_v20  ;;  %v8463_v2 = vmax.f32 %v8461_v59, %v8462_v32  ;;  %v8464_v17 = vld [vmem:[#allocation140_spill] sm:$0xff]  ;;  %v8473_v12 = vmax.f32 %v6204_v51, %v6212_v42  ;;  %v8474_v30 = vmax.f32 %v6206_v15, %v6214_v38 }
 0x224   : > { %v6731_v16 = vsub.f32 %v8447_v35, %v6317_v20  ;;  %v8456_v35 = vld [vmem:[#allocation135_spill] sm:$0xff]  ;;  %v6797_v59 = vsub.f32 %v8470_v7, %v6317_v20  ;;  %v8471_v32 = vld [vmem:[#allocation144_spill] sm:$0xff]  ;;  %v8475_v1 = vmax.f32 %v6208_v56, %v6216_v47  ;;  %v8479_v42 = vmax.f32 %v6228_v18, %v6234_v49 }
 0x225   : > { %v8458_v10 = vmax.f32 %v8456_v35, %v8457_v3  ;;  %v6773_v61 = vsub.f32 %v8463_v2, %v6317_v20  ;;  %v8465_v35 = vld [vmem:[#allocation142_spill] sm:$0xff]  ;;  %v8472_v2 = vmax.f32 %v6186_v4, %v8471_v32  ;;  %v6809_v41 = vsub.f32 %v8473_v12, %v6317_v20  ;;  %v8476_v4 = vld [vmem:[#allocation145_spill] sm:$0xff] }
 0x226   : > { %8448 = vst [vmem:[#allocation68_spill] sm:$0xff] %v6731_v16  ;;  %v8466_v3 = vmax.f32 %v8464_v17, %v8465_v35  ;;  %v6815_v11 = vsub.f32 %v8474_v30, %v6317_v20  ;;  %v6821_v35 = vsub.f32 %v8475_v1, %v6317_v20  ;;  %v6833_v51 = vsub.f32 %v8479_v42, %v6317_v20  ;;  %v8496_v30 = vld [vmem:[#allocation151_spill] sm:$0xff] }
 0x227   : > { %v6755_v16 = vsub.f32 %v8458_v10, %v6317_v20  ;;  %v6803_v17 = vsub.f32 %v8472_v2, %v6317_v20  ;;  %v8480_v38 = vmax.f32 %v6230_v52, %v6236_v57  ;;  %v8481_v56 = vmax.f32 %v6232_v9, %v6254_v58  ;;  %v8500_v42 = vld [vmem:[#allocation19_spill] sm:$0xff] }
 0x228   : > { %v6779_v10 = vsub.f32 %v8466_v3, %v6317_v20  ;;  %v8477_v3 = vld [vmem:[#allocation146_spill] sm:$0xff]  ;;  %v8482_v33 = vmax.f32 %v6246_v50, %v6256_v5  ;;  %v8483_v18 = vmax.f32 %v6248_v54, %v6274_v13  ;;  %v8484_v52 = vmax.f32 %v6250_v19, %v6290_v25 }
 0x229   : > { %v8478_v0 = vmax.f32 %v8476_v4, %v8477_v3  ;;  %v6839_v15 = vsub.f32 %v8480_v38, %v6317_v20  ;;  %v6845_v47 = vsub.f32 %v8481_v56, %v6317_v20  ;;  %v8485_v9 = vmax.f32 %v6252_v45, %v6276_v26  ;;  %v8498_v4 = vld [vmem:[#allocation18_spill] sm:$0xff]  ;;  %v8501_v56 = vld [vmem:[#allocation23_spill] sm:$0xff] }
 0x22a   : > { %v6851_v7 = vsub.f32 %v8482_v33, %v6317_v20  ;;  %v6857_v49 = vsub.f32 %v8483_v18, %v6317_v20  ;;  %v6863_v57 = vsub.f32 %v8484_v52, %v6317_v20  ;;  %v8486_v50 = vmax.f32 %v6266_v22, %v6292_v43  ;;  %v8502_v18 = vld [vmem:[#allocation20_spill] sm:$0xff] }
 0x22b   : > { %v6827_v23 = vsub.f32 %v8478_v0, %v6317_v20  ;;  %v6869_v5 = vsub.f32 %v8485_v9, %v6317_v20  ;;  %v8487_v13 = vmax.f32 %v6268_v27, %v6294_v31  ;;  %v8488_v25 = vmax.f32 %v6270_v44, %v6304_v28  ;;  %v8491_v27 = vld [vmem:[#allocation147_spill] sm:$0xff]  ;;  %v8492_v31 = vld [vmem:[#allocation148_spill] sm:$0xff]  ;;  %v8494_v44 = vld [vmem:[#allocation149_spill] sm:$0xff] }
 0x22c   : > { %v6875_v54 = vsub.f32 %v8486_v50, %v6317_v20  ;;  %v8489_v26 = vmax.f32 %v6272_v46, %v6306_v37  ;;  %v8490_v22 = vmax.f32 %v6286_v29, %v6319_v21  ;;  %v8493_v32 = vmax.f32 %v8491_v27, %v8492_v31  ;;  %v8495_v37 = vld [vmem:[#allocation150_spill] sm:$0xff]  ;;  %v8497_v29 = vld [vmem:[#allocation17_spill] sm:$0xff]  ;;  %v8503_v9 = vld [vmem:[#allocation24_spill] sm:$0xff] }
 0x22d   : > { %v6881_v19 = vsub.f32 %v8487_v13, %v6317_v20  ;;  %v6887_v58 = vsub.f32 %v8488_v25, %v6317_v20  ;;  %v8499_v0 = vld [vmem:[#allocation22_spill] sm:$0xff]  ;;  %v8504_v13 = vld [vmem:[#allocation21_spill] sm:$0xff] }
 0x22e   : > { %v6893_v45 = vsub.f32 %v8489_v26, %v6317_v20  ;;  %v6899_v43 = vsub.f32 %v8490_v22, %v6317_v20  ;;  %v6905_v2 = vsub.f32 %v8493_v32, %v6317_v20  ;;  %v8505_v26 = vld [vmem:[#allocation25_spill] sm:$0xff]  ;;  %v8506_v27 = vld [vmem:[#allocation26_spill] sm:$0xff] }
 0x22f   : > { %v8507_v32 = vld [vmem:[#allocation30_spill] sm:$0xff] }
 0x234   : > { %s4827_s0 = spop %4826 }
 0x235   : > { %v6907_v28 = vstv %s4827_s0 }
 0x236   : > { %v1313_v12 = vmul.f32 %v6907_v28, %v8494_v44  ;;  %v1314_v46 = vmul.f32 %v6907_v28, %v8495_v37  ;;  %v1315_v1 = vmul.f32 %v6907_v28, %v8496_v30  ;;  %v1316_v21 = vmul.f32 %v6907_v28, %v8497_v29  ;;  %v8508_v37 = vld [vmem:[#allocation27_spill] sm:$0xff] }
 0x237   : > { %v1317_v3 = vmul.f32 %v6907_v28, %v8498_v4  ;;  %v1318_v20 = vmul.f32 %v6907_v28, %v8499_v0  ;;  %v1319_v38 = vmul.f32 %v6907_v28, %v8500_v42  ;;  %v1320_v33 = vmul.f32 %v6907_v28, %v8501_v56  ;;  %v8509_v29 = vld [vmem:[#allocation31_spill] sm:$0xff]  ;;  %v8512_v0 = vld [vmem:[#allocation29_spill] sm:$0xff] }
 0x238   : > { %v1321_v52 = vmul.f32 %v6907_v28, %v8502_v18  ;;  %v1322_v50 = vmul.f32 %v6907_v28, %v8503_v9  ;;  %v1323_v25 = vmul.f32 %v6907_v28, %v8504_v13  ;;  %v1324_v22 = vmul.f32 %v6907_v28, %v8505_v26  ;;  %1406 = vst.msk [vmem:[#allocation3] sm:$0xff] %vm660_vm4, %v1313_v12  ;;  %v8510_v12 = vld [vmem:[#allocation28_spill] sm:$0xff]  ;;  %v8513_v56 = vld [vmem:[#allocation33_spill] sm:$0xff]  ;;  %v8516_v9 = vld [vmem:[#allocation35_spill] sm:$0xff] }
 0x239   : > { %1407 = vst.msk [vmem:[#allocation3 + $0x8] sm:$0xff] %vm660_vm4, %v1314_v46  ;;  %1410 = vst.msk [vmem:[#allocation3 + $0x18] sm:$0xff] %vm660_vm4, %v1316_v21  ;;  %v1325_v31 = vmul.f32 %v6907_v28, %v8506_v27  ;;  %v1326_v44 = vmul.f32 %v6907_v28, %v8507_v32  ;;  %v1327_v30 = vmul.f32 %v6907_v28, %v8508_v37  ;;  %v8517_v26 = vld [vmem:[#allocation39_spill] sm:$0xff]  ;;  %v8520_v32 = vld [vmem:[#allocation37_spill] sm:$0xff] }
 0x23a   : > { %1409 = vst.msk [vmem:[#allocation3 + $0x10] sm:$0x7f] %vm1408_vm6, %v1315_v1  ;;  %v1328_v4 = vmul.f32 %v6907_v28, %v8509_v29  ;;  %1412 = vst.msk [vmem:[#allocation3 + $0x28] sm:$0x7f] %vm1408_vm6, %v1318_v20  ;;  %v1329_v46 = vmul.f32 %v6907_v28, %v8510_v12  ;;  %v8511_v1 = vld [vmem:[#allocation32_spill] sm:$0xff]  ;;  %v1331_v42 = vmul.f32 %v6907_v28, %v8512_v0  ;;  %v8521_v29 = vld [vmem:[#allocation41_spill] sm:$0xff] }
 0x23b   : > { %1411 = vst.msk [vmem:[#allocation3 + $0x20] sm:$0xff] %vm660_vm4, %v1317_v3  ;;  %1413 = vst.msk [vmem:[#allocation3 + $0x30] sm:$0xff] %vm660_vm4, %v1319_v38  ;;  %v1330_v21 = vmul.f32 %v6907_v28, %v8511_v1  ;;  %v1332_v18 = vmul.f32 %v6907_v28, %v8513_v56  ;;  %v8514_v3 = vld [vmem:[#allocation34_spill] sm:$0xff]  ;;  %v1335_v13 = vmul.f32 %v6907_v28, %v8516_v9  ;;  %v8524_v1 = vld [vmem:[#allocation43_spill] sm:$0xff] }
 0x23c   : > { %1414 = vst.msk [vmem:[#allocation3 + $0x38] sm:$0xff] %vm660_vm4, %v1320_v33  ;;  %1416 = vst.msk [vmem:[#allocation3 + $0x48] sm:$0xff] %vm660_vm4, %v1322_v50  ;;  %v1333_v20 = vmul.f32 %v6907_v28, %v8514_v3  ;;  %v8515_v38 = vld [vmem:[#allocation38_spill] sm:$0xff]  ;;  %v1336_v27 = vmul.f32 %v6907_v28, %v8517_v26  ;;  %v1339_v37 = vmul.f32 %v6907_v28, %v8520_v32  ;;  %v8525_v56 = vld [vmem:[#allocation47_spill] sm:$0xff] }
 0x23d   : > { %1415 = vst.msk [vmem:[#allocation3 + $0x40] sm:$0x7f] %vm1408_vm6, %v1321_v52  ;;  %1418 = vst.msk [vmem:[#allocation3 + $0x58] sm:$0x7f] %vm1408_vm6, %v1324_v22  ;;  %v1334_v33 = vmul.f32 %v6907_v28, %v8515_v38  ;;  %v8518_v52 = vld [vmem:[#allocation36_spill] sm:$0xff]  ;;  %v1340_v12 = vmul.f32 %v6907_v28, %v8521_v29  ;;  %v1343_v0 = vmul.f32 %v6907_v28, %v8524_v1  ;;  %v8528_v38 = vld [vmem:[#allocation45_spill] sm:$0xff] }
 0x23e   : > { %1417 = vst.msk [vmem:[#allocation3 + $0x50] sm:$0xff] %vm660_vm4, %v1323_v25  ;;  %1419 = vst.msk [vmem:[#allocation3 + $0x60] sm:$0xff] %vm660_vm4, %v1325_v31  ;;  %v1337_v50 = vmul.f32 %v6907_v28, %v8518_v52  ;;  %v8519_v25 = vld [vmem:[#allocation40_spill] sm:$0xff]  ;;  %v8522_v31 = vld [vmem:[#allocation42_spill] sm:$0xff]  ;;  %v1344_v3 = vmul.f32 %v6907_v28, %v8525_v56  ;;  %v1347_v9 = vmul.f32 %v6907_v28, %v8528_v38 }
 0x23f   : > { %1420 = vst.msk [vmem:[#allocation3 + $0x68] sm:$0xff] %vm660_vm4, %v1326_v44  ;;  %1422 = vst.msk [vmem:[#allocation3 + $0x78] sm:$0xff] %vm660_vm4, %v1328_v4  ;;  %v1338_v22 = vmul.f32 %v6907_v28, %v8519_v25  ;;  %v1341_v44 = vmul.f32 %v6907_v28, %v8522_v31  ;;  %v8529_v26 = vld [vmem:[#allocation49_spill] sm:$0xff]  ;;  %v8532_v25 = vld [vmem:[#allocation51_spill] sm:$0xff] }
 0x240   : > { %1421 = vst.msk [vmem:[#allocation3 + $0x70] sm:$0x7f] %vm1408_vm6, %v1327_v30  ;;  %1424 = vst.msk [vmem:[#allocation3 + $0x88] sm:$0x7f] %vm1408_vm6, %v1330_v21  ;;  %v8523_v30 = vld [vmem:[#allocation46_spill] sm:$0xff]  ;;  %v1348_v52 = vmul.f32 %v6907_v28, %v8529_v26  ;;  %v1351_v32 = vmul.f32 %v6907_v28, %v8532_v25  ;;  %v8533_v29 = vld [vmem:[#allocation55_spill] sm:$0xff] }
 0x241   : > { %1423 = vst.msk [vmem:[#allocation3 + $0x80] sm:$0xff] %vm660_vm4, %v1329_v46  ;;  %1425 = vst.msk [vmem:[#allocation3 + $0x90] sm:$0xff] %vm660_vm4, %v1331_v42  ;;  %v1342_v4 = vmul.f32 %v6907_v28, %v8523_v30  ;;  %v8526_v46 = vld [vmem:[#allocation44_spill] sm:$0xff]  ;;  %v1352_v31 = vmul.f32 %v6907_v28, %v8533_v29  ;;  %v8536_v30 = vld [vmem:[#allocation53_spill] sm:$0xff] }
 0x242   : > { %1426 = vst.msk [vmem:[#allocation3 + $0x98] sm:$0xff] %vm660_vm4, %v1332_v18  ;;  %1428 = vst.msk [vmem:[#allocation3 + $0xa8] sm:$0xff] %vm660_vm4, %v1334_v33  ;;  %v1345_v21 = vmul.f32 %v6907_v28, %v8526_v46  ;;  %v8527_v42 = vld [vmem:[#allocation48_spill] sm:$0xff]  ;;  %v1355_v1 = vmul.f32 %v6907_v28, %v8536_v30  ;;  %v8537_v56 = vld [vmem:[#allocation57_spill] sm:$0xff] }
 0x243   : > { %1427 = vst.msk [vmem:[#allocation3 + $0xa0] sm:$0x7f] %vm1408_vm6, %v1333_v20  ;;  %1430 = vst.msk [vmem:[#allocation3 + $0xb8] sm:$0x7f] %vm1408_vm6, %v1336_v27  ;;  %v1346_v18 = vmul.f32 %v6907_v28, %v8527_v42  ;;  %v8530_v20 = vld [vmem:[#allocation50_spill] sm:$0xff]  ;;  %v1356_v46 = vmul.f32 %v6907_v28, %v8537_v56  ;;  %v8540_v42 = vld [vmem:[#allocation59_spill] sm:$0xff] }
 0x244   : > { %1429 = vst.msk [vmem:[#allocation3 + $0xb0] sm:$0xff] %vm660_vm4, %v1335_v13  ;;  %1431 = vst.msk [vmem:[#allocation3 + $0xc0] sm:$0xff] %vm660_vm4, %v1337_v50  ;;  %v1349_v33 = vmul.f32 %v6907_v28, %v8530_v20  ;;  %v8531_v13 = vld [vmem:[#allocation54_spill] sm:$0xff]  ;;  %v8534_v50 = vld [vmem:[#allocation52_spill] sm:$0xff]  ;;  %v1359_v38 = vmul.f32 %v6907_v28, %v8540_v42 }
 0x245   : > { %1432 = vst.msk [vmem:[#allocation3 + $0xc8] sm:$0xff] %vm660_vm4, %v1338_v22  ;;  %1434 = vst.msk [vmem:[#allocation3 + $0xd8] sm:$0xff] %vm660_vm4, %v1340_v12  ;;  %v1350_v27 = vmul.f32 %v6907_v28, %v8531_v13  ;;  %v1353_v22 = vmul.f32 %v6907_v28, %v8534_v50  ;;  %v8541_v26 = vld [vmem:[#allocation63_spill] sm:$0xff]  ;;  %v8544_v13 = vld [vmem:[#allocation61_spill] sm:$0xff] }
 0x246   : > { %1433 = vst.msk [vmem:[#allocation3 + $0xd0] sm:$0x7f] %vm1408_vm6, %v1339_v37  ;;  %1436 = vst.msk [vmem:[#allocation3 + $0xe8] sm:$0x7f] %vm1408_vm6, %v1342_v4  ;;  %v8535_v37 = vld [vmem:[#allocation56_spill] sm:$0xff]  ;;  %v1360_v20 = vmul.f32 %v6907_v28, %v8541_v26  ;;  %v1363_v25 = vmul.f32 %v6907_v28, %v8544_v13  ;;  %v8545_v29 = vld [vmem:[#allocation65_spill] sm:$0xff] }
 0x247   : > { %1435 = vst.msk [vmem:[#allocation3 + $0xe0] sm:$0xff] %vm660_vm4, %v1341_v44  ;;  %1437 = vst.msk [vmem:[#allocation3 + $0xf0] sm:$0xff] %vm660_vm4, %v1343_v0  ;;  %v1354_v12 = vmul.f32 %v6907_v28, %v8535_v37  ;;  %v8538_v44 = vld [vmem:[#allocation58_spill] sm:$0xff]  ;;  %v1364_v50 = vmul.f32 %v6907_v28, %v8545_v29  ;;  %v8548_v30 = vld [vmem:[#allocation67_spill] sm:$0xff] }
 0x248   : > { %1438 = vst.msk [vmem:[#allocation3 + $0xf8] sm:$0xff] %vm660_vm4, %v1344_v3  ;;  %1440 = vst.msk [vmem:[#allocation3 + $0x108] sm:$0xff] %vm660_vm4, %v1346_v18  ;;  %v1357_v4 = vmul.f32 %v6907_v28, %v8538_v44  ;;  %v8539_v0 = vld [vmem:[#allocation62_spill] sm:$0xff]  ;;  %v8550_v56 = vld [vmem:[#allocation68_spill] sm:$0xff]  ;;  %v1378_v44 = vmul.f32 %v6907_v28, %v6743_v60  ;;  %v1382_v60 = vmul.f32 %v6907_v28, %v6767_v53 }
 0x249   : > { %1439 = vst.msk [vmem:[#allocation3 + $0x100] sm:$0x7f] %vm1408_vm6, %v1345_v21  ;;  %1442 = vst.msk [vmem:[#allocation3 + $0x118] sm:$0x7f] %vm1408_vm6, %v1348_v52  ;;  %v1358_v3 = vmul.f32 %v6907_v28, %v8539_v0  ;;  %v8542_v21 = vld [vmem:[#allocation60_spill] sm:$0xff]  ;;  %v1380_v0 = vmul.f32 %v6907_v28, %v6755_v16  ;;  %v1384_v16 = vmul.f32 %v6907_v28, %v6779_v10 }
 0x24a   : > { %1441 = vst.msk [vmem:[#allocation3 + $0x110] sm:$0xff] %vm660_vm4, %v1347_v9  ;;  %1443 = vst.msk [vmem:[#allocation3 + $0x120] sm:$0xff] %vm660_vm4, %v1349_v33  ;;  %v1361_v18 = vmul.f32 %v6907_v28, %v8542_v21  ;;  %v8543_v9 = vld [vmem:[#allocation64_spill] sm:$0xff]  ;;  %v1365_v33 = vmul.f32 %v6907_v28, %v6665_v36  ;;  %v1369_v36 = vmul.f32 %v6907_v28, %v6689_v63 }
 0x24b   : > { %1444 = vst.msk [vmem:[#allocation3 + $0x128] sm:$0xff] %vm660_vm4, %v1350_v27  ;;  %1446 = vst.msk [vmem:[#allocation3 + $0x138] sm:$0xff] %vm660_vm4, %v1352_v31  ;;  %v1362_v52 = vmul.f32 %v6907_v28, %v8543_v9  ;;  %v1366_v27 = vmul.f32 %v6907_v28, %v6671_v34  ;;  %v8546_v31 = vld [vmem:[#allocation66_spill] sm:$0xff]  ;;  %v1370_v34 = vmul.f32 %v6907_v28, %v6695_v8 }
 0x24c   : > { %1445 = vst.msk [vmem:[#allocation3 + $0x130] sm:$0x7f] %vm1408_vm6, %v1351_v32  ;;  %1448 = vst.msk [vmem:[#allocation3 + $0x148] sm:$0x7f] %vm1408_vm6, %v1354_v12  ;;  %v1367_v32 = vmul.f32 %v6907_v28, %v6677_v14  ;;  %v1368_v37 = vmul.f32 %v6907_v28, %v8546_v31  ;;  %v1371_v14 = vmul.f32 %v6907_v28, %v6701_v48 }
 0x24d   : > { %1447 = vst.msk [vmem:[#allocation3 + $0x140] sm:$0xff] %vm660_vm4, %v1353_v22  ;;  %1449 = vst.msk [vmem:[#allocation3 + $0x150] sm:$0xff] %vm660_vm4, %v1355_v1  ;;  %v8547_v22 = vld [vmem:[#allocation70_spill] sm:$0xff]  ;;  %v1373_v63 = vmul.f32 %v6907_v28, %v6713_v24  ;;  %v1374_v8 = vmul.f32 %v6907_v28, %v8548_v30  ;;  %v8549_v1 = vld [vmem:[#allocation71_spill] sm:$0xff]  ;;  %v1377_v24 = vmul.f32 %v6907_v28, %v6737_v55 }
 0x24e   : > { %1450 = vst.msk [vmem:[#allocation3 + $0x158] sm:$0xff] %vm660_vm4, %v1356_v46  ;;  %1452 = vst.msk [vmem:[#allocation3 + $0x168] sm:$0xff] %vm660_vm4, %v1358_v3  ;;  %v1372_v12 = vmul.f32 %v6907_v28, %v8547_v22  ;;  %v1375_v48 = vmul.f32 %v6907_v28, %v8549_v1  ;;  %v1376_v46 = vmul.f32 %v6907_v28, %v8550_v56  ;;  %v7198_v3 = vmov 0.0  }
 0x24f   : > { %1451 = vst.msk [vmem:[#allocation3 + $0x160] sm:$0x7f] %vm1408_vm6, %v1357_v4  ;;  %1454 = vst.msk [vmem:[#allocation3 + $0x178] sm:$0x7f] %vm1408_vm6, %v1360_v20  ;;  %v1379_v4 = vmul.f32 %v6907_v28, %v6749_v62  ;;  %v1381_v55 = vmul.f32 %v6907_v28, %v6761_v39  ;;  %v1383_v62 = vmul.f32 %v6907_v28, %v6773_v61 }
 0x250   : > { %1453 = vst.msk [vmem:[#allocation3 + $0x170] sm:$0xff] %vm660_vm4, %v1359_v38  ;;  %1455 = vst.msk [vmem:[#allocation3 + $0x180] sm:$0xff] %vm660_vm4, %v1361_v18  ;;  %v1385_v39 = vmul.f32 %v6907_v28, %v6785_v6  ;;  %v1386_v53 = vmul.f32 %v6907_v28, %v6791_v40  ;;  %v1387_v61 = vmul.f32 %v6907_v28, %v6797_v59 }
 0x251   : > { %1456 = vst.msk [vmem:[#allocation3 + $0x188] sm:$0xff] %vm660_vm4, %v1362_v52  ;;  %1458 = vst.msk [vmem:[#allocation3 + $0x198] sm:$0xff] %vm660_vm4, %v1364_v50  ;;  %v1388_v10 = vmul.f32 %v6907_v28, %v6803_v17  ;;  %v1389_v6 = vmul.f32 %v6907_v28, %v6809_v41  ;;  %v1390_v40 = vmul.f32 %v6907_v28, %v6815_v11 }
 0x252   : > { %1457 = vst.msk [vmem:[#allocation3 + $0x190] sm:$0x7f] %vm1408_vm6, %v1363_v25  ;;  %1460 = vst.msk [vmem:[#allocation3 + $0x1a8] sm:$0x7f] %vm1408_vm6, %v1366_v27  ;;  %v1391_v59 = vmul.f32 %v6907_v28, %v6821_v35  ;;  %v1392_v17 = vmul.f32 %v6907_v28, %v6827_v23  ;;  %v1393_v41 = vmul.f32 %v6907_v28, %v6833_v51 }
 0x253   : > { %1459 = vst.msk [vmem:[#allocation3 + $0x1a0] sm:$0xff] %vm660_vm4, %v1365_v33  ;;  %1461 = vst.msk [vmem:[#allocation3 + $0x1b0] sm:$0xff] %vm660_vm4, %v1367_v32  ;;  %v1394_v11 = vmul.f32 %v6907_v28, %v6839_v15  ;;  %v1395_v35 = vmul.f32 %v6907_v28, %v6845_v47  ;;  %v1396_v23 = vmul.f32 %v6907_v28, %v6851_v7 }
 0x254   : > { %1462 = vst.msk [vmem:[#allocation3 + $0x1b8] sm:$0xff] %vm660_vm4, %v1368_v37  ;;  %1464 = vst.msk [vmem:[#allocation3 + $0x1c8] sm:$0xff] %vm660_vm4, %v1370_v34  ;;  %v1397_v51 = vmul.f32 %v6907_v28, %v6857_v49  ;;  %v1398_v15 = vmul.f32 %v6907_v28, %v6863_v57  ;;  %v1399_v47 = vmul.f32 %v6907_v28, %v6869_v5 }
 0x255   : > { %1463 = vst.msk [vmem:[#allocation3 + $0x1c0] sm:$0x7f] %vm1408_vm6, %v1369_v36  ;;  %1466 = vst.msk [vmem:[#allocation3 + $0x1d8] sm:$0x7f] %vm1408_vm6, %v1372_v12  ;;  %v1400_v7 = vmul.f32 %v6907_v28, %v6875_v54  ;;  %v1401_v49 = vmul.f32 %v6907_v28, %v6881_v19  ;;  %v1402_v57 = vmul.f32 %v6907_v28, %v6887_v58  ;;  %v7188_v58 = vmov 0.0  }
 0x256   : > { %1465 = vst.msk [vmem:[#allocation3 + $0x1d0] sm:$0xff] %vm660_vm4, %v1371_v14  ;;  %1467 = vst.msk [vmem:[#allocation3 + $0x1e0] sm:$0xff] %vm660_vm4, %v1373_v63  ;;  %v1403_v5 = vmul.f32 %v6907_v28, %v6893_v45  ;;  %v1404_v54 = vmul.f32 %v6907_v28, %v6899_v43  ;;  %v1405_v19 = vmul.f32 %v6907_v28, %v6905_v2  ;;  %v7190_v45 = vmov 0.0  }
 0x257   : > { %1468 = vst.msk [vmem:[#allocation3 + $0x1e8] sm:$0xff] %vm660_vm4, %v1374_v8  ;;  %1470 = vst.msk [vmem:[#allocation3 + $0x1f8] sm:$0xff] %vm660_vm4, %v1376_v46  ;;  %v7192_v43 = vmov 0.0   ;;  %v7194_v2 = vmov 0.0   ;;  %v7196_v28 = vmov 0.0  }
 0x258   : > { %1469 = vst.msk [vmem:[#allocation3 + $0x1f0] sm:$0x7f] %vm1408_vm6, %v1375_v48  ;;  %1472 = vst.msk [vmem:[#allocation3 + $0x208] sm:$0x7f] %vm1408_vm6, %v1378_v44 }
 0x259   : > { %1471 = vst.msk [vmem:[#allocation3 + $0x200] sm:$0xff] %vm660_vm4, %v1377_v24  ;;  %1473 = vst.msk [vmem:[#allocation3 + $0x210] sm:$0xff] %vm660_vm4, %v1379_v4 }
 0x25a   : > { %1474 = vst.msk [vmem:[#allocation3 + $0x218] sm:$0xff] %vm660_vm4, %v1380_v0  ;;  %1476 = vst.msk [vmem:[#allocation3 + $0x228] sm:$0xff] %vm660_vm4, %v1382_v60 }
 0x25b   : > { %1475 = vst.msk [vmem:[#allocation3 + $0x220] sm:$0x7f] %vm1408_vm6, %v1381_v55  ;;  %1478 = vst.msk [vmem:[#allocation3 + $0x238] sm:$0x7f] %vm1408_vm6, %v1384_v16 }
 0x25c   : > { %1477 = vst.msk [vmem:[#allocation3 + $0x230] sm:$0xff] %vm660_vm4, %v1383_v62  ;;  %1479 = vst.msk [vmem:[#allocation3 + $0x240] sm:$0xff] %vm660_vm4, %v1385_v39 }
 0x25d   : > { %1480 = vst.msk [vmem:[#allocation3 + $0x248] sm:$0xff] %vm660_vm4, %v1386_v53  ;;  %1482 = vst.msk [vmem:[#allocation3 + $0x258] sm:$0xff] %vm660_vm4, %v1388_v10 }
 0x25e   : > { %1481 = vst.msk [vmem:[#allocation3 + $0x250] sm:$0x7f] %vm1408_vm6, %v1387_v61  ;;  %1484 = vst.msk [vmem:[#allocation3 + $0x268] sm:$0x7f] %vm1408_vm6, %v1390_v40 }
 0x25f   : > { %1483 = vst.msk [vmem:[#allocation3 + $0x260] sm:$0xff] %vm660_vm4, %v1389_v6  ;;  %1485 = vst.msk [vmem:[#allocation3 + $0x270] sm:$0xff] %vm660_vm4, %v1391_v59 }
 0x260   : > { %1486 = vst.msk [vmem:[#allocation3 + $0x278] sm:$0xff] %vm660_vm4, %v1392_v17  ;;  %1488 = vst.msk [vmem:[#allocation3 + $0x288] sm:$0xff] %vm660_vm4, %v1394_v11 }
 0x261   : > { %1487 = vst.msk [vmem:[#allocation3 + $0x280] sm:$0x7f] %vm1408_vm6, %v1393_v41  ;;  %1490 = vst.msk [vmem:[#allocation3 + $0x298] sm:$0x7f] %vm1408_vm6, %v1396_v23 }
 0x262   : > { %1489 = vst.msk [vmem:[#allocation3 + $0x290] sm:$0xff] %vm660_vm4, %v1395_v35  ;;  %1491 = vst.msk [vmem:[#allocation3 + $0x2a0] sm:$0xff] %vm660_vm4, %v1397_v51 }
 0x263   : > { %1492 = vst.msk [vmem:[#allocation3 + $0x2a8] sm:$0xff] %vm660_vm4, %v1398_v15  ;;  %1494 = vst.msk [vmem:[#allocation3 + $0x2b8] sm:$0xff] %vm660_vm4, %v1400_v7 }
 0x264   : > { %1493 = vst.msk [vmem:[#allocation3 + $0x2b0] sm:$0x7f] %vm1408_vm6, %v1399_v47  ;;  %1496 = vst.msk [vmem:[#allocation3 + $0x2c8] sm:$0x7f] %vm1408_vm6, %v1402_v57 }
 0x265   : > { %1495 = vst.msk [vmem:[#allocation3 + $0x2c0] sm:$0xff] %vm660_vm4, %v1401_v49  ;;  %1497 = vst.msk [vmem:[#allocation3 + $0x2d0] sm:$0xff] %vm660_vm4, %v1403_v5 }
 0x266   : > { %1498 = vst.msk [vmem:[#allocation3 + $0x2d8] sm:$0xff] %vm660_vm4, %v1404_v54 }
 0x267   : > { %1499 = vst.msk [vmem:[#allocation3 + $0x2e0] sm:$0x7f] %vm1408_vm6, %v1405_v19 }
 0x268 LB: >> { %vm1547_vm7 = vcmask 1043456   ;;  %v8551_v42 = vld [vmem:[#allocation14_spill] sm:$0xff]  ;;  %s4406_s29 = smul.u32 48, %s5405_s15  ;;  %v8552_v26 = vld [vmem:[#allocation13_spill] sm:$0xff]  ;;  %v8553_v36 = vld [vmem:[#allocation15_spill] sm:$0xff]  ;;  %s5422_s24 = smov 96   ;;  %s5405_s15 = sphi %s7200_s15, %s1518_s15   ;;  %v5401_v3 = vphi %v7198_v3, %v8566_v3   ;;  %v5397_v28 = vphi %v7196_v28, %v8565_v28   ;;  %v5393_v2 = vphi %v7194_v2, %v8564_v2   ;;  %v5389_v43 = vphi %v7192_v43, %v8563_v43   ;;  %v5385_v45 = vphi %v7190_v45, %v8562_v45   ;;  %v5381_v58 = vphi %v7188_v58, %v8561_v58  }
 0x269   : >> { %4812 = vmatprep.subr.msk.bf16.mxu0 %vm1547_vm7, %v8551_v42  ;;  %v7227_v38 = vsel %vm1547_vm7, %v8551_v42, 0  ;;  %4815 = vmatprep.subr.msk.bf16.mxu1 %vm1547_vm7, %v8551_v42  ;;  %v7248_v33 = vsel %vm1547_vm7, %v8552_v26, 0  ;;  %v7269_v63 = vsel %vm1547_vm7, %v8553_v36, 0  ;;  %s5423_s25 = smov 112   ;;  %vm1730_vm8 = vcmask 1046528   ;;  %v8554_v42 = vld [vmem:[#allocation16_spill] sm:$0xff] }
 0x26a   : >> { %4652 = vmatpush3.bf16.msra.mxu0 %v7227_v38  ;;  %4670 = vmatpush3.bf16.msra.mxu1 %v7227_v38  ;;  %s7238_s22 = scalar_lea.vmem [#allocation3], %s4406_s29  ;;  %s1982_s30 = smul.u32 24, %s5405_s15  ;;  %vm1984_vm9 = vcmask 130048   ;;  %vm1987_vm10 = vcmask 126976  }
 0x26b   : >> { %4813 = vmatprep.subr.msk.bf16.mxu0 %vm1547_vm7, %v8552_v26  ;;  %4816 = vmatprep.subr.msk.bf16.mxu1 %vm1547_vm7, %v8552_v26  ;;  %s1518_s15 = sadd.s32 1, %s5405_s15  }
 0x26c   : >> { %s1983_s26 = scalar_lea.vmem [#allocation4], %s1982_s30  ;;  %p1515_p12 = scmp.ge.s32.totalorder %s1518_s15, 14  }
 0x26d   : > { %s5424_s12 = smov (%p1515_p12), 112   ;;  %s5425_s13 = smov (%p1515_p12), 96   ;;  %vm2493_vm11 = vcmask (%p1515_p12), 123904  }
 0x26e   : >> { %v4409_v20 = vld [vmem:[%s7238_s22 + $0x18] sm:$0xff]  ;;  %v4410_v21 = vld [vmem:[%s7238_s22 + $0x20] sm:$0xff]  ;;  %v4418_v18 = vld [vmem:[%s7238_s22 + $0x30] sm:$0xff]  ;;  %s7592_s14 = smov (%p1515_p12), 0  }
 0x26f   : >> { %v1539_v9 = vpack.c.bf16 %v4410_v21, %v4409_v20  ;;  %v4419_v52 = vld [vmem:[%s7238_s22 + $0x38] sm:$0xff]  ;;  %v4411_v13 = vld [vmem:[%s7238_s22 + $0x28] sm:$0x7f]  ;;  %v4420_v25 = vld [vmem:[%s7238_s22 + $0x40] sm:$0x7f] }
 0x270   : >> { %v1662_v29 = vpack.c.bf16 %v4419_v52, %v4418_v18  ;;  %v1540_v50 = vpack.c.bf16 %v4411_v13, %v4411_v13  ;;  %v1663_v27 = vpack.c.bf16 %v4420_v25, %v4420_v25  ;;  %v1528_v32 = vld [vmem:[%s7238_s22] sm:$0xff]  ;;  %v1529_v31 = vld [vmem:[%s7238_s22 + $0x8] sm:$0xff]  ;;  %v1530_v34 = vld [vmem:[%s7238_s22 + $0x10] sm:$0x7f] }
 0x271   : >> { %4653 = vmatprep.mubr.msk.bf16.mxu0 %vm660_vm4, %v1539_v9  ;;  %v1531_v37 = vpack.c.bf16 %v1529_v31, %v1528_v32  ;;  %v1532_v14 = vpack.c.bf16 %v1530_v34, %v1530_v34  ;;  %v4429_v22 = vld [vmem:[%s7238_s22 + $0x48] sm:$0xff]  ;;  %v4430_v12 = vld [vmem:[%s7238_s22 + $0x50] sm:$0xff]  ;;  %v4431_v8 = vld [vmem:[%s7238_s22 + $0x58] sm:$0x7f] }
 0x272   : >> { %4671 = vmatprep.mubr.msk.bf16.mxu1 %vm660_vm4, %v1662_v29  ;;  %4654 = vmatmul.mubr.msk.bf16.vlgmr.msra.gmra.mrb[0].mxu0 %vm660_vm4, %v1540_v50  ;;  %v1874_v30 = vpack.c.bf16 %v4430_v12, %v4429_v22  ;;  %v1875_v1 = vpack.c.bf16 %v4431_v8, %v4431_v8 }
 0x273   : >> { %4658 = vmatpush3.bf16.msra.mxu0 %v7248_v33  ;;  %4672 = vmatmul.mubr.msk.bf16.vlgmr.msra.gmra.mrb[0].mxu1 %vm660_vm4, %v1663_v27 }
 0x274   : >> { %4676 = vmatpush3.bf16.msra.mxu1 %v7248_v33  ;;  %4659 = vmatprep.mubr.msk.bf16.mxu0 %vm660_vm4, %v1531_v37 }
 0x275   : >> { %4814 = vmatprep.subr.msk.bf16.mxu0 %vm1547_vm7, %v8553_v36  ;;  %4677 = vmatprep.mubr.msk.bf16.mxu1 %vm660_vm4, %v1539_v9 }
 0x276   : >> { %4817 = vmatprep.subr.msk.bf16.mxu1 %vm1547_vm7, %v8553_v36 }
 0x27e   : >> { %4660 = vmatmul.mubr.msk.bf16.vlgmr.msra.gmra.mrb[0].mxu0 %vm660_vm4, %v1532_v14 }
 0x27f   : >> { %4664 = vmatpush3.bf16.msra.mxu0 %v7269_v63  ;;  %4678 = vmatmul.mubr.msk.bf16.vlgmr.msra.gmra.mrb[0].mxu1 %vm660_vm4, %v1540_v50 }
 0x280   : >> { %4682 = vmatpush3.bf16.msra.mxu1 %v7269_v63  ;;  %4665 = vmatprep.mubr.msk.bf16.mxu0 %vm660_vm4, %v1662_v29 }
 0x281   : >> { %4683 = vmatprep.mubr.msk.bf16.mxu1 %vm660_vm4, %v1874_v30 }
 0x28a   : >> { %4666 = vmatmul.mubr.msk.bf16.vlgmr.msra.gmra.mrb[0].mxu0 %vm660_vm4, %v1663_v27 }
 0x28b   : >> { %4684 = vmatmul.mubr.msk.bf16.vlgmr.msra.gmra.mrb[0].mxu1 %vm660_vm4, %v1875_v1 }
 0x35d   : >> { %v4667_v48 = vpop.f32.mrb[0].mxu0 }
 0x35e   : >> { %v7280_v56 = vpop.f32.mrb[0].mxu1  ;;  %v1707_v46 = vpop.f32.mrb[1].mxu0  ;;  %v1752_v24 = vrot.slane %v4667_v48, 2  ;;  %v1734_v44 = vrot.slane %v4667_v48, 1  ;;  %v1726_v26 = vadd.f32 %v4667_v48, %v8554_v42 }
 0x35f   : >> { %v1916_v4 = vpop.f32.mrb[1].mxu1  ;;  %v4668_v0 = vpop.f32.mrb[2].mxu0  ;;  %v1942_v55 = vrot.slane %v7280_v56, 1  ;;  %v1959_v60 = vrot.slane %v7280_v56, 2  ;;  %v1731_v39 = vrot.slane %v1707_v46, 1  ;;  %v1749_v53 = vrot.slane %v1707_v46, 2 }
 0x360   : >> { %v4686_v62 = vpop.f32.mrb[2].mxu1  ;;  %1758 = vrot.lane.b32.xlu0 %v1752_v24, %s5422_s24  ;;  %1740 = vrot.lane.b32.xlu1 %v1734_v44, %s5423_s25  ;;  %v1710_v16 = vpop.f32.mrb[3].mxu0  ;;  %v1939_v40 = vrot.slane %v1916_v4, 1  ;;  %v1956_v59 = vrot.slane %v1916_v4, 2  ;;  %v1724_v25 = vadd.f32 %v8554_v42, %v1707_v46  ;;  %v1933_v29 = vadd.f32 %v8554_v42, %v1916_v4 }
 0x361   : >> { %v1919_v61 = vpop.f32.mrb[3].mxu1  ;;  %v1732_v10 = vrot.slane %v1710_v16, 1  ;;  %v1750_v6 = vrot.slane %v1710_v16, 2  ;;  %v1725_v9 = vadd.f32 %v8554_v42, %v1710_v16  ;;  %v1935_v22 = vadd.f32 %v7280_v56, %v8554_v42 }
 0x362   : >> { %v1940_v17 = vrot.slane %v1919_v61, 1  ;;  %v1957_v41 = vrot.slane %v1919_v61, 2  ;;  %v1934_v14 = vadd.f32 %v8554_v42, %v1919_v61 }
 0x363   : >> { %v1733_v11 = vsel %vm1730_vm8, %v1731_v39, %v1732_v10  ;;  %v1735_v35 = vsel %vm1730_vm8, %v1732_v10, %v1734_v44  ;;  %v1753_v23 = vsel %vm462_vm1, %v1750_v6, %v1752_v24  ;;  %v1751_v51 = vsel %vm462_vm1, %v1749_v53, %v1750_v6 }
 0x364   : >> { %1948 = vrot.lane.b32.xlu1 %v1942_v55, %s5423_s25  ;;  %1736 = vrot.lane.b32.xlu0 %v1733_v11, %s5423_s25  ;;  %v1941_v15 = vsel %vm1730_vm8, %v1939_v40, %v1940_v17  ;;  %v1943_v47 = vsel %vm1730_vm8, %v1940_v17, %v1942_v55  ;;  %v1958_v7 = vsel %vm462_vm1, %v1956_v59, %v1957_v41 }
 0x365   : >> { %v1960_v49 = vsel %vm462_vm1, %v1957_v41, %v1959_v60 }
 0x368   : >> { %1944 = vrot.lane.b32.xlu1 %v1941_v15, %s5423_s25  ;;  %1738 = vrot.lane.b32.xlu0 %v1735_v35, %s5423_s25 }
 0x36c   : >> { %1756 = vrot.lane.b32.xlu1 %v1753_v23, %s5422_s24  ;;  %1946 = vrot.lane.b32.xlu0 %v1943_v47, %s5423_s25 }
 0x370   : >> { %1961 = vrot.lane.b32.xlu1 %v1958_v7, %s5422_s24  ;;  %1754 = vrot.lane.b32.xlu0 %v1751_v51, %s5422_s24 }
 0x374   : >> { %1965 = vrot.lane.b32.xlu1 %v1959_v60, %s5422_s24  ;;  %1963 = vrot.lane.b32.xlu0 %v1960_v49, %s5422_s24 }
 0x3d2   : >> { %v1759_v57 = vpop.permute.xlu0 %1758  ;;  %v1741_v5 = vpop.permute.xlu1 %1740 }
 0x3d3   : >> { %v1747_v18 = vadd.f32 %v1741_v5, %v1726_v26 }
 0x3d5   : >> { %v1765_v50 = vadd.f32 %v1759_v57, %v1747_v18  ;;  %v8567_v18 = vld [vmem:[#allocation13_spill] sm:$0xff] (%p1515_p12) }
 0x3d6   : >> { %v1949_v54 = vpop.permute.xlu1 %1948  ;;  %v1737_v19 = vpop.permute.xlu0 %1736  ;;  %4819 = vmatprep.subr.msk.bf16.mxu0 (%p1515_p12), %vm1547_vm7, %v8567_v18 }
 0x3d7   : >> { %v1745_v32 = vadd.f32 %v1737_v19, %v1724_v25  ;;  %v1768_v8 = vmul.f32 0.01, %v1765_v50  ;;  %v1955_v1 = vadd.f32 %v1949_v54, %v1935_v22  ;;  %v8568_v25 = vld [vmem:[#allocation14_spill] sm:$0xff] (%p1515_p12)  ;;  %4694 = vmatpush3.bf16.msra.mxu0 (%p1515_p12), %v7248_v33 }
 0x3d8   : > { %4818 = vmatprep.subr.msk.bf16.mxu1 (%p1515_p12), %vm1547_vm7, %v8568_v25 }
 0x3d9   : >> { %v1771_v39 = vmax.f32 %v1765_v50, %v1768_v8  ;;  %4688 = vmatpush3.bf16.msra.mxu1 (%p1515_p12), %v7227_v38  ;;  %v2137_v38 = vld [vmem:[#allocation3 + $0x2e0] sm:$0x7f] (%p1515_p12) }
 0x3da   : >> { %v1945_v20 = vpop.permute.xlu1 %1944  ;;  %v1739_v21 = vpop.permute.xlu0 %1738  ;;  %v2139_v33 = vpack.c.bf16 (%p1515_p12), %v2137_v38, %v2137_v38 }
 0x3db   : >> { %v1746_v27 = vadd.f32 %v1739_v21, %v1725_v9  ;;  %v1953_v31 = vadd.f32 %v1945_v20, %v1933_v29  ;;  %v1997_v23 = vmul.f32 %v1771_v39, %v1771_v39  ;;  %v2008_v9 = vld [vmem:[#allocation3 + $0x2a0] sm:$0xff] (%p1515_p12) }
 0x3de   : >> { %v1757_v52 = vpop.permute.xlu1 %1756  ;;  %v1947_v13 = vpop.permute.xlu0 %1946 }
 0x3df   : >> { %v1764_v37 = vadd.f32 %v1757_v52, %v1746_v27  ;;  %v1954_v48 = vadd.f32 %v1947_v13, %v1934_v14  ;;  %v2009_v52 = vld [vmem:[#allocation3 + $0x2a8] sm:$0xff] (%p1515_p12)  ;;  %v2010_v13 = vld [vmem:[#allocation3 + $0x2b0] sm:$0x7f] (%p1515_p12)  ;;  %v2014_v27 = vld [vmem:[#allocation3 + $0x2b8] sm:$0xff] (%p1515_p12) }
 0x3e0   : > { %v2011_v29 = vpack.c.bf16 (%p1515_p12), %v2009_v52, %v2008_v9  ;;  %v2012_v50 = vpack.c.bf16 (%p1515_p12), %v2010_v13, %v2010_v13 }
 0x3e1   : >> { %v1767_v44 = vmul.f32 0.01, %v1764_v37 }
 0x3e2   : >> { %v1962_v36 = vpop.permute.xlu1 %1961  ;;  %v1755_v34 = vpop.permute.xlu0 %1754  ;;  %4695 = vmatprep.mubr.msk.bf16.mxu0 (%p1515_p12), %vm660_vm4, %v2011_v29 }
 0x3e3   : >> { %v1970_v12 = vadd.f32 %v1962_v36, %v1953_v31  ;;  %v1763_v30 = vadd.f32 %v1755_v34, %v1745_v32  ;;  %v1770_v59 = vmax.f32 %v1764_v37, %v1767_v44  ;;  %v2015_v32 = vld [vmem:[#allocation3 + $0x2c0] sm:$0xff] (%p1515_p12)  ;;  %v2016_v31 = vld [vmem:[#allocation3 + $0x2c8] sm:$0x7f] (%p1515_p12)  ;;  %4696 = vmatmul.mubr.msk.bf16.vlgmr.msra.gmra.mrb[0].mxu0 (%p1515_p12), %vm660_vm4, %v2012_v50 }
 0x3e4   : > { %v8569_v37 = vld [vmem:[#allocation15_spill] sm:$0xff] (%p1515_p12) }
 0x3e5   : >> { %v1973_v46 = vmul.f32 0.01, %v1970_v12  ;;  %v1766_v24 = vmul.f32 0.01, %v1763_v30  ;;  %v1996_v57 = vmul.f32 %v1770_v59, %v1770_v59  ;;  %4820 = vmatprep.subr.msk.bf16.mxu0 (%p1515_p12), %vm1547_vm7, %v8569_v37 }
 0x3e6   : >> { %v1966_v4 = vpop.permute.xlu1 %1965  ;;  %v1964_v0 = vpop.permute.xlu0 %1963  ;;  %4700 = vmatpush3.bf16.msra.mxu0 (%p1515_p12), %v7269_v63 }
 0x3e7   : >> { %v1976_v55 = vmax.f32 %v1970_v12, %v1973_v46  ;;  %v1769_v60 = vmax.f32 %v1763_v30, %v1766_v24  ;;  %v1972_v62 = vadd.f32 %v1966_v4, %v1955_v1  ;;  %v1971_v16 = vadd.f32 %v1964_v0, %v1954_v48 }
 0x3e9   : >> { %v1998_v53 = vmul.f32 %v1976_v55, %v1976_v55  ;;  %v1979_v61 = vmax.f32 %v1769_v60, %v1976_v55  ;;  %v1989_v56 = vadd.f32 %v1976_v55, %v1769_v60  ;;  %v1995_v10 = vmul.f32 %v1769_v60, %v1769_v60 }
 0x3ea   : >> { %v1975_v6 = vmul.f32 0.01, %v1972_v62  ;;  %v1974_v40 = vmul.f32 0.01, %v1971_v16 }
 0x3eb   : >> { %1985 = vst.msk [vmem:[%s1983_s26] sm:$0xff] %vm1984_vm9, %v1979_v61  ;;  %v7308_v3 = vadd.f32 %v5401_v3, %v1989_v56   ;;  %v2001_v41 = vadd.f32 %v1998_v53, %v1995_v10  ;;  %v8570_v56 = vld [vmem:[#allocation16_spill] sm:$0xff] (%p1515_p12) }
 0x3ec   : >> { %v1978_v11 = vmax.f32 %v1972_v62, %v1975_v6  ;;  %v1977_v35 = vmax.f32 %v1971_v16, %v1974_v40 }
 0x3ed   : >> { %v8555_v17 = vmov %v7308_v3  ;;  %v7311_v43 = vadd.f32 %v5389_v43, %v2001_v41  }
 0x3ee   : >> { %v1981_v15 = vmax.f32 %v1771_v39, %v1978_v11  ;;  %v1991_v47 = vadd.f32 %v1978_v11, %v1771_v39  ;;  %v2000_v7 = vmul.f32 %v1978_v11, %v1978_v11  ;;  %v1980_v49 = vmax.f32 %v1770_v59, %v1977_v35 }
 0x3ef   : >> { %v8556_v51 = vmov %v7311_v43  ;;  %v1990_v5 = vadd.f32 %v1977_v35, %v1770_v59  ;;  %v1999_v54 = vmul.f32 %v1977_v35, %v1977_v35 }
 0x3f0   : >> { %1988 = vst.msk [vmem:[%s1983_s26 + $0x10] sm:$0x1f] %vm1987_vm10, %v1981_v15  ;;  %v7315_v2 = vadd.f32 %v5393_v2, %v1991_v47   ;;  %v2003_v3 = vadd.f32 %v2000_v7, %v1997_v23  ;;  %v8563_v43 = vmov %v8556_v51  ;;  %1517 = sbr.rel (!%p1515_p12) target bundleno = 616 (0x268), region = 415 }
 0x3f1   : >> { %1986 = vst.msk [vmem:[%s1983_s26 + $0x8] sm:$0xff] %vm1984_vm9, %v1980_v49  ;;  %v7319_v28 = vadd.f32 %v5397_v28, %v1990_v5   ;;  %v2002_v26 = vadd.f32 %v1999_v54, %v1996_v57  ;;  %v2135_v43 = vld [vmem:[#allocation3 + $0x2d0] sm:$0xff] (%p1515_p12) }
 0x3f2   : >> { %v8557_v19 = vmov %v7315_v2  ;;  %v7322_v58 = vadd.f32 %v5381_v58, %v2003_v3   ;;  %v8566_v3 = vmov %v8555_v17 }
 0x3f3   : >> { %v8558_v42 = vmov %v7319_v28  ;;  %v7325_v45 = vadd.f32 %v5385_v45, %v2002_v26   ;;  %v8564_v2 = vmov %v8557_v19 }
 0x3f4   : >> { %v8559_v20 = vmov %v7322_v58  ;;  %v8565_v28 = vmov %v8558_v42  ;;  %v2136_v2 = vld [vmem:[#allocation3 + $0x2d8] sm:$0xff] (%p1515_p12) }
 0x3f5   : >> { %v8560_v21 = vmov %v7325_v45  ;;  %v8561_v58 = vmov %v8559_v20  ;;  %v2138_v28 = vpack.c.bf16 (%p1515_p12), %v2136_v2, %v2135_v43 }
 0x3f6   : >> { %v8562_v45 = vmov %v8560_v21  ;;  %v2017_v58 = vpack.c.bf16 (%p1515_p12), %v2015_v32, %v2014_v27 }
 0x3f7   : > { %v2018_v45 = vpack.c.bf16 %v2016_v31, %v2016_v31  ;;  %4701 = vmatprep.mubr.msk.bf16.mxu0 %vm660_vm4, %v2138_v28 }
 0x3f8   : > { %4689 = vmatprep.mubr.msk.bf16.mxu1 %vm660_vm4, %v2017_v58  ;;  %4702 = vmatmul.mubr.msk.bf16.vlgmr.msra.gmra.mrb[0].mxu0 %vm660_vm4, %v2139_v33 }
 0x3f9   : > { %4690 = vmatmul.mubr.msk.bf16.vlgmr.msra.gmra.mrb[0].mxu1 %vm660_vm4, %v2018_v45 }
 0x4cb   : > { %v4703_v12 = vpop.f32.mrb[0].mxu0 }
 0x4cc   : > { %v4691_v36 = vpop.f32.mrb[0].mxu1  ;;  %v2183_v8 = vpop.f32.mrb[1].mxu0 }
 0x4cd   : > { %v2063_v34 = vpop.f32.mrb[1].mxu1  ;;  %v4757_v30 = vadd.f32 %v4703_v12, %v4691_v36  ;;  %v4704_v48 = vpop.f32.mrb[2].mxu0 }
 0x4ce   : > { %v4692_v14 = vpop.f32.mrb[2].mxu1  ;;  %v4758_v1 = vadd.f32 %v2183_v8, %v2063_v34  ;;  %v2186_v46 = vpop.f32.mrb[3].mxu0 }
 0x4cf   : > { %v2066_v22 = vpop.f32.mrb[3].mxu1  ;;  %v2210_v24 = vrot.slane %v4757_v30, 1  ;;  %v2228_v44 = vrot.slane %v4757_v30, 2  ;;  %v2202_v59 = vadd.f32 %v4757_v30, %v8570_v56 }
 0x4d0   : > { %v4759_v63 = vadd.f32 %v2186_v46, %v2066_v22  ;;  %v2225_v4 = vrot.slane %v4758_v1, 2  ;;  %v2207_v55 = vrot.slane %v4758_v1, 1  ;;  %v2200_v10 = vadd.f32 %v4758_v1, %v8570_v56 }
 0x4d1   : > { %2216 = vrot.lane.b32.xlu1 %v2210_v24, %s5424_s12 }
 0x4d2   : > { %v2226_v0 = vrot.slane %v4759_v63, 2  ;;  %v2208_v60 = vrot.slane %v4759_v63, 1  ;;  %v2201_v49 = vadd.f32 %v4759_v63, %v8570_v56  ;;  %v7423_v56 = vld [vmem:[#allocation4 + $0x10] ss:$2 sm:$0x3] }
 0x4d4   : > { %v2227_v62 = vsel %vm462_vm1, %v2225_v4, %v2226_v0  ;;  %v2209_v16 = vsel %vm1730_vm8, %v2207_v55, %v2208_v60  ;;  %v2211_v39 = vsel %vm1730_vm8, %v2208_v60, %v2210_v24  ;;  %v2229_v53 = vsel %vm462_vm1, %v2226_v0, %v2228_v44  ;;  %v7390_v4 = vld [vmem:[%s7908_s5 + $0x4] sm:$0xf]  ;;  %v7395_v0 = vld [vmem:[%s7908_s5 + $0x8] sm:$0xf]  ;;  %v7400_v55 = vld [vmem:[%s7908_s5 + $0xc] sm:$0xf] }
 0x4d5   : > { %2230 = vrot.lane.b32.xlu1 %v2227_v62, %s5425_s13  ;;  %2212 = vrot.lane.b32.xlu0 %v2209_v16, %s5424_s12  ;;  %v7405_v60 = vld [vmem:[%s7908_s5 + $0x10] sm:$0xf]  ;;  %v7410_v62 = vld [vmem:[%s7908_s5 + $0x14] sm:$0xf] }
 0x4d6   : > { %v7415_v16 = vld [vmem:[%s7909_s6] ss:$0 sm:$0xff] }
 0x4d9   : > { %2234 = vrot.lane.b32.xlu1 %v2228_v44, %s5425_s13  ;;  %2214 = vrot.lane.b32.xlu0 %v2211_v39, %s5424_s12  ;;  %v7385_v44 = vld [vmem:[%s7908_s5] sm:$0xf] }
 0x4dd   : > { %2232 = vrot.lane.b32.xlu0 %v2229_v53, %s5425_s13 }
 0x543   : > { %v2217_v61 = vpop.permute.xlu1 %2216 }
 0x544   : > { %v2223_v11 = vadd.f32 %v2217_v61, %v2202_v59  ;;  %v7421_v61 = vld [vmem:[#allocation4] ss:$2 sm:$0xff]  ;;  %v7431_v59 = vld [vmem:[#allocation4 + $0x19] ss:$2 sm:$0xff] }
 0x547   : > { %v2231_v6 = vpop.permute.xlu1 %2230  ;;  %v2213_v40 = vpop.permute.xlu0 %2212 }
 0x548   : > { %v2221_v41 = vadd.f32 %v2213_v40, %v2200_v10  ;;  %v7425_v10 = vld [vmem:[#allocation4 + $0x18] ss:$2 sm:$0xff]  ;;  %v7429_v40 = vld [vmem:[#allocation4 + $0x11] ss:$2 sm:$0x3] }
 0x54a   : > { %v2239_v35 = vadd.f32 %v2231_v6, %v2221_v41  ;;  %v7427_v6 = vld [vmem:[#allocation4 + $0x1] ss:$2 sm:$0xff]  ;;  %v7433_v41 = vld [vmem:[#allocation4 + $0x28] ss:$2 sm:$0x3] }
 0x54b   : > { %v2235_v23 = vpop.permute.xlu1 %2234  ;;  %v2215_v15 = vpop.permute.xlu0 %2214 }
 0x54c   : > { %v2242_v47 = vmul.f32 0.01, %v2239_v35  ;;  %v2241_v7 = vadd.f32 %v2235_v23, %v2223_v11  ;;  %v2222_v54 = vadd.f32 %v2215_v15, %v2201_v49  ;;  %v7435_v11 = vld [vmem:[#allocation4 + $0x30] ss:$2 sm:$0xff]  ;;  %v7447_v49 = vld [vmem:[#allocation4 + $0x49] ss:$2 sm:$0xff] }
 0x54d   : > { %v7439_v23 = vld [vmem:[#allocation4 + $0x48] ss:$2 sm:$0xff]  ;;  %v7441_v15 = vld [vmem:[#allocation4 + $0x29] ss:$2 sm:$0x3] }
 0x54e   : > { %v2245_v57 = vmax.f32 %v2239_v35, %v2242_v47  ;;  %v2244_v5 = vmul.f32 0.01, %v2241_v7  ;;  %v7437_v35 = vld [vmem:[#allocation4 + $0x40] ss:$2 sm:$0x3] }
 0x54f   : > { %v2233_v3 = vpop.permute.xlu0 %2232  ;;  %v7443_v47 = vld [vmem:[#allocation4 + $0x31] ss:$2 sm:$0xff] }
 0x550   : > { %v2247_v26 = vmax.f32 %v2241_v7, %v2244_v5  ;;  %v2240_v18 = vadd.f32 %v2233_v3, %v2222_v54  ;;  %v2251_v52 = vmul.f32 %v2245_v57, %v2245_v57  ;;  %v2248_v25 = vadd.f32 %v2245_v57, %v8555_v17  ;;  %v7445_v7 = vld [vmem:[#allocation4 + $0x41] ss:$2 sm:$0x3]  ;;  %v7449_v57 = vld [vmem:[#allocation4 + $0x58] ss:$2 sm:$0x3] }
 0x551   : > { %v7451_v5 = vld [vmem:[#allocation4 + $0x60] ss:$2 sm:$0xff]  ;;  %v7453_v54 = vld [vmem:[#allocation4 + $0x70] ss:$2 sm:$0x3] }
 0x552   : > { %v2243_v9 = vmul.f32 0.01, %v2240_v18  ;;  %v2253_v29 = vmul.f32 %v2247_v26, %v2247_v26  ;;  %v2250_v32 = vadd.f32 %v2247_v26, %v8557_v19  ;;  %v2254_v31 = vadd.f32 %v2251_v52, %v8556_v51  ;;  %v7455_v3 = vld [vmem:[#allocation4 + $0x78] ss:$2 sm:$0xff]  ;;  %v7463_v52 = vld [vmem:[#allocation4 + $0x79] ss:$2 sm:$0xff] }
 0x553   : > { %v2258_v37 = vsel %vm1984_vm9, %v2248_v25, 0.0  ;;  %v7457_v26 = vld [vmem:[#allocation4 + $0x59] ss:$2 sm:$0x3]  ;;  %v7467_v25 = vld [vmem:[#allocation4 + $0x90] ss:$2 sm:$0xff] }
 0x554   : > { %v2246_v13 = vmax.f32 %v2240_v18, %v2243_v9  ;;  %v2256_v43 = vadd.f32 %v2253_v29, %v8559_v20  ;;  %v2262_v28 = vsel %vm1987_vm10, %v2250_v32, 0.0  ;;  %v2274_v17 = vsel %vm1984_vm9, %v2254_v31, 0.0  ;;  %v7459_v18 = vld [vmem:[#allocation4 + $0x61] ss:$2 sm:$0xff]  ;;  %v7475_v32 = vld [vmem:[#allocation4 + $0x91] ss:$2 sm:$0xff] }
 0x555   : > { %v7461_v9 = vld [vmem:[#allocation4 + $0x71] ss:$2 sm:$0x3]  ;;  %v7469_v29 = vld [vmem:[#allocation4 + $0xa0] ss:$2 sm:$0x3] }
 0x556   : > { %v2249_v50 = vadd.f32 %v2246_v13, %v8558_v42  ;;  %v2252_v27 = vmul.f32 %v2246_v13, %v2246_v13  ;;  %v2277_v19 = vsel %vm1987_vm10, %v2256_v43, 0.0  ;;  %v7465_v13 = vld [vmem:[#allocation4 + $0x88] ss:$2 sm:$0x3] }
 0x557   : > { %v7477_v31 = vld [vmem:[#allocation4 + $0xa1] ss:$2 sm:$0x3]  ;;  %v7485_v43 = vld [vmem:[#allocation4 + $0xd0] ss:$2 sm:$0x3] }
 0x558   : > { %v2259_v58 = vsel %vm1984_vm9, %v2249_v50, 0.0  ;;  %v2255_v45 = vadd.f32 %v2252_v27, %v8560_v21  ;;  %v7471_v50 = vld [vmem:[#allocation4 + $0xa8] ss:$2 sm:$0xff]  ;;  %v7473_v27 = vld [vmem:[#allocation4 + $0x89] ss:$2 sm:$0x3] }
 0x559   : > { %v2260_v2 = vadd.f32 %v2259_v58, %v2258_v37  ;;  %v7479_v37 = vld [vmem:[#allocation4 + $0xa9] ss:$2 sm:$0xff]  ;;  %v7481_v58 = vld [vmem:[#allocation4 + $0xb8] ss:$2 sm:$0x3] }
 0x55a   : > { %v2275_v42 = vsel %vm1984_vm9, %v2255_v45, 0.0  ;;  %v7483_v45 = vld [vmem:[#allocation4 + $0xc0] ss:$2 sm:$0xff] }
 0x55b   : > { %v2263_v38 = vadd.f32 %v2262_v28, %v2260_v2  ;;  %v2276_v33 = vadd.f32 %v2275_v42, %v2274_v17  ;;  %v7487_v2 = vld [vmem:[#allocation4 + $0xb9] ss:$2 sm:$0x3]  ;;  %v7489_v28 = vld [vmem:[#allocation4 + $0xc1] ss:$2 sm:$0xff] }
 0x55c   : > { %v7491_v17 = vld [vmem:[#allocation4 + $0xd1] ss:$2 sm:$0x3]  ;;  %v7493_v42 = vld [vmem:[#allocation4 + $0xd8] ss:$2 sm:$0xff] }
 0x55d   : > { %2264 = vadd.xlane.f32.xlu0 %v2263_v38  ;;  %v2278_v51 = vadd.f32 %v2277_v19, %v2276_v33  ;;  %v7495_v38 = vld [vmem:[#allocation4 + $0xe8] ss:$2 sm:$0x3]  ;;  %v7497_v33 = vld [vmem:[#allocation4 + $0xf0] ss:$2 sm:$0xff] }
 0x55e   : > { %v7499_v19 = vld [vmem:[#allocation4 + $0x100] ss:$2 sm:$0x3] }
 0x55f   : > { %2279 = vadd.xlane.f32.xlu1 %v2278_v51  ;;  %v7501_v51 = vld [vmem:[#allocation4 + $0xd9] ss:$2 sm:$0xff] }
 0x5ea   : > { %v2265_v36 = vpop.xlane.xlu0 %2264 }
 0x5eb   : > { %v2266_v34 = vrot.slane %v2265_v36, 4 }
 0x5ec   : > { %v2280_v14 = vpop.xlane.xlu1 %2279 }
 0x5ed   : > { %v2267_v21 = vadd.f32 %v2266_v34, %v2265_v36  ;;  %v2281_v22 = vrot.slane %v2280_v14, 4  ;;  %v7503_v36 = vld [vmem:[#allocation4 + $0xe9] ss:$2 sm:$0x3]  ;;  %v2406_v34 = vmax.f32 %v7421_v61, %v7427_v6  ;;  %v2414_v6 = vmax.f32 %v7451_v5, %v7459_v18 }
 0x5ee   : > { %v2395_v61 = vld [vmem:[#allocation4 + $0x109] ss:$2 sm:$0xff]  ;;  %v2421_v5 = vmax.f32 %v7481_v58, %v7487_v2  ;;  %v2425_v18 = vmax.f32 %v7495_v38, %v7503_v36 }
 0x5ef   : > { %v2268_v20 = vrot.slane %v2267_v21, 2  ;;  %v2282_v12 = vadd.f32 %v2281_v22, %v2280_v14  ;;  %v2407_v14 = vmax.f32 %v7423_v56, %v7429_v40  ;;  %v7511_v22 = vld [vmem:[#allocation4 + $0x108] ss:$2 sm:$0xff]  ;;  %v2397_v56 = vld [vmem:[#allocation4 + $0x119] ss:$2 sm:$0x3]  ;;  %v2415_v40 = vmax.f32 %v7453_v54, %v7461_v9 }
 0x5f0   : > { %v2422_v54 = vmax.f32 %v7483_v45, %v7489_v28 }
 0x5f1   : > { %v2283_v30 = vrot.slane %v2282_v12, 2  ;;  %v2269_v8 = vadd.f32 %v2268_v20, %v2267_v21  ;;  %v2408_v21 = vmax.f32 %v7425_v10, %v7431_v59  ;;  %v7513_v20 = vld [vmem:[#allocation4 + $0x118] ss:$2 sm:$0x3]  ;;  %v2413_v10 = vmax.f32 %v7449_v57, %v7457_v26 }
 0x5f2   : > { %v2416_v59 = vmax.f32 %v7455_v3, %v7463_v52  ;;  %v2405_v57 = vld [vmem:[#allocation4 + $0x149] ss:$2 sm:$0x3]  ;;  %v2423_v3 = vmax.f32 %v7485_v43, %v7491_v17  ;;  %v2424_v26 = vmax.f32 %v7493_v42, %v7501_v51 }
 0x5f3   : > { %v2284_v1 = vadd.f32 %v2283_v30, %v2282_v12  ;;  %v2270_v48 = vrot.slane %v2269_v8, 1  ;;  %v7515_v12 = vld [vmem:[#allocation4 + $0x120] ss:$2 sm:$0xff]  ;;  %v7517_v30 = vld [vmem:[#allocation4 + $0x130] ss:$2 sm:$0x3] }
 0x5f5   : > { %v2271_v46 = vadd.f32 %v2270_v48, %v2269_v8  ;;  %v2285_v24 = vrot.slane %v2284_v1, 1  ;;  %v2391_v8 = vld [vmem:[#allocation4 + $0xf1] ss:$2 sm:$0xff]  ;;  %v2409_v48 = vmax.f32 %v7433_v41, %v7441_v15  ;;  %v2399_v41 = vld [vmem:[#allocation4 + $0x121] ss:$2 sm:$0xff]  ;;  %v2419_v15 = vmax.f32 %v7469_v29, %v7477_v31 }
 0x5f6   : > { %v2426_v9 = vmax.f32 %v7497_v33, %v2391_v8  ;;  %v2430_v29 = vmax.f32 %v7515_v12, %v2399_v41 }
 0x5f7   : > { %4828 = vpush %v2271_v46  ;;  %v2286_v63 = vadd.f32 %v2285_v24, %v2284_v1  ;;  %v2393_v1 = vld [vmem:[#allocation4 + $0x101] ss:$2 sm:$0x3]  ;;  %v2410_v46 = vmax.f32 %v7435_v11, %v7443_v47  ;;  %v2411_v24 = vmax.f32 %v7437_v35, %v7445_v7  ;;  %v2401_v11 = vld [vmem:[#allocation4 + $0x131] ss:$2 sm:$0x3]  ;;  %v2417_v35 = vmax.f32 %v7465_v13, %v7473_v27 }
 0x5f8   : > { %v2420_v47 = vmax.f32 %v7471_v50, %v7479_v37  ;;  %v2427_v52 = vmax.f32 %v7499_v19, %v2393_v1  ;;  %v2428_v13 = vmax.f32 %v7511_v22, %v2395_v61  ;;  %v2431_v50 = vmax.f32 %v7517_v30, %v2401_v11 }
 0x5f9   : > { %4830 = vpush %v2286_v63  ;;  %v2412_v63 = vmax.f32 %v7439_v23, %v7447_v49  ;;  %v2418_v23 = vmax.f32 %v7467_v25, %v7475_v32  ;;  %v2403_v49 = vld [vmem:[#allocation4 + $0x139] ss:$2 sm:$0xff]  ;;  %v2429_v25 = vmax.f32 %v7513_v20, %v2397_v56 }
 0x628   : > { %s4829_s29 = spop %4828 }
 0x629   : > { %s7417_s22 = smul.f32 0.00010262726, %s4829_s29 }
 0x62a   : > { %s4831_s24 = spop %4830 }
 0x62b   : > { %s2289_s25 = smul.f32 %s7417_s22, %s7417_s22  ;;  %v2434_v7 = vstv %s7417_s22 }
 0x62c   : > { %s2288_s30 = smul.f32 0.00010262726, %s4831_s24  ;;  %v2435_v31 = vsub.f32 %v2406_v34, %v2434_v7  ;;  %v2436_v37 = vsub.f32 %v2407_v14, %v2434_v7  ;;  %v2437_v58 = vsub.f32 %v2408_v21, %v2434_v7  ;;  %v2438_v45 = vsub.f32 %v2409_v48, %v2434_v7 }
 0x62d   : > { %v2439_v43 = vsub.f32 %v2410_v46, %v2434_v7  ;;  %v2440_v2 = vsub.f32 %v2411_v24, %v2434_v7  ;;  %v2441_v28 = vsub.f32 %v2412_v63, %v2434_v7  ;;  %v2442_v17 = vsub.f32 %v2413_v10, %v2434_v7 }
 0x62e   : > { %s2290_s26 = ssub.f32 %s2288_s30, %s2289_s25  ;;  %v2443_v42 = vsub.f32 %v2414_v6, %v2434_v7  ;;  %v2444_v38 = vsub.f32 %v2415_v40, %v2434_v7  ;;  %v2445_v33 = vsub.f32 %v2416_v59, %v2434_v7  ;;  %v2446_v19 = vsub.f32 %v2417_v35, %v2434_v7 }
 0x62f   : > { %v2447_v51 = vsub.f32 %v2418_v23, %v2434_v7  ;;  %v2448_v36 = vsub.f32 %v2419_v15, %v2434_v7  ;;  %v2449_v22 = vsub.f32 %v2420_v47, %v2434_v7  ;;  %v2450_v20 = vsub.f32 %v2421_v5, %v2434_v7 }
 0x630   : > { %s2291_s12 = sadd.f32 1e-05, %s2290_s26  ;;  %v2451_v12 = vsub.f32 %v2422_v54, %v2434_v7  ;;  %v2452_v30 = vsub.f32 %v2423_v3, %v2434_v7  ;;  %v2453_v8 = vsub.f32 %v2424_v26, %v2434_v7  ;;  %v2454_v34 = vsub.f32 %v2425_v18, %v2434_v7 }
 0x631   : > { %v2455_v1 = vsub.f32 %v2426_v9, %v2434_v7  ;;  %v2456_v14 = vsub.f32 %v2427_v52, %v2434_v7  ;;  %v2457_v21 = vsub.f32 %v2428_v13, %v2434_v7  ;;  %v2458_v48 = vsub.f32 %v2429_v25, %v2434_v7 }
 0x632   : > { %v2292_v39 = vstv %s2291_s12  ;;  %v2459_v46 = vsub.f32 %v2430_v29, %v2434_v7  ;;  %v2460_v24 = vsub.f32 %v2431_v50, %v2434_v7 }
 0x633   : > { %5097 = vrsqrt.f32 %v2292_v39  ;;  %v2347_v39 = vld [vmem:[#allocation4 + $0x138] ss:$2 sm:$0xff] }
 0x634   : > { %v2432_v27 = vmax.f32 %v2347_v39, %v2403_v49 }
 0x636   : > { %v2461_v63 = vsub.f32 %v2432_v27, %v2434_v7 }
 0x63d   : > { %v5098_v53 = vpop.eup %5097 }
 0x63e   : > { %4832 = vpush %v5098_v53  ;;  %v2349_v53 = vld [vmem:[#allocation4 + $0x148] ss:$2 sm:$0x3] }
 0x63f   : > { %v2433_v32 = vmax.f32 %v2349_v53, %v2405_v57 }
 0x641   : > { %v2462_v39 = vsub.f32 %v2433_v32, %v2434_v7 }
 0x66f   : > { %s4833_s13 = spop %4832 }
 0x670   : > { %v2463_v53 = vstv %s4833_s13 }
 0x671   : > { %v2464_v61 = vmul.f32 %v2463_v53, %v2435_v31  ;;  %v2465_v56 = vmul.f32 %v2463_v53, %v2436_v37  ;;  %v2466_v10 = vmul.f32 %v2463_v53, %v2437_v58  ;;  %v2467_v6 = vmul.f32 %v2463_v53, %v2438_v45 }
 0x672   : > { %v2468_v40 = vmul.f32 %v2463_v53, %v2439_v43  ;;  %v2469_v59 = vmul.f32 %v2463_v53, %v2440_v2  ;;  %v2470_v41 = vmul.f32 %v2463_v53, %v2441_v28  ;;  %v2471_v11 = vmul.f32 %v2463_v53, %v2442_v17 }
 0x673   : > { %v2472_v35 = vmul.f32 %v2463_v53, %v2443_v42  ;;  %v2473_v23 = vmul.f32 %v2463_v53, %v2444_v38  ;;  %v2474_v15 = vmul.f32 %v2463_v53, %v2445_v33  ;;  %v2475_v47 = vmul.f32 %v2463_v53, %v2446_v19  ;;  %2492 = vst.msk [vmem:[#allocation5] sm:$0xff] %vm1984_vm9, %v2464_v61 }
 0x674   : > { %2494 = vst.msk [vmem:[#allocation5 + $0x8] sm:$0x3] %vm2493_vm11, %v2465_v56  ;;  %2496 = vst.msk [vmem:[#allocation5 + $0x18] sm:$0x3] %vm2493_vm11, %v2467_v6  ;;  %v2476_v7 = vmul.f32 %v2463_v53, %v2447_v51  ;;  %v2477_v49 = vmul.f32 %v2463_v53, %v2448_v36  ;;  %v2478_v57 = vmul.f32 %v2463_v53, %v2449_v22  ;;  %v7588_v31 = vmov 0.0  }
 0x675   : > { %2495 = vst.msk [vmem:[#allocation5 + $0x10] sm:$0xff] %vm1984_vm9, %v2466_v10  ;;  %v2479_v5 = vmul.f32 %v2463_v53, %v2450_v20  ;;  %2497 = vst.msk [vmem:[#allocation5 + $0x20] sm:$0xff] %vm1984_vm9, %v2468_v40  ;;  %v2480_v54 = vmul.f32 %v2463_v53, %v2451_v12  ;;  %v2481_v3 = vmul.f32 %v2463_v53, %v2452_v30  ;;  %v7590_v37 = vmov 0.0  }
 0x676   : > { %2498 = vst.msk [vmem:[#allocation5 + $0x28] sm:$0x3] %vm2493_vm11, %v2469_v59  ;;  %2500 = vst.msk [vmem:[#allocation5 + $0x38] sm:$0x3] %vm2493_vm11, %v2471_v11  ;;  %v2482_v26 = vmul.f32 %v2463_v53, %v2453_v8  ;;  %v2483_v18 = vmul.f32 %v2463_v53, %v2454_v34  ;;  %v2484_v9 = vmul.f32 %v2463_v53, %v2455_v1 }
 0x677   : > { %2499 = vst.msk [vmem:[#allocation5 + $0x30] sm:$0xff] %vm1984_vm9, %v2470_v41  ;;  %2501 = vst.msk [vmem:[#allocation5 + $0x40] sm:$0xff] %vm1984_vm9, %v2472_v35  ;;  %v2485_v52 = vmul.f32 %v2463_v53, %v2456_v14  ;;  %v2486_v13 = vmul.f32 %v2463_v53, %v2457_v21  ;;  %v2487_v25 = vmul.f32 %v2463_v53, %v2458_v48 }
 0x678   : > { %2502 = vst.msk [vmem:[#allocation5 + $0x48] sm:$0x3] %vm2493_vm11, %v2473_v23  ;;  %2504 = vst.msk [vmem:[#allocation5 + $0x58] sm:$0x3] %vm2493_vm11, %v2475_v47  ;;  %v2488_v29 = vmul.f32 %v2463_v53, %v2459_v46  ;;  %v2489_v50 = vmul.f32 %v2463_v53, %v2460_v24  ;;  %v2490_v27 = vmul.f32 %v2463_v53, %v2461_v63 }
 0x679   : > { %2503 = vst.msk [vmem:[#allocation5 + $0x50] sm:$0xff] %vm1984_vm9, %v2474_v15  ;;  %2505 = vst.msk [vmem:[#allocation5 + $0x60] sm:$0xff] %vm1984_vm9, %v2476_v7  ;;  %v2491_v32 = vmul.f32 %v2463_v53, %v2462_v39 }
 0x67a   : > { %2506 = vst.msk [vmem:[#allocation5 + $0x68] sm:$0x3] %vm2493_vm11, %v2477_v49  ;;  %2508 = vst.msk [vmem:[#allocation5 + $0x78] sm:$0x3] %vm2493_vm11, %v2479_v5 }
 0x67b   : > { %2507 = vst.msk [vmem:[#allocation5 + $0x70] sm:$0xff] %vm1984_vm9, %v2478_v57  ;;  %2509 = vst.msk [vmem:[#allocation5 + $0x80] sm:$0xff] %vm1984_vm9, %v2480_v54 }
 0x67c   : > { %2510 = vst.msk [vmem:[#allocation5 + $0x88] sm:$0x3] %vm2493_vm11, %v2481_v3  ;;  %2512 = vst.msk [vmem:[#allocation5 + $0x98] sm:$0x3] %vm2493_vm11, %v2483_v18 }
 0x67d   : > { %2511 = vst.msk [vmem:[#allocation5 + $0x90] sm:$0xff] %vm1984_vm9, %v2482_v26  ;;  %2513 = vst.msk [vmem:[#allocation5 + $0xa0] sm:$0xff] %vm1984_vm9, %v2484_v9 }
 0x67e   : > { %2514 = vst.msk [vmem:[#allocation5 + $0xa8] sm:$0x3] %vm2493_vm11, %v2485_v52  ;;  %2516 = vst.msk [vmem:[#allocation5 + $0xb8] sm:$0x3] %vm2493_vm11, %v2487_v25 }
 0x67f   : > { %2515 = vst.msk [vmem:[#allocation5 + $0xb0] sm:$0xff] %vm1984_vm9, %v2486_v13  ;;  %2517 = vst.msk [vmem:[#allocation5 + $0xc0] sm:$0xff] %vm1984_vm9, %v2488_v29 }
 0x680   : > { %2518 = vst.msk [vmem:[#allocation5 + $0xc8] sm:$0x3] %vm2493_vm11, %v2489_v50  ;;  %2520 = vst.msk [vmem:[#allocation5 + $0xd8] sm:$0x3] %vm2493_vm11, %v2491_v32 }
 0x681   : > { %2519 = vst.msk [vmem:[#allocation5 + $0xd0] sm:$0xff] %vm1984_vm9, %v2490_v27 }
 0x682 LB: >> { %v4451_v58 = vcombine.low %v7395_v0, %v7400_v55  ;;  %v5426_v45 = vmov 0.0   ;;  %s4566_s0 = sshll.u32 %s5417_s14, 5  ;;  %vm5427_vm12 = vmmov 0   ;;  %v4453_v28 = vcombine.low %v7385_v44, %v7390_v4  ;;  %s5428_s29 = smov 64   ;;  %s5417_s14 = sphi %s7592_s14, %s2542_s14   ;;  %v5413_v37 = vphi %v7590_v37, %v8572_v37   ;;  %v5409_v31 = vphi %v7588_v31, %v8571_v31  }
 0x683   : >> { %4705 = vmatprep.subr.bf16.mxu0 %v5426_v45  ;;  %4723 = vmatprep.subr.bf16.mxu1 %v5426_v45  ;;  %s2547_s15 = scalar_lea.vmem [#allocation5], %s4566_s0  ;;  %v4459_v22 = vcombine.low %v7405_v60, %v7410_v62  ;;  %s5429_s22 = smov 96   ;;  %vm2890_vm13 = vcmask 261120  }
 0x684   : >> { %4706 = vmatpush3.bf16.msra.mxu0 %v4451_v58  ;;  %4724 = vmatpush3.bf16.msra.mxu1 %v4451_v58  ;;  %s4468_s24 = sshll.u32 %s5417_s14, 3  ;;  %s2542_s14 = sadd.s32 1, %s5417_s14  }
 0x685   : >> { %4707 = vmatprep.mubr.msk.bf16.mxu0 %vm5427_vm12, %v5426_v45  ;;  %4711 = vmatprep.subr.bf16.mxu0 %v5426_v45  ;;  %s2889_s25 = scalar_lea.vmem [#allocation6], %s4468_s24  ;;  %p2539_p13 = scmp.ge.s32.totalorder %s2542_s14, 6  }
 0x686   : >> { %4725 = vmatprep.mubr.msk.bf16.mxu1 %vm5427_vm12, %v5426_v45  ;;  %4729 = vmatprep.subr.bf16.mxu1 %v5426_v45  ;;  %v7644_v44 = vld [vmem:[%s7910_s7 + $0x24] ss:$8 sps:$4 sm:$0xff] (%p2539_p13)   ;;  %v7649_v4 = vld [vmem:[%s7910_s7 + $0x20] ss:$8 sps:$4 sm:$0xff] (%p2539_p13)   ;;  %v7654_v0 = vld [vmem:[%s7910_s7 + $0x34] ss:$8 sps:$4 sm:$0xff] (%p2539_p13)  }
 0x687   : > { %v7663_v60 = vld [vmem:[%s7910_s7 + $0x30] ss:$8 sps:$4 sm:$0xff] (%p2539_p13)   ;;  %vm2970_vm14 = vcmask (%p2539_p13), 257024   ;;  %vm3214_vm15 = vcmask (%p2539_p13), 517120   ;;  %vm3823_vm0 = vcmask (%p2539_p13), 523264  }
 0x688   : >> { %v4449_v43 = vld [vmem:[%s2547_s15 + $0x10] sm:$0xff]  ;;  %v4450_v2 = vld [vmem:[%s2547_s15 + $0x18] sm:$0x3]  ;;  %v4457_v17 = vld [vmem:[%s2547_s15 + $0x20] sm:$0xff] }
 0x689   : >> { %v2556_v42 = vpack.c.bf16 %v4450_v2, %v4449_v43  ;;  %v4458_v38 = vld [vmem:[%s2547_s15 + $0x28] sm:$0x3]  ;;  %v2548_v19 = vld [vmem:[%s2547_s15] sm:$0xff]  ;;  %v4465_v20 = vld [vmem:[%s2547_s15 + $0x30] sm:$0xff] }
 0x68a   : >> { %v2662_v33 = vpack.c.bf16 %v4458_v38, %v4457_v17  ;;  %v2549_v51 = vld [vmem:[%s2547_s15 + $0x8] sm:$0x3]  ;;  %v4466_v12 = vld [vmem:[%s2547_s15 + $0x38] sm:$0x3] }
 0x68b   : >> { %4708 = vmatmul.mubr.msk.bf16.vlgmr.msra.gmra.mrb[0].mxu0 %vm1984_vm9, %v2556_v42  ;;  %v2550_v36 = vpack.c.bf16 %v2549_v51, %v2548_v19  ;;  %v2821_v30 = vpack.c.bf16 %v4466_v12, %v4465_v20 }
 0x68c   : >> { %4712 = vmatpush3.bf16.msra.mxu0 %v4453_v28  ;;  %4726 = vmatmul.mubr.msk.bf16.vlgmr.msra.gmra.mrb[0].mxu1 %vm1984_vm9, %v2662_v33 }
 0x68d   : >> { %4730 = vmatpush3.bf16.msra.mxu1 %v4453_v28  ;;  %4713 = vmatprep.mubr.msk.bf16.mxu0 %vm5427_vm12, %v5426_v45 }
 0x68e   : >> { %4717 = vmatprep.subr.bf16.mxu0 %v5426_v45  ;;  %4731 = vmatprep.mubr.msk.bf16.mxu1 %vm5427_vm12, %v5426_v45 }
 0x68f   : >> { %4735 = vmatprep.subr.bf16.mxu1 %v5426_v45 }
 0x697   : >> { %4714 = vmatmul.mubr.msk.bf16.vlgmr.msra.gmra.mrb[0].mxu0 %vm1984_vm9, %v2550_v36 }
 0x698   : >> { %4718 = vmatpush3.bf16.msra.mxu0 %v4459_v22  ;;  %4732 = vmatmul.mubr.msk.bf16.vlgmr.msra.gmra.mrb[0].mxu1 %vm1984_vm9, %v2556_v42 }
 0x699   : >> { %4736 = vmatpush3.bf16.msra.mxu1 %v4459_v22  ;;  %4719 = vmatprep.mubr.msk.bf16.mxu0 %vm5427_vm12, %v5426_v45 }
 0x69a   : >> { %4737 = vmatprep.mubr.msk.bf16.mxu1 %vm5427_vm12, %v5426_v45  ;;  %3027 = vmatprep.subr.bf16.mxu0 (%p2539_p13), %v7644_v44 }
 0x69b   : > { %3226 = vmatprep.subr.bf16.mxu1 (%p2539_p13), %v7644_v44 }
 0x6a3   : >> { %4720 = vmatmul.mubr.msk.bf16.vlgmr.msra.gmra.mrb[0].mxu0 %vm1984_vm9, %v2662_v33 }
 0x6a4   : >> { %4738 = vmatmul.mubr.msk.bf16.vlgmr.msra.gmra.mrb[0].mxu1 %vm1984_vm9, %v2821_v30  ;;  %3028 = vmatpush1.bf16.msra.mxu0 (%p2539_p13), %v7649_v4 }
 0x6a5   : > { %3227 = vmatpush1.bf16.msra.mxu1 (%p2539_p13), %v7649_v4  ;;  %3029 = vmatprep.subr.bf16.mxu0 (%p2539_p13), %v7654_v0 }
 0x6a6   : > { %3228 = vmatprep.subr.bf16.mxu1 (%p2539_p13), %v7654_v0 }
 0x6a8   : > { %3030 = vmatpush1.bf16.msra.mxu0 (%p2539_p13), %v7663_v60 }
 0x6a9   : > { %3229 = vmatpush1.bf16.msra.mxu1 (%p2539_p13), %v7663_v60 }
 0x776   : >> { %v2706_v8 = vpop.f32.mrb[0].mxu0 }
 0x777   : >> { %v2859_v34 = vpop.f32.mrb[0].mxu1  ;;  %v4721_v1 = vpop.f32.mrb[1].mxu0  ;;  %v2725_v39 = vrot.slane %v2706_v8, 2  ;;  %v2718_v53 = vrot.slane %v2706_v8, 1  ;;  %v2715_v23 = vadd.f32 %v7415_v16, %v2706_v8 }
 0x778   : >> { %v4739_v14 = vpop.f32.mrb[1].mxu1  ;;  %v2709_v21 = vpop.f32.mrb[2].mxu0  ;;  %v2871_v61 = vrot.slane %v2859_v34, 1  ;;  %v2878_v56 = vrot.slane %v2859_v34, 2  ;;  %v2868_v57 = vadd.f32 %v7415_v16, %v2859_v34  ;;  %v7670_v16 = vld [vmem:[%s7910_s7 + $0x4] ss:$8 sps:$4 sm:$0xff] (%p2539_p13)  }
 0x779   : >> { %v2719_v48 = vrot.slane %v2709_v21, 1  ;;  %v2726_v46 = vrot.slane %v2709_v21, 2  ;;  %v2862_v24 = vpop.f32.mrb[2].mxu1  ;;  %v4722_v63 = vpop.f32.mrb[3].mxu0  ;;  %3091 = vmatprep.subr.bf16.mxu0 (%p2539_p13), %v7670_v16  ;;  %3270 = vmatprep.subr.bf16.mxu1 (%p2539_p13), %v7670_v16 }
 0x77a   : >> { %v2872_v10 = vrot.slane %v2862_v24, 1  ;;  %v2879_v6 = vrot.slane %v2862_v24, 2  ;;  %v4740_v40 = vpop.f32.mrb[3].mxu1 }
 0x77b   : >> { %v2727_v59 = vsel %vm462_vm1, %v2725_v39, %v2726_v46  ;;  %v2720_v41 = vsel %vm1730_vm8, %v2718_v53, %v2719_v48 }
 0x77c   : >> { %2728 = vrot.lane.b32.xlu1 %v2727_v59, %s5428_s29  ;;  %2721 = vrot.lane.b32.xlu0 %v2720_v41, %s5429_s22  ;;  %v2880_v11 = vsel %vm462_vm1, %v2878_v56, %v2879_v6  ;;  %v2873_v35 = vsel %vm1730_vm8, %v2871_v61, %v2872_v10  ;;  %vm4153_vm1 = vcmask (%p2539_p13), 1040384  }
 0x780   : >> { %2881 = vrot.lane.b32.xlu1 %v2880_v11, %s5428_s29  ;;  %2874 = vrot.lane.b32.xlu0 %v2873_v35, %s5429_s22 }
 0x7ee   : >> { %v2729_v15 = vpop.permute.xlu1 %2728  ;;  %v2722_v47 = vpop.permute.xlu0 %2721 }
 0x7ef   : >> { %v2724_v7 = vadd.f32 %v2722_v47, %v2715_v23 }
 0x7f1   : >> { %v2731_v49 = vadd.f32 %v2729_v15, %v2724_v7 }
 0x7f2   : >> { %v2875_v5 = vpop.permute.xlu0 %2874  ;;  %v2882_v26 = vpop.permute.xlu1 %2881 }
 0x7f3   : >> { %v2732_v54 = vmul.f32 0.01, %v2731_v49  ;;  %v2877_v3 = vadd.f32 %v2875_v5, %v2868_v57 }
 0x7f5   : >> { %v2884_v18 = vadd.f32 %v2882_v26, %v2877_v3  ;;  %v2733_v9 = vmax.f32 %v2731_v49, %v2732_v54 }
 0x7f7   : >> { %v2885_v52 = vmul.f32 0.01, %v2884_v18  ;;  %v2894_v25 = vmul.f32 %v2733_v9, %v2733_v9 }
 0x7f9   : >> { %v2886_v13 = vmax.f32 %v2884_v18, %v2885_v52 }
 0x7fb   : >> { %v2887_v29 = vmax.f32 %v2733_v9, %v2886_v13  ;;  %v2892_v50 = vadd.f32 %v2886_v13, %v2733_v9  ;;  %v2895_v27 = vmul.f32 %v2886_v13, %v2886_v13  ;;  %2541 = sbr.rel (!%p2539_p13) target bundleno = 1666 (0x682), region = 426 }
 0x7fd   : >> { %2891 = vst.msk [vmem:[%s2889_s25] sm:$0xff] %vm2890_vm13, %v2887_v29  ;;  %v2893_v32 = vadd.f32 %v5413_v37, %v2892_v50   ;;  %v2896_v58 = vadd.f32 %v2895_v27, %v2894_v25  ;;  %v5107_v25 = vld [vmem:[%s7910_s7] ss:$8 sps:$4 sm:$0xff] (%p2539_p13)  }
 0x7ff   : >> { %v2897_v45 = vadd.f32 %v5409_v31, %v2896_v58   ;;  %v8572_v37 = vmov %v2893_v32  ;;  %v2899_v43 = vsel (%p2539_p13), %vm2890_vm13, %v2893_v32, 0.0  ;;  %v5108_v32 = vld [vmem:[%s7910_s7 + $0x14] ss:$8 sps:$4 sm:$0xff] (%p2539_p13)   ;;  %v5110_v58 = vld [vmem:[%s7910_s7 + $0x10] ss:$8 sps:$4 sm:$0xff] (%p2539_p13)  }
 0x800   : > { %2900 = vadd.xlane.f32.xlu0 (%p2539_p13), %v2899_v43 }
 0x801   : >> { %v8571_v31 = vmov %v2897_v45  ;;  %v2910_v2 = vsel (%p2539_p13), %vm2890_vm13, %v2897_v45, 0.0  ;;  %v5111_v45 = vld [vmem:[%s7910_s7 + $0x44] ss:$8 sps:$4 sm:$0xff] (%p2539_p13)  }
 0x802   : > { %v5430_v31 = vmov 0  }
 0x803   : > { %3059 = vmatprep.mubr.bf16.mxu0 %v5430_v31  ;;  %3258 = vmatprep.mubr.bf16.mxu1 %v5430_v31 }
 0x804   : > { %2911 = vadd.xlane.f32.xlu0 %v2910_v2  ;;  %v2927_v34 = vld [vmem:[#allocation6] ss:$2 sm:$0xf]  ;;  %v2929_v1 = vld [vmem:[#allocation6 + $0x8] ss:$2 sm:$0xf] }
 0x805   : > { %v2931_v14 = vld [vmem:[#allocation6 + $0x10] ss:$2 sm:$0xf]  ;;  %v2933_v21 = vld [vmem:[#allocation6 + $0x18] ss:$2 sm:$0xf] }
 0x806   : > { %v2935_v48 = vld [vmem:[#allocation6 + $0x20] ss:$2 sm:$0xf]  ;;  %v2937_v46 = vld [vmem:[#allocation6 + $0x28] ss:$2 sm:$0xf] }
 0x807   : > { %v2939_v24 = vld [vmem:[#allocation6 + $0x1] ss:$2 sm:$0xf]  ;;  %v2941_v63 = vld [vmem:[#allocation6 + $0x9] ss:$2 sm:$0xf] }
 0x808   : > { %v2943_v39 = vld [vmem:[#allocation6 + $0x11] ss:$2 sm:$0xf]  ;;  %v2945_v53 = vld [vmem:[#allocation6 + $0x19] ss:$2 sm:$0xf]  ;;  %v2950_v10 = vmax.f32 %v2927_v34, %v2939_v24  ;;  %v2951_v6 = vmax.f32 %v2929_v1, %v2941_v63 }
 0x809   : > { %v2947_v61 = vld [vmem:[#allocation6 + $0x21] ss:$2 sm:$0xf]  ;;  %v2949_v56 = vld [vmem:[#allocation6 + $0x29] ss:$2 sm:$0xf]  ;;  %v2952_v40 = vmax.f32 %v2931_v14, %v2943_v39  ;;  %v2953_v59 = vmax.f32 %v2933_v21, %v2945_v53 }
 0x80a   : > { %v2954_v11 = vmax.f32 %v2935_v48, %v2947_v61  ;;  %v2955_v35 = vmax.f32 %v2937_v46, %v2949_v56 }
 0x88d   : > { %v2901_v37 = vpop.xlane.xlu0 %2900 }
 0x88e   : > { %v2902_v28 = vrot.slane %v2901_v37, 4 }
 0x890   : > { %v2903_v17 = vadd.f32 %v2902_v28, %v2901_v37  ;;  %v5113_v37 = vld [vmem:[%s7910_s7 + $0x40] ss:$8 sps:$4 sm:$0xff]  }
 0x891   : > { %v2912_v42 = vpop.xlane.xlu0 %2911 }
 0x892   : > { %v2904_v38 = vrot.slane %v2903_v17, 2  ;;  %v2913_v33 = vrot.slane %v2912_v42, 4 }
 0x894   : > { %v2914_v19 = vadd.f32 %v2913_v33, %v2912_v42  ;;  %v2905_v51 = vadd.f32 %v2904_v38, %v2903_v17  ;;  %v5114_v42 = vld [vmem:[%s7910_s7 + $0x54] ss:$8 sps:$4 sm:$0xff]   ;;  %v5116_v38 = vld [vmem:[%s7910_s7 + $0x50] ss:$8 sps:$4 sm:$0xff]  }
 0x896   : > { %v2915_v36 = vrot.slane %v2914_v19, 2  ;;  %v2906_v22 = vrot.slane %v2905_v51, 1 }
 0x898   : > { %v2907_v20 = vadd.f32 %v2906_v22, %v2905_v51  ;;  %v2916_v12 = vadd.f32 %v2915_v36, %v2914_v19 }
 0x89a   : > { %4834 = vpush %v2907_v20  ;;  %v2917_v55 = vrot.slane %v2916_v12, 1 }
 0x89c   : > { %v2918_v62 = vadd.f32 %v2917_v55, %v2916_v12 }
 0x89e   : > { %4836 = vpush %v2918_v62 }
 0x8cb   : > { %s4835_s25 = spop %4834 }
 0x8cc   : > { %s2909_s30 = smul.f32 0.00032552084, %s4835_s25  ;;  %s5431_s25 = smov 64  }
 0x8ce   : > { %s2921_s26 = smul.f32 %s2909_s30, %s2909_s30  ;;  %v2956_v41 = vstv %s2909_s30 }
 0x8cf   : > { %s4837_s12 = spop %4836  ;;  %v2957_v23 = vsub.f32 %v2950_v10, %v2956_v41  ;;  %v2958_v15 = vsub.f32 %v2951_v6, %v2956_v41  ;;  %v2959_v47 = vsub.f32 %v2952_v40, %v2956_v41  ;;  %v2960_v7 = vsub.f32 %v2953_v59, %v2956_v41 }
 0x8d0   : > { %s2920_s13 = smul.f32 0.00032552084, %s4837_s12  ;;  %v2961_v49 = vsub.f32 %v2954_v11, %v2956_v41  ;;  %v2962_v57 = vsub.f32 %v2955_v35, %v2956_v41 }
 0x8d2   : > { %s2922_s14 = ssub.f32 %s2920_s13, %s2921_s26 }
 0x8d4   : > { %s2923_s0 = sadd.f32 1e-05, %s2922_s14 }
 0x8d6   : > { %v2924_v30 = vstv %s2923_s0 }
 0x8d7   : > { %5165 = vrsqrt.f32 %v2924_v30 }
 0x8e1   : > { %v5166_v8 = vpop.eup %5165 }
 0x8e2   : > { %4838 = vpush %v5166_v8 }
 0x913   : > { %s4839_s15 = spop %4838 }
 0x914   : > { %v2963_v5 = vstv %s4839_s15 }
 0x915   : > { %v2964_v54 = vmul.f32 %v2963_v5, %v2957_v23  ;;  %v2965_v3 = vmul.f32 %v2963_v5, %v2958_v15  ;;  %v2966_v26 = vmul.f32 %v2963_v5, %v2959_v47  ;;  %v2967_v18 = vmul.f32 %v2963_v5, %v2960_v7  ;;  %v4477_v15 = vld [vmem:[%s7911_s8] ss:$0 sm:$0xff] }
 0x916   : > { %v2968_v9 = vmul.f32 %v2963_v5, %v2961_v49  ;;  %v2969_v52 = vmul.f32 %v2963_v5, %v2962_v57 }
 0x917   : > { %2971 = vst.msk [vmem:[#allocation7] sm:$0xf] %vm2970_vm14, %v2964_v54  ;;  %2972 = vst.msk [vmem:[#allocation7 + $0x4] sm:$0xf] %vm2970_vm14, %v2965_v3 }
 0x918   : > { %2973 = vst.msk [vmem:[#allocation7 + $0x8] sm:$0xf] %vm2970_vm14, %v2966_v26  ;;  %2974 = vst.msk [vmem:[#allocation7 + $0xc] sm:$0xf] %vm2970_vm14, %v2967_v18 }
 0x919   : > { %2975 = vst.msk [vmem:[#allocation7 + $0x10] sm:$0xf] %vm2970_vm14, %v2968_v9  ;;  %2976 = vst.msk [vmem:[#allocation7 + $0x14] sm:$0xf] %vm2970_vm14, %v2969_v52 }
 0x91e   : > { %v3002_v13 = vld [vmem:[#allocation7 + $0x4] sm:$0xf]  ;;  %v2999_v43 = vld [vmem:[#allocation7] sm:$0xf] }
 0x91f   : > { %v3221_v29 = vld [vmem:[#allocation7 + $0x8] sm:$0xf]  ;;  %v3003_v50 = vpack.c.bf16 %v3002_v13, %v3002_v13  ;;  %v3219_v2 = vld [vmem:[#allocation7 + $0x4] sm:$0xf]  ;;  %v3000_v28 = vpack.c.bf16 %v2999_v43, %v2999_v43  ;;  %v3312_v19 = vld [vmem:[#allocation7 + $0xc] sm:$0xf] }
 0x920   : > { %v3222_v27 = vpack.c.bf16 %v3221_v29, %v3221_v29  ;;  %v3220_v17 = vpack.c.bf16 %v3219_v2, %v3219_v2  ;;  %v3133_v33 = vld [vmem:[#allocation7 + $0x8] sm:$0xf]  ;;  %v3313_v36 = vpack.c.bf16 %v3312_v19, %v3312_v19  ;;  %v3380_v22 = vld [vmem:[#allocation7 + $0xc] sm:$0xf]  ;;  %v3539_v20 = vld [vmem:[#allocation7 + $0x10] sm:$0xf] }
 0x921   : > { %4482 = vmatmul.mubr.msk.bf16.vlgmr.msra.gmra.mrb[0].mxu0 %vm2890_vm13, %v3003_v50  ;;  %v3134_v51 = vpack.c.bf16 %v3133_v33, %v3133_v33  ;;  %v3381_v12 = vpack.c.bf16 %v3380_v22, %v3380_v22  ;;  %v3471_v62 = vld [vmem:[#allocation7 + $0x10] sm:$0xf] }
 0x922   : > { %4493 = vmatmul.mubr.msk.bf16.vlgmr.msra.gmra.mrb[0].mxu1 %vm2890_vm13, %v3222_v27  ;;  %3092 = vmatpush1.bf16.msra.mxu0 %v5107_v25  ;;  %v3472_v30 = vpack.c.bf16 %v3471_v62, %v3471_v62 }
 0x923   : > { %3271 = vmatpush1.bf16.msra.mxu1 %v5107_v25  ;;  %3093 = vmatprep.subr.bf16.mxu0 %v5108_v32 }
 0x924   : > { %3272 = vmatprep.subr.bf16.mxu1 %v5108_v32  ;;  %3123 = vmatprep.mubr.bf16.mxu0 %v5430_v31 }
 0x925   : > { %3302 = vmatprep.mubr.bf16.mxu1 %v5430_v31 }
 0x926   : > { %3094 = vmatpush1.bf16.msra.mxu0 %v5110_v58 }
 0x927   : > { %3273 = vmatpush1.bf16.msra.mxu1 %v5110_v58  ;;  %3158 = vmatprep.subr.bf16.mxu0 %v5111_v45 }
 0x928   : > { %3317 = vmatprep.subr.bf16.mxu1 %v5111_v45 }
 0x92d   : > { %4487 = vmatmul.mubr.msk.bf16.vlgmr.msra.gmra.mrb[0].mxu0 %vm2890_vm13, %v3000_v28 }
 0x92e   : > { %4494 = vmatmul.mubr.msk.bf16.vlgmr.msra.gmra.mrb[0].mxu1 %vm2890_vm13, %v3220_v17  ;;  %3159 = vmatpush1.bf16.msra.mxu0 %v5113_v37 }
 0x92f   : > { %3318 = vmatpush1.bf16.msra.mxu1 %v5113_v37  ;;  %3160 = vmatprep.subr.bf16.mxu0 %v5114_v42 }
 0x930   : > { %3319 = vmatprep.subr.bf16.mxu1 %v5114_v42  ;;  %3190 = vmatprep.mubr.bf16.mxu0 %v5430_v31 }
 0x931   : > { %3349 = vmatprep.mubr.bf16.mxu1 %v5430_v31 }
 0x932   : > { %3161 = vmatpush1.bf16.msra.mxu0 %v5116_v38 }
 0x933   : > { %3320 = vmatpush1.bf16.msra.mxu1 %v5116_v38  ;;  %3385 = vmatprep.subr.bf16.mxu0 %v7644_v44 }
 0x934   : > { %3544 = vmatprep.subr.bf16.mxu1 %v7644_v44  ;;  %v3540_v44 = vpack.c.bf16 %v3539_v20, %v3539_v20 }
 0x939   : > { %4492 = vmatmul.mubr.msk.bf16.vlgmr.msra.gmra.mrb[0].mxu0 %vm2890_vm13, %v3134_v51 }
 0x93a   : > { %4495 = vmatmul.mubr.msk.bf16.vlgmr.msra.gmra.mrb[0].mxu1 %vm2890_vm13, %v3313_v36  ;;  %3386 = vmatpush1.bf16.msra.mxu0 %v7649_v4 }
 0x93b   : > { %3545 = vmatpush1.bf16.msra.mxu1 %v7649_v4  ;;  %3387 = vmatprep.subr.bf16.mxu0 %v7654_v0  ;;  %v3378_v4 = vld [vmem:[#allocation7 + $0x8] sm:$0xf] }
 0x93c   : > { %3546 = vmatprep.subr.bf16.mxu1 %v7654_v0  ;;  %3417 = vmatprep.mubr.bf16.mxu0 %v5430_v31  ;;  %v3537_v0 = vld [vmem:[#allocation7 + $0xc] sm:$0xf]  ;;  %v3379_v55 = vpack.c.bf16 %v3378_v4, %v3378_v4 }
 0x93d   : > { %3576 = vmatprep.mubr.bf16.mxu1 %v5430_v31 }
 0x93e   : > { %3388 = vmatpush1.bf16.msra.mxu0 %v7663_v60 }
 0x93f   : > { %3547 = vmatpush1.bf16.msra.mxu1 %v7663_v60  ;;  %3429 = vmatprep.subr.bf16.mxu0 %v7670_v16  ;;  %v3538_v60 = vpack.c.bf16 %v3537_v0, %v3537_v0 }
 0x940   : > { %3588 = vmatprep.subr.bf16.mxu1 %v7670_v16  ;;  %v3630_v16 = vld [vmem:[#allocation7 + $0x14] sm:$0xf] }
 0x941   : > { %4496 = vmatmul.mubr.msk.bf16.vlgmr.msra.gmra.mrb[4].mxu0 %vm2890_vm13, %v3381_v12  ;;  %v3631_v8 = vpack.c.bf16 %v3630_v16, %v3630_v16 }
 0x942   : > { %4499 = vmatmul.mubr.msk.bf16.vlgmr.msra.gmra.mrb[4].mxu1 %vm2890_vm13, %v3540_v44  ;;  %3430 = vmatpush1.bf16.msra.mxu0 %v5107_v25 }
 0x943   : > { %3589 = vmatpush1.bf16.msra.mxu1 %v5107_v25  ;;  %3431 = vmatprep.subr.bf16.mxu0 %v5108_v32 }
 0x944   : > { %3590 = vmatprep.subr.bf16.mxu1 %v5108_v32  ;;  %3461 = vmatprep.mubr.bf16.mxu0 %v5430_v31 }
 0x945   : > { %3620 = vmatprep.mubr.bf16.mxu1 %v5430_v31 }
 0x946   : > { %3432 = vmatpush1.bf16.msra.mxu0 %v5110_v58 }
 0x947   : > { %3591 = vmatpush1.bf16.msra.mxu1 %v5110_v58  ;;  %3476 = vmatprep.subr.bf16.mxu0 %v5111_v45 }
 0x948   : > { %3635 = vmatprep.subr.bf16.mxu1 %v5111_v45 }
 0x94d   : > { %4497 = vmatmul.mubr.msk.bf16.vlgmr.msra.gmra.mrb[4].mxu0 %vm2890_vm13, %v3379_v55 }
 0x94e   : > { %4500 = vmatmul.mubr.msk.bf16.vlgmr.msra.gmra.mrb[4].mxu1 %vm2890_vm13, %v3538_v60  ;;  %3477 = vmatpush1.bf16.msra.mxu0 %v5113_v37 }
 0x94f   : > { %3636 = vmatpush1.bf16.msra.mxu1 %v5113_v37  ;;  %3478 = vmatprep.subr.bf16.mxu0 %v5114_v42 }
 0x950   : > { %3637 = vmatprep.subr.bf16.mxu1 %v5114_v42  ;;  %3508 = vmatprep.mubr.bf16.mxu0 %v5430_v31 }
 0x951   : > { %3667 = vmatprep.mubr.bf16.mxu1 %v5430_v31 }
 0x952   : > { %3479 = vmatpush1.bf16.msra.mxu0 %v5116_v38 }
 0x953   : > { %3638 = vmatpush1.bf16.msra.mxu1 %v5116_v38 }
 0x959   : > { %4498 = vmatmul.mubr.msk.bf16.vlgmr.msra.gmra.mrb[4].mxu0 %vm2890_vm13, %v3472_v30  ;;  %v5117_v30 = vld [vmem:[%s7912_s9 + $0x40] ss:$8 sps:$4 sm:$0xff]  }
 0x95a   : > { %4501 = vmatmul.mubr.msk.bf16.vlgmr.msra.gmra.mrb[4].mxu1 %vm2890_vm13, %v3631_v8  ;;  %3859 = vmatprep.mubr.bf16.mxu0 %v5430_v31  ;;  %v5119_v8 = vld [vmem:[%s7912_s9 + $0x44] ss:$8 sps:$4 sm:$0xff]  }
 0x95b   : > { %3943 = vmatprep.mubr.bf16.mxu1 %v5430_v31  ;;  %3827 = vmatprep.subr.bf16.mxu0 %v5119_v8  ;;  %v5162_v8 = vld [vmem:[%s7912_s9 + $0xf0] ss:$8 sps:$4 sm:$0xff]  }
 0x95c   : > { %3828 = vmatpush1.bf16.msra.mxu0 %v5117_v30  ;;  %v5159_v30 = vld [vmem:[%s7912_s9 + $0xb0] ss:$8 sps:$4 sm:$0xff]  }
 0xa0c   : > { %v3192_v34 = vpop.f32.mrb[0].mxu0 }
 0xa0d   : > { %v3351_v1 = vpop.f32.mrb[0].mxu1  ;;  %v3194_v14 = vpop.f32.mrb[1].mxu0  ;;  %v3203_v48 = vrot.slane %v3192_v34, 1  ;;  %v3201_v47 = vadd.f32 %v4477_v15, %v3192_v34  ;;  %v5120_v34 = vld [vmem:[%s7912_s9] ss:$8 sps:$4 sm:$0xff]  }
 0xa0e   : > { %v3353_v21 = vpop.f32.mrb[1].mxu1  ;;  %v3196_v46 = vpop.f32.mrb[2].mxu0  ;;  %v3362_v53 = vrot.slane %v3351_v1, 1  ;;  %v3209_v49 = vrot.slane %v3194_v14, 2  ;;  %v3360_v5 = vadd.f32 %v4477_v15, %v3351_v1  ;;  %v5122_v1 = vld [vmem:[%s7912_s9 + $0x4] ss:$8 sps:$4 sm:$0xff]  }
 0xa0f   : > { %v3355_v24 = vpop.f32.mrb[2].mxu1  ;;  %3204 = vrot.lane.b32.xlu1 %v3203_v48, %s5431_s25  ;;  %v3197_v39 = vpop.f32.mrb[3].mxu0  ;;  %v3368_v26 = vrot.slane %v3353_v21, 2  ;;  %3911 = vmatprep.subr.bf16.mxu1 %v5122_v1 }
 0xa10   : > { %v3356_v63 = vpop.f32.mrb[3].mxu1  ;;  %3912 = vmatpush1.bf16.msra.mxu1 %v5120_v34 }
 0xa13   : > { %3363 = vrot.lane.b32.xlu1 %v3362_v53, %s5431_s25  ;;  %v5125_v53 = vld [vmem:[%s7912_s9 + $0x54] ss:$8 sps:$4 sm:$0xff]  }
 0xa14   : > { %3829 = vmatprep.subr.bf16.mxu0 %v5125_v53 }
 0xa2c   : > { %v3510_v61 = vpop.f32.mrb[4].mxu0 }
 0xa2d   : > { %v3669_v56 = vpop.f32.mrb[4].mxu1  ;;  %v3521_v10 = vrot.slane %v3510_v61, 1  ;;  %v3512_v40 = vpop.f32.mrb[5].mxu0  ;;  %v3519_v45 = vadd.f32 %v4477_v15, %v3510_v61  ;;  %v5128_v61 = vld [vmem:[%s7912_s9 + $0x14] ss:$8 sps:$4 sm:$0xff]  }
 0xa2e   : > { %v3680_v6 = vrot.slane %v3669_v56, 1  ;;  %v3671_v59 = vpop.f32.mrb[5].mxu1  ;;  %v3514_v41 = vpop.f32.mrb[6].mxu0  ;;  %v3678_v43 = vadd.f32 %v4477_v15, %v3669_v56  ;;  %v3527_v28 = vrot.slane %v3512_v40, 2  ;;  %v5126_v40 = vld [vmem:[%s7912_s9 + $0x10] ss:$8 sps:$4 sm:$0xff]   ;;  %3913 = vmatprep.subr.bf16.mxu1 %v5128_v61 }
 0xa2f   : > { %v3673_v11 = vpop.f32.mrb[6].mxu1  ;;  %3522 = vrot.lane.b32.xlu0 %v3521_v10, %s5431_s25  ;;  %v3515_v23 = vpop.f32.mrb[7].mxu0  ;;  %v3686_v17 = vrot.slane %v3671_v59, 2  ;;  %3914 = vmatpush1.bf16.msra.mxu1 %v5126_v40  ;;  %v5134_v15 = vld [vmem:[%s7912_s9 + $0x24] ss:$8 sps:$4 sm:$0xff]  }
 0xa30   : > { %v3674_v35 = vpop.f32.mrb[7].mxu1  ;;  %3681 = vrot.lane.b32.xlu1 %v3680_v6, %s5431_s25  ;;  %v5123_v6 = vld [vmem:[%s7912_s9 + $0x50] ss:$8 sps:$4 sm:$0xff]   ;;  %v5129_v11 = vld [vmem:[%s7912_s9 + $0x60] ss:$8 sps:$4 sm:$0xff]   ;;  %3915 = vmatprep.subr.bf16.mxu1 %v5134_v15 }
 0xa31   : > { %3830 = vmatpush1.bf16.msra.mxu0 %v5123_v6  ;;  %v5131_v35 = vld [vmem:[%s7912_s9 + $0x64] ss:$8 sps:$4 sm:$0xff]   ;;  %v5132_v23 = vld [vmem:[%s7912_s9 + $0x20] ss:$8 sps:$4 sm:$0xff]   ;;  %v5432_v40 = vmov 1966171168  }
 0xa32   : > { %3831 = vmatprep.subr.bf16.mxu0 %v5131_v35 }
 0xa33   : > { %3916 = vmatpush1.bf16.msra.mxu1 %v5132_v23 }
 0xa35   : > { %3832 = vmatpush1.bf16.msra.mxu0 %v5129_v11 }
 0xa81   : > { %v3205_v7 = vpop.permute.xlu1 %3204 }
 0xa82   : > { %v3207_v57 = vadd.f32 %v3205_v7, %v3201_v47 }
 0xa84   : > { %v3211_v54 = vadd.f32 %v3209_v49, %v3207_v57  ;;  %v5137_v49 = vld [vmem:[%s7912_s9 + $0x74] ss:$8 sps:$4 sm:$0xff]  }
 0xa85   : > { %v3364_v3 = vpop.permute.xlu1 %3363  ;;  %v5140_v57 = vld [vmem:[%s7912_s9 + $0x34] ss:$8 sps:$4 sm:$0xff]   ;;  %3833 = vmatprep.subr.bf16.mxu0 %v5137_v49 }
 0xa86   : > { %v3212_v18 = vmul.f32 0.01, %v3211_v54  ;;  %v3366_v9 = vadd.f32 %v3364_v3, %v3360_v5  ;;  %v5138_v3 = vld [vmem:[%s7912_s9 + $0x30] ss:$8 sps:$4 sm:$0xff]   ;;  %3917 = vmatprep.subr.bf16.mxu1 %v5140_v57 }
 0xa87   : > { %3918 = vmatpush1.bf16.msra.mxu1 %v5138_v3 }
 0xa88   : > { %v3213_v52 = vmax.f32 %v3211_v54, %v3212_v18  ;;  %v3370_v13 = vadd.f32 %v3368_v26, %v3366_v9  ;;  %v5135_v54 = vld [vmem:[%s7912_s9 + $0x70] ss:$8 sps:$4 sm:$0xff]   ;;  %v5143_v26 = vld [vmem:[%s7912_s9 + $0x84] ss:$8 sps:$4 sm:$0xff]  }
 0xa89   : > { %v5146_v18 = vld [vmem:[%s7912_s9 + $0xc4] ss:$8 sps:$4 sm:$0xff]   ;;  %3834 = vmatpush1.bf16.msra.mxu0 %v5135_v54 }
 0xa8a   : > { %3215 = vst.msk [vmem:[#allocation8] sm:$0x3] %vm3214_vm15, %v3213_v52  ;;  %v3371_v25 = vmul.f32 0.01, %v3370_v13  ;;  %v3217_v27 = vmul.f32 %v3213_v52, %v3213_v52  ;;  %3997 = vmatprep.subr.bf16.mxu0 %v5143_v26  ;;  %4085 = vmatprep.subr.bf16.mxu1 %v5146_v18 }
 0xa8c   : > { %v3372_v29 = vmax.f32 %v3370_v13, %v3371_v25 }
 0xa8e   : > { %3374 = vst.msk [vmem:[#allocation8 + $0x2] sm:$0x3] %vm3214_vm15, %v3372_v29  ;;  %v3375_v50 = vadd.f32 %v3372_v29, %v3213_v52  ;;  %v3376_v32 = vmul.f32 %v3372_v29, %v3372_v29 }
 0xa90   : > { %v3377_v58 = vadd.f32 %v3376_v32, %v3217_v27 }
 0xa91   : > { %v3724_v25 = vld [vmem:[#allocation8] sm:$0x3] }
 0xa95   : > { %v3725_v29 = vld [vmem:[#allocation8 + $0x2] sm:$0x3] }
 0xaa1   : > { %v3523_v37 = vpop.permute.xlu0 %3522 }
 0xaa2   : > { %v3682_v2 = vpop.permute.xlu1 %3681  ;;  %v3525_v38 = vadd.f32 %v3523_v37, %v3519_v45 }
 0xaa3   : > { %v3684_v42 = vadd.f32 %v3682_v2, %v3678_v43 }
 0xaa4   : > { %v3529_v19 = vadd.f32 %v3527_v28, %v3525_v38  ;;  %v5141_v38 = vld [vmem:[%s7912_s9 + $0x80] ss:$8 sps:$4 sm:$0xff]  }
 0xaa5   : > { %v3688_v33 = vadd.f32 %v3686_v17, %v3684_v42 }
 0xaa6   : > { %v3530_v36 = vmul.f32 0.01, %v3529_v19 }
 0xaa7   : > { %v3689_v51 = vmul.f32 0.01, %v3688_v33 }
 0xaa8   : > { %v3531_v20 = vmax.f32 %v3529_v19, %v3530_v36 }
 0xaa9   : > { %v3690_v22 = vmax.f32 %v3688_v33, %v3689_v51  ;;  %v5144_v33 = vld [vmem:[%s7912_s9 + $0xc0] ss:$8 sps:$4 sm:$0xff]  }
 0xaaa   : > { %3533 = vst.msk [vmem:[#allocation8 + $0x4] sm:$0x3] %vm3214_vm15, %v3531_v20  ;;  %v3534_v12 = vadd.f32 %v3531_v20, %v3375_v50  ;;  %v3535_v44 = vmul.f32 %v3531_v20, %v3531_v20  ;;  %v5149_v20 = vld [vmem:[%s7912_s9 + $0x94] ss:$8 sps:$4 sm:$0xff]  }
 0xaab   : > { %3692 = vst.msk [vmem:[#allocation8 + $0x6] sm:$0x3] %vm3214_vm15, %v3690_v22  ;;  %v3694_v55 = vmul.f32 %v3690_v22, %v3690_v22 }
 0xaac   : > { %v3693_v4 = vadd.f32 %v3690_v22, %v3534_v12  ;;  %v3536_v0 = vadd.f32 %v3535_v44, %v3377_v58  ;;  %v5152_v12 = vld [vmem:[%s7912_s9 + $0xd4] ss:$8 sps:$4 sm:$0xff]   ;;  %v5147_v44 = vld [vmem:[%s7912_s9 + $0x90] ss:$8 sps:$4 sm:$0xff]  }
 0xaae   : > { %v3696_v60 = vsel %vm3214_vm15, %v3693_v4, 0.0  ;;  %v3695_v62 = vadd.f32 %v3694_v55, %v3536_v0  ;;  %v5150_v4 = vld [vmem:[%s7912_s9 + $0xd0] ss:$8 sps:$4 sm:$0xff]   ;;  %v5155_v0 = vld [vmem:[%s7912_s9 + $0xa4] ss:$8 sps:$4 sm:$0xff]  }
 0xaaf   : > { %3697 = vadd.xlane.f32.xlu1 %v3696_v60  ;;  %v5158_v55 = vld [vmem:[%s7912_s9 + $0xe4] ss:$8 sps:$4 sm:$0xff]   ;;  %v5153_v60 = vld [vmem:[%s7912_s9 + $0xa0] ss:$8 sps:$4 sm:$0xff]  }
 0xab0   : > { %v3707_v16 = vsel %vm3214_vm15, %v3695_v62, 0.0  ;;  %v5156_v62 = vld [vmem:[%s7912_s9 + $0xe0] ss:$8 sps:$4 sm:$0xff]  }
 0xab1   : > { %3708 = vadd.xlane.f32.xlu0 %v3707_v16  ;;  %v3726_v50 = vld [vmem:[#allocation8 + $0x4] sm:$0x3] }
 0xab2   : > { %v3727_v27 = vld [vmem:[#allocation8 + $0x6] sm:$0x3] }
 0xab3   : > { %v5161_v16 = vld [vmem:[%s7912_s9 + $0xb4] ss:$8 sps:$4 sm:$0xff]  }
 0xb3c   : > { %v3698_v14 = vpop.xlane.xlu1 %3697 }
 0xb3d   : > { %v3699_v21 = vrot.slane %v3698_v14, 4 }
 0xb3e   : > { %v3709_v48 = vpop.xlane.xlu0 %3708 }
 0xb3f   : > { %v3700_v46 = vadd.f32 %v3699_v21, %v3698_v14  ;;  %v3710_v24 = vrot.slane %v3709_v48, 4 }
 0xb41   : > { %v3701_v63 = vrot.slane %v3700_v46, 2  ;;  %v3711_v39 = vadd.f32 %v3710_v24, %v3709_v48 }
 0xb43   : > { %v3712_v56 = vrot.slane %v3711_v39, 2  ;;  %v3702_v10 = vadd.f32 %v3701_v63, %v3700_v46 }
 0xb45   : > { %v3713_v59 = vadd.f32 %v3712_v56, %v3711_v39  ;;  %v3703_v41 = vrot.slane %v3702_v10, 1 }
 0xb47   : > { %v3704_v47 = vadd.f32 %v3703_v41, %v3702_v10  ;;  %v3714_v7 = vrot.slane %v3713_v59, 1  ;;  %v4133_v41 = vlaneseq }
 0xb49   : > { %4840 = vpush %v3704_v47  ;;  %v3715_v5 = vadd.f32 %v3714_v7, %v3713_v59  ;;  %v4131_v59 = vunpack.c.l.s4 %v5432_v40  ;;  %v4134_v35 = vshrl.u32 %v4133_v41, 7 }
 0xb4b   : > { %4842 = vpush %v3715_v5  ;;  %v4132_v11 = vunpack.c.0.s8 %v4131_v59 }
 0xb4d   : > { %v4135_v5 = vsub.s32 %v4132_v11, %v4134_v35 }
 0xb7a   : > { %s4841_s0 = spop %4840 }
 0xb7b   : > { %s3706_s15 = smul.f32 0.001953125, %s4841_s0 }
 0xb7c   : > { %s4843_s29 = spop %4842 }
 0xb7d   : > { %s3718_s22 = smul.f32 %s3706_s15, %s3706_s15  ;;  %v3728_v13 = vstv %s3706_s15  ;;  %s4562_s15 = sshll.u32 %s5515_s21, 4 }
 0xb7e   : > { %s3717_s24 = smul.f32 0.001953125, %s4843_s29  ;;  %v3729_v32 = vsub.f32 %v3724_v25, %v3728_v13  ;;  %v3730_v58 = vsub.f32 %v3725_v29, %v3728_v13  ;;  %v3731_v45 = vsub.f32 %v3726_v50, %v3728_v13  ;;  %v3732_v43 = vsub.f32 %v3727_v27, %v3728_v13  ;;  %v3777_v25 = vld [vmem:[%s7913_s10] sm:$0x1]  ;;  %s4201_s29 = sshll.u32 %s5577_s16, 4  ;;  %s7860_s29 = int_to_ptr.vmem [resolvable:$true] %s4201_s29 }
 0xb7f   : > { %s5433_s21 = smov [#allocation9]  }
 0xb80   : > { %s3719_s25 = ssub.f32 %s3717_s24, %s3718_s22 }
 0xb82   : > { %s3720_s30 = sadd.f32 1e-05, %s3719_s25 }
 0xb84   : > { %v3721_v9 = vstv %s3720_s30 }
 0xb85   : > { %5167 = vrsqrt.f32 %v3721_v9 }
 0xb8f   : > { %v5168_v52 = vpop.eup %5167 }
 0xb90   : > { %4844 = vpush %v5168_v52 }
 0xbc1   : > { %s4845_s26 = spop %4844 }
 0xbc2   : > { %v3733_v2 = vstv %s4845_s26 }
 0xbc3   : > { %v3734_v37 = vmul.f32 %v3733_v2, %v3729_v32  ;;  %v3735_v28 = vmul.f32 %v3733_v2, %v3730_v58  ;;  %v3736_v17 = vmul.f32 %v3733_v2, %v3731_v45  ;;  %v3737_v42 = vmul.f32 %v3733_v2, %v3732_v43 }
 0xbc5   : > { %3738 = vst.msk [vmem:[#allocation8] sm:$0x3] %vm3214_vm15, %v3734_v37  ;;  %3739 = vst.msk [vmem:[#allocation8 + $0x2] sm:$0x3] %vm3214_vm15, %v3735_v28 }
 0xbc6   : > { %3740 = vst.msk [vmem:[#allocation8 + $0x4] sm:$0x3] %vm3214_vm15, %v3736_v17  ;;  %3741 = vst.msk [vmem:[#allocation8 + $0x6] sm:$0x3] %vm3214_vm15, %v3737_v42 }
 0xbcc   : > { %v3781_v19 = vld [vmem:[#allocation8 + $0x2] sm:$0x3]  ;;  %v3779_v51 = vld [vmem:[#allocation8] sm:$0x3] }
 0xbcd   : > { %v3782_v36 = vpack.c.bf16 %v3781_v19, %v3781_v19  ;;  %v3780_v22 = vpack.c.bf16 %v3779_v51, %v3779_v51  ;;  %v3952_v34 = vld [vmem:[#allocation8 + $0x4] sm:$0x3]  ;;  %v4040_v1 = vld [vmem:[#allocation8 + $0x6] sm:$0x3] }
 0xbce   : > { %v3953_v14 = vpack.c.bf16 %v3952_v34, %v3952_v34  ;;  %v4041_v21 = vpack.c.bf16 %v4040_v1, %v4040_v1 }
 0xbcf   : > { %4534 = vmatmul.mubr.msk.bf16.vlgmr.msra.gmra.mrb[8].mxu0 %vm3823_vm0, %v3782_v36  ;;  %4543 = vmatmul.mubr.msk.bf16.vlgmr.msra.gmra.mrb[8].mxu1 %vm3823_vm0, %v3780_v22 }
 0xbd0   : > { %3998 = vmatpush1.bf16.msra.mxu0 %v5141_v38  ;;  %4086 = vmatpush1.bf16.msra.mxu1 %v5144_v33 }
 0xbd1   : > { %3999 = vmatprep.subr.bf16.mxu0 %v5149_v20  ;;  %4087 = vmatprep.subr.bf16.mxu1 %v5152_v12 }
 0xbd2   : > { %4029 = vmatprep.mubr.bf16.mxu0 %v5430_v31  ;;  %4117 = vmatprep.mubr.bf16.mxu1 %v5430_v31  ;;  %v5164_v31 = vld [vmem:[%s7912_s9 + $0xf4] ss:$8 sps:$4 sm:$0xff]  }
 0xbd4   : > { %4000 = vmatpush1.bf16.msra.mxu0 %v5147_v44  ;;  %4088 = vmatpush1.bf16.msra.mxu1 %v5150_v4 }
 0xbd5   : > { %4001 = vmatprep.subr.bf16.mxu0 %v5155_v0  ;;  %4089 = vmatprep.subr.bf16.mxu1 %v5158_v55 }
 0xbd8   : > { %4002 = vmatpush1.bf16.msra.mxu0 %v5153_v60  ;;  %4090 = vmatpush1.bf16.msra.mxu1 %v5156_v62 }
 0xbd9   : > { %4003 = vmatprep.subr.bf16.mxu0 %v5161_v16  ;;  %4091 = vmatprep.subr.bf16.mxu1 %v5164_v31 }
 0xbdc   : > { %4004 = vmatpush1.bf16.msra.mxu0 %v5159_v30  ;;  %4092 = vmatpush1.bf16.msra.mxu1 %v5162_v8 }
 0xbdf   : > { %4552 = vmatmul.mubr.msk.bf16.vlgmr.msra.gmra.mrb[12].mxu0 %vm3823_vm0, %v3953_v14  ;;  %4561 = vmatmul.mubr.msk.bf16.vlgmr.msra.gmra.mrb[12].mxu1 %vm3823_vm0, %v4041_v21 }
 0xca2   : > { %v3861_v48 = vpop.f32.mrb[8].mxu0  ;;  %v3945_v46 = vpop.f32.mrb[8].mxu1 }
 0xca3   : > { %v3946_v24 = vadd.f32 %v3945_v46, %v3861_v48  ;;  %v3863_v63 = vpop.f32.mrb[9].mxu0  ;;  %v3947_v39 = vpop.f32.mrb[9].mxu1 }
 0xca4   : > { %v3948_v53 = vadd.f32 %v3947_v39, %v3863_v63  ;;  %v3865_v61 = vpop.f32.mrb[10].mxu0  ;;  %v3949_v56 = vpop.f32.mrb[10].mxu1 }
 0xca5   : > { %v3866_v10 = vpop.f32.mrb[11].mxu0  ;;  %v3950_v6 = vpop.f32.mrb[11].mxu1 }
 0xcb2   : > { %v4031_v23 = vpop.f32.mrb[12].mxu0  ;;  %v4119_v15 = vpop.f32.mrb[12].mxu1 }
 0xcb3   : > { %v4038_v47 = vadd.f32 %v4031_v23, %v3946_v24  ;;  %v4033_v7 = vpop.f32.mrb[13].mxu0  ;;  %v4121_v49 = vpop.f32.mrb[13].mxu1 }
 0xcb4   : > { %v4039_v57 = vadd.f32 %v4033_v7, %v3948_v53  ;;  %v4035_v54 = vpop.f32.mrb[14].mxu0  ;;  %v4123_v3 = vpop.f32.mrb[14].mxu1 }
 0xcb5   : > { %v4126_v26 = vadd.f32 %v4119_v15, %v4038_v47  ;;  %v4036_v18 = vpop.f32.mrb[15].mxu0  ;;  %v4124_v9 = vpop.f32.mrb[15].mxu1 }
 0xcb6   : > { %v4127_v52 = vadd.f32 %v4121_v49, %v4039_v57 }
 0xcb7   : > { %v4128_v50 = vadd.f32 %v4126_v26, %v3777_v25 }
 0xcb8   : > { %v4136_v13 = vrot.slane %v4127_v52, %v4135_v5 }
 0xcba   : > { %v4137_v29 = vcombine.high %v4136_v13, %v4136_v13 }
 0xcbc   : > { %v4144_v27 = vrot.slane %v4137_v29, %v4135_v5 }
 0xcbe   : > { %v4146_v32 = vadd.f32 %v4144_v27, %v4128_v50 }
 0xcc0   : > { %v4147_v58 = vmul.f32 0.01, %v4146_v32 }
 0xcc2   : > { %v4148_v45 = vmax.f32 %v4146_v32, %v4147_v58 }
 0xcc4   : > { %v4154_v43 = vsel %vm4153_vm1, %v4148_v45, 0.0  ;;  %4149 = vst [vmem:[%s5577_s16] sm:$0x1] %v4148_v45  ;;  %v4151_v2 = vmul.f32 %v4148_v45, %v4148_v45 }
 0xcc5   : > { %4155 = vadd.xlane.f32.xlu1 %v4154_v43 }
 0xcc6   : > { %v4165_v37 = vsel %vm4153_vm1, %v4151_v2, 0.0 }
 0xcc9   : > { %4166 = vadd.xlane.f32.xlu1 %v4165_v37 }
 0xccb   : > { %v4182_v16 = vld [vmem:[%s5577_s16] sm:$0x1] }
 0xd52   : > { %v4156_v28 = vpop.xlane.xlu1 %4155 }
 0xd53   : > { %v4157_v17 = vrot.slane %v4156_v28, 4 }
 0xd55   : > { %v4158_v42 = vadd.f32 %v4157_v17, %v4156_v28 }
 0xd56   : > { %v4167_v38 = vpop.xlane.xlu1 %4166 }
 0xd57   : > { %v4159_v33 = vrot.slane %v4158_v42, 2  ;;  %v4168_v19 = vrot.slane %v4167_v38, 4 }
 0xd59   : > { %v4169_v51 = vadd.f32 %v4168_v19, %v4167_v38  ;;  %v4160_v36 = vadd.f32 %v4159_v33, %v4158_v42 }
 0xd5b   : > { %v4170_v22 = vrot.slane %v4169_v51, 2  ;;  %v4161_v20 = vrot.slane %v4160_v36, 1 }
 0xd5d   : > { %v4171_v12 = vadd.f32 %v4170_v22, %v4169_v51  ;;  %v4162_v44 = vadd.f32 %v4161_v20, %v4160_v36 }
 0xd5f   : > { %4846 = vpush %v4162_v44  ;;  %v4172_v4 = vrot.slane %v4171_v12, 1 }
 0xd61   : > { %v4173_v0 = vadd.f32 %v4172_v4, %v4171_v12 }
 0xd63   : > { %4848 = vpush %v4173_v0 }
 0xd90   : > { %s4847_s25 = spop %4846 }
 0xd91   : > { %s4164_s30 = smul.f32 0.0078125, %s4847_s25 }
 0xd93   : > { %s4176_s26 = smul.f32 %s4164_s30, %s4164_s30  ;;  %v4183_v62 = vstv %s4164_s30 }
 0xd94   : > { %s4849_s12 = spop %4848  ;;  %v4184_v31 = vsub.f32 %v4182_v16, %v4183_v62 }
 0xd95   : > { %s4175_s13 = smul.f32 0.0078125, %s4849_s12  ;;  %s8573_s12 = sand.u32 1, %s5317_s18  }
 0xd96   : > { %s4189_s30 = scalar_lea.sflag [#allocation10], %s8573_s12 }
 0xd97   : > { %s4177_s14 = ssub.f32 %s4175_s13, %s4176_s26  ;;  %s7858_s26 = scalar_lea.hbm %s7914_s11, %s4562_s15 }
 0xd98   : > { %s5171_s13 = scalar_lea.vmem %s7860_s29, 16 }
 0xd99   : > { %s4178_s0 = sadd.f32 1e-05, %s4177_s14  ;;  %p5172_p0 = scmp.ne.s32.totalorder %s7860_s29, %s5171_s13 }
 0xd9a   : > { %s5175_s14 = sshll.u32 %s5433_s21, 4  ;;  %s5176_s14 = int_to_ptr.vmem [resolvable:$false] %s5175_s14 }
 0xd9b   : > { %v4179_v55 = vstv %s4178_s0  ;;  %p5173_p1 = pnand %p5172_p0, %p5532_p5  ;;  %s5177_s0 = scalar_lea.vmem %s5176_s14, 32 }
 0xd9c   : > { %5169 = vrsqrt.f32 %v4179_v55  ;;  %p5178_p3 = scmp.lt.s32.totalorder %s7860_s29, %s5176_s14  ;;  %p5179_p4 = scmp.lt.s32.totalorder %s5177_s0, %s5171_s13 }
 0xd9d   : > { %p5174_p2 = pneg %p5173_p1 }
 0xd9e   : > { %p5180_p7 = por %p5179_p4, %p5178_p3 }
 0xda0   : > { %p5181_p8 = pnand %p5180_p7, %p5174_p2 }
 0xda6   : > { %v5170_v60 = vpop.eup %5169 }
 0xda7   : > { %4850 = vpush %v5170_v60 }
 0xdd8   : > { %s4851_s22 = spop %4850 }
 0xdd9   : > { %v4185_v30 = vstv %s4851_s22 }
 0xdda   : > { %v4186_v8 = vmul.f32 %v4185_v30, %v4184_v31 }
 0xddc   : > { %4187 = vst [vmem:[%s5577_s16] sm:$0x1] %v4186_v8 }
 0xddd   : > { %5184 = shalt.err (!%p5181_p8)
}
 0xdde   : > { %s5185_s16 = scalar_lea.hbm %s7858_s26, 16  ;;  %s5189_s24 = scalar_lea.hbm %s7914_s11, 32 }
 0xddf   : > { %p5186_p9 = scmp.ne.s32.totalorder %s7858_s26, %s5185_s16  ;;  %p5190_p12 = scmp.lt.u32.totalorder %s7858_s26, %s7914_s11 }
 0xde0   : > { %p5191_p13 = scmp.lt.u32.totalorder %s5189_s24, %s5185_s16  ;;  %p5193_p1 = scmp.lt.u32.totalorder %s5185_s16, %s7858_s26 }
 0xde1   : > { %p5187_p10 = pnand %p5186_p9, %p5532_p5 }
 0xde2   : > { %p5192_p0 = por %p5191_p13, %p5190_p12 }
 0xde3   : > { %p5188_p11 = pneg %p5187_p10 }
 0xde4   : > { %p5194_p2 = por %p5193_p1, %p5192_p0 }
 0xde6   : > { %p5195_p3 = pnand %p5194_p2, %p5188_p11 }
 0xde8   : > { %5198 = shalt.err (!%p5195_p3)
}
 0xde9   : > { %4852 = dma.vmem_to_hbm [thread:$0]  (%p5532_p5), %s7860_s29, 16, %s7858_s26, %s4189_s30  }
 0xdea PF: > { %p4858_p4 = scmp.ge.s32.totalorder %s5325_s20, 2  ;;  %s4213_s13 = sand.u32 1, %s5313_s17  }
 0xdeb   : > { %s4214_s21 = scalar_lea.sflag [#allocation10], %s4213_s13 }
 0xdec   : > { %p4855_p7 = pnand %p4858_p4, %p5536_p6 }
 0xdee   : > { %5308 = dma.done.wait (!%p4855_p7), %s4214_s21, 16  }
 0xdef   : > { %5310 = vsyncadd (!%p4855_p7), %s4214_s21, 4294967280  ;;  %s8574_s14 = sld [smem:[#allocation12_spill]]  ;;  %p21_p8 = scmp.ge.s32.totalorder %s5519_s23, 4  }
 0xdf0   : > { %s8575_s17 = smov %s5317_s18  ;;  %s8576_s18 = smov %s5321_s19 }
 0xdf1   : > { %s8578_s20 = smov %s5519_s23  ;;  %23 = sbr.rel (!%p21_p8) target bundleno = 5 (0x5), region = 437 }
 0xdf5   : > { %s8577_s19 = smov %s8574_s14 }
 0xdf8   :  { %4218 = vsyncpa [#allocation10], 1 }
 0xdf9   :  { %4220 = vsyncpa [#allocation10 + $0x1], 1 }

</bundles_post_ra>
